<compile_context>
chip_gen: v7x
topology: tpu7x:2x2x1
jax: 0.10.0
libtpu: 0.0.40
codegen_flags: <defaults>
</compile_context>

<pallas_src>
import functools

import jax
import jax.numpy as jnp
from jax.experimental import pallas as pl
from jax.experimental.pallas import tpu as pltpu

P = 10                 # module's self.p
K = 2 * P + 1          # Conv1d kernel size (21)
PAD0 = 16              # leading time halo, P rounded up to the bf16 sublane tile
PAD1 = 16              # trailing time halo (>= P), whole-tile zero stores


def _shift_conv_kernel(x_ref, w_ref, b_ref, o_ref, xpad_ref, *, T, Nb, C, Nb_blk):
    """One (group, batch-block) tile.

    x_ref:    (Nb, T, C)              un-padded input slab (original dtype)
    w_ref:    (K*C, C)         bf16   packed weights: row k*C+ci = W[co, ci, k]
    b_ref:    (1, C)           f32    bias
    o_ref:    (Nb, T, C)              output slab
    xpad_ref: (Nb, PAD0+T+PAD1, C) bf16 scratch: zero-padded time axis
    """
    cdt = w_ref.dtype
    base = PAD0 - P          # tap-0 read offset into the padded time axis

    # Halo zeroing, once per group: halos are never overwritten (the interior
    # fill only touches rows [PAD0, PAD0+T)), and the batch grid axis is
    # "arbitrary" (sequential from 0 on each core), so zeroing on the first
    # batch step suffices.  NOTE: if the batch axis is ever marked "parallel",
    # revert to zeroing every step.
    @pl.when(pl.program_id(1) == 0)
    def _():
        xpad_ref[:, pl.ds(0, PAD0), :] = jnp.zeros((Nb, PAD0, C), cdt)
        xpad_ref[:, pl.ds(PAD0 + T, PAD1), :] = jnp.zeros((Nb, PAD1, C), cdt)

    # Interior fill: PAD0 is a whole bf16 sublane tile, so this store is
    # tile-aligned and unmasked; the bf16 cast happens once here.
    xpad_ref[:, pl.ds(PAD0, T), :] = x_ref[...].astype(cdt)

    bias = b_ref[...].astype(jnp.float32)            # (1, C)

    # Per-tap accumulating contractions, in batch chunks of Nb_blk so that
    # M = Nb_blk*T ~= 128 and the f32 accumulator stays in registers.
    @pl.loop(0, Nb // Nb_blk)
    def _(h):
        n0 = pl.multiple_of(h * Nb_blk, Nb_blk)
        acc = jnp.zeros((Nb_blk * T, C), jnp.float32)
        for k in range(K):                           # 21 taps, unrolled
            # Tap k of output time t reads padded time base + k + t; the
            # (Nb_blk, T, C) -> (Nb_blk*T, C) reshape is a free tile fold
            # when T is a multiple of 16.
            lhs = xpad_ref[pl.ds(n0, Nb_blk), pl.ds(base + k, T), :]
            acc = acc + jnp.dot(
                lhs.reshape(Nb_blk * T, C),
                w_ref[pl.ds(k * C, C), :],
                preferred_element_type=jnp.float32,
            )
        y = (acc + bias).astype(o_ref.dtype).reshape(Nb_blk, T, C)
        # Lane-dense (C multiple of 128), tile-aligned output store.
        o_ref[pl.ds(n0, Nb_blk), :, :] = y


def shift_forward(x, w_flat, b, *, group_size, block_n=None):
    """x: (N, T, D); w_flat: (G, K*C, C) bf16; b: (G, 1, C) f32 -> (N, T, D)."""
    N, T, D = x.shape
    C = group_size
    G = D // C
    assert G * C == D
    # Lane-dense blocks only; pad C (e.g. 1000 -> 1024) at production size.
    assert C % 128 == 0, "group size must be a multiple of 128 (pad it)"
    if block_n is None:
        # M = Nb*T = 256 fills the 256-wide v6e/v7x MXU and amortizes per-step
        # pipeline overhead (v5e's 128-wide MXU just streams it in two passes).
        block_n = min(N, 16)
    Nb = block_n
    assert N % Nb == 0, "batch must be divisible by block_n"

    # Batch sub-chunk: M = Nb_blk*T ~= 128 keeps the f32 accumulator (plus one
    # bf16 LHS slice and one MXU result) inside the 64-entry vreg file.
    nb_blk = Nb
    while nb_blk > 1 and nb_blk * T > 128 and nb_blk % 2 == 0:
        nb_blk //= 2
    assert Nb % nb_blk == 0

    Tp = PAD0 + T + PAD1
    kernel = functools.partial(_shift_conv_kernel, T=T, Nb=Nb, C=C, Nb_blk=nb_blk)

    itemsize = x.dtype.itemsize
    cost = pl.CostEstimate(
        flops=2 * N * T * D * C * K,
        transcendentals=0,
        bytes_accessed=(2 * N * T * D * itemsize            # x in + out
                        + w_flat.size * w_flat.dtype.itemsize
                        + b.size * b.dtype.itemsize),
    )

    return pl.pallas_call(
        kernel,
        out_shape=jax.ShapeDtypeStruct((N, T, D), x.dtype),
        grid_spec=pltpu.PrefetchScalarGridSpec(
            num_scalar_prefetch=0,
            # Group axis outermost: the weight block index depends only on g,
            # so each group's weight slab is fetched from HBM exactly once.
            grid=(G, N // Nb),
            in_specs=[
                pl.BlockSpec((Nb, T, C), lambda g, n: (n, 0, g)),
                # Single-buffered: the weight block changes only once per
                # group, so double-buffering it is pure VMEM waste (a full
                # K*C x C slab -- decisive at production C on v7x).
                pl.BlockSpec((None, K * C, C), lambda g, n: (g, 0, 0),
                             pipeline_mode=pl.Buffered(1)),
                pl.BlockSpec((None, 1, C), lambda g, n: (g, 0, 0)),
            ],
            out_specs=pl.BlockSpec((Nb, T, C), lambda g, n: (n, 0, g)),
            scratch_shapes=[
                pltpu.VMEM((Nb, Tp, C), jnp.bfloat16),   # zero-padded activations
            ],
        ),
        compiler_params=pltpu.CompilerParams(
            # G leads and is "parallel": on v7x the two groups land on the two
            # TensorCores, each with its own VMEM-resident weight slab.  The
            # batch axis stays "arbitrary" (see halo-zeroing note in kernel).
            dimension_semantics=("parallel", "arbitrary"),
            # ~1.5 MiB used at this size; explicit limit is safe on
            # v5e/v6e/v7x and is the knob to raise for production tiling.
            vmem_limit_bytes=32 * 1024 * 1024,
        ),
        cost_estimate=cost,
    )(x, w_flat, b)


def shift_reference(x, weights_oik, biases):
    """Pure-JAX f32 reference using lax.conv (PyTorch NCW Conv1d semantics)."""
    outs = []
    for g, (w, bvec) in enumerate(zip(weights_oik, biases)):
        C = w.shape[0]
        xg = jnp.transpose(x[:, :, g * C:(g + 1) * C], (0, 2, 1))  # (N, C, T)
        yg = jax.lax.conv_general_dilated(
            xg, w, window_strides=(1,), padding=[(P, P)],
            dimension_numbers=("NCH", "OIH", "NCH"),
        )
        yg = yg + bvec[None, :, None]
        outs.append(jnp.transpose(yg, (0, 2, 1)))
    return jnp.concatenate(outs, axis=-1)


if __name__ == "__main__":
    # Scaled-down deterministic config (original module: groups [0,1000,2000]):
    # group size C = 128, n_group G = 2 => D = 256; batch 16, segment T = 16.
    N, T, C, G = 16, 16, 128, 2
    D = C * G

    key = jax.random.PRNGKey(0)
    kx, *kws = jax.random.split(key, 1 + 2 * G)
    x = jax.random.normal(kx, (N, T, D), jnp.float32)

    # Deterministic Conv1d parameters per group, PyTorch layout (C_out, C_in, K),
    # init matching nn.Conv1d's default U(-1/sqrt(fan_in), 1/sqrt(fan_in)).
    fan_in = C * K
    bound = 1.0 / (fan_in ** 0.5)
    weights = [
        jax.random.uniform(kws[2 * g], (C, C, K), jnp.float32, -bound, bound)
        for g in range(G)
    ]
    biases = [
        jax.random.uniform(kws[2 * g + 1], (C,), jnp.float32, -bound, bound)
        for g in range(G)
    ]

    # Repack for the kernel (tap-major rows, bf16):
    #   w_flat[g, k*C + ci, co] = W[g][co, ci, k]
    w_flat = jnp.stack(
        [jnp.transpose(w, (2, 1, 0)).reshape(K * C, C) for w in weights], axis=0
    ).astype(jnp.bfloat16)
    b = jnp.stack([bv[None, :] for bv in biases], axis=0)  # (G, 1, C) f32

    out = jax.block_until_ready(shift_forward(x, w_flat, b, group_size=C))
    ref = jax.block_until_ready(shift_reference(x, weights, biases))

    assert out.shape == (N, T, D) and out.dtype == x.dtype
    # bf16 MXU operands with f32 accumulation => loosened tolerance vs f32 ref.
    if not bool(jnp.allclose(out, ref, atol=3e-2, rtol=3e-2)):
        max_err = float(jnp.max(jnp.abs(out - ref)))
        raise AssertionError(f"Pallas Shift kernel mismatch, max_err={max_err}")

    print("KERNEL_OK")
</pallas_src>

<mosaic_0001>
module attributes {stable_mosaic.version = 11 : i64} {
  func.func @_shift_conv_kernel(%arg0: i32, %arg1: i32, %arg2: memref<16x16x128xf32, #tpu.memory_space<vmem>>, %arg3: memref<1x2688x128xbf16, #tpu.memory_space<vmem>>, %arg4: memref<1x1x128xf32, #tpu.memory_space<vmem>>, %arg5: memref<16x16x128xf32, #tpu.memory_space<vmem>>, %arg6: memref<16x48x128xbf16, #tpu.memory_space<vmem>>) attributes {dimension_semantics = [#tpu.dimension_semantics<parallel>, #tpu.dimension_semantics<arbitrary>], iteration_bounds = array<i64: 2, 1>, scalar_prefetch = 0 : i64, scratch_operands = 1 : i64, tpu.core_type = #tpu.core_type<tc>, window_params = [{transform_indices = @transform_0, window_bounds = array<i64: 16, 16, 128>}, {pipeline_mode = #tpu.pipeline_mode<synchronous>, transform_indices = @transform_1, window_bounds = array<i64: 1, 2688, 128>}, {transform_indices = @transform_2, window_bounds = array<i64: 1, 1, 128>}, {transform_indices = @transform_3, window_bounds = array<i64: 16, 16, 128>}]} {
    %c0_i32 = arith.constant 0 : i32
    %0 = arith.cmpi eq, %arg1, %c0_i32 : i32
    %1 = arith.extui %0 : i1 to i32
    %c0_i32_0 = arith.constant 0 : i32
    %2 = arith.cmpi ne, %1, %c0_i32_0 : i32
    scf.if %2 {
      %cst = arith.constant 0.000000e+00 : bf16
      %9 = vector.broadcast %cst : bf16 to vector<16x16x128xbf16>
      %c0_10 = arith.constant 0 : index
      %c0_11 = arith.constant 0 : index
      %c0_12 = arith.constant 0 : index
      %10 = vector.load %arg6[%c0_10, %c0_11, %c0_12] : memref<16x48x128xbf16, #tpu.memory_space<vmem>>, vector<16x16x128xbf16>
      tpu.vector_store %arg6[%c0_10, %c0_11, %c0_12], %9 {strides = array<i32>} : memref<16x48x128xbf16, #tpu.memory_space<vmem>>, vector<16x16x128xbf16>,
      %cst_13 = arith.constant 0.000000e+00 : bf16
      %11 = vector.broadcast %cst_13 : bf16 to vector<16x16x128xbf16>
      %c0_14 = arith.constant 0 : index
      %c32 = arith.constant 32 : index
      %c0_15 = arith.constant 0 : index
      %12 = vector.load %arg6[%c0_14, %c32, %c0_15] : memref<16x48x128xbf16, #tpu.memory_space<vmem>>, vector<16x16x128xbf16>
      tpu.vector_store %arg6[%c0_14, %c32, %c0_15], %11 {strides = array<i32>} : memref<16x48x128xbf16, #tpu.memory_space<vmem>>, vector<16x16x128xbf16>,
    } else {
    }
    %c0 = arith.constant 0 : index
    %c0_1 = arith.constant 0 : index
    %c0_2 = arith.constant 0 : index
    %3 = vector.load %arg2[%c0, %c0_1, %c0_2] : memref<16x16x128xf32, #tpu.memory_space<vmem>>, vector<16x16x128xf32>
    %4 = arith.truncf %3 : vector<16x16x128xf32> to vector<16x16x128xbf16>
    %c0_3 = arith.constant 0 : index
    %c16 = arith.constant 16 : index
    %c0_4 = arith.constant 0 : index
    %5 = vector.load %arg6[%c0_3, %c16, %c0_4] : memref<16x48x128xbf16, #tpu.memory_space<vmem>>, vector<16x16x128xbf16>
    tpu.vector_store %arg6[%c0_3, %c16, %c0_4], %4 {strides = array<i32>} : memref<16x48x128xbf16, #tpu.memory_space<vmem>>, vector<16x16x128xbf16>,
    %c0_5 = arith.constant 0 : index
    %c0_6 = arith.constant 0 : index
    %c0_7 = arith.constant 0 : index
    %6 = vector.load %arg4[%c0_5, %c0_6, %c0_7] : memref<1x1x128xf32, #tpu.memory_space<vmem>>, vector<1x1x128xf32>
    %7 = vector.shape_cast %6 : vector<1x1x128xf32> to vector<1x128xf32>
    %c0_i32_8 = arith.constant 0 : i32
    %c2_i32 = arith.constant 2 : i32
    %8 = arith.addi %c0_i32_8, %c2_i32 : i32
    %c1_i32 = arith.constant 1 : i32
    scf.for %arg7 = %c0_i32_8 to %8 step %c1_i32  : i32 {
      %c1_i32_10 = arith.constant 1 : i32
      %9 = arith.muli %arg7, %c1_i32_10 : i32
      %c0_i32_11 = arith.constant 0 : i32
      %10 = arith.addi %c0_i32_11, %9 : i32
      %c8_i32 = arith.constant 8 : i32
      %11 = arith.muli %10, %c8_i32 : i32
      %12 = tpu.assume_multiple %11, 8 : i32
      %cst = arith.constant 0.000000e+00 : f32
      %13 = vector.broadcast %cst : f32 to vector<128x128xf32>
      %14 = arith.index_cast %12 : i32 to index
      %c6 = arith.constant 6 : index
      %c0_12 = arith.constant 0 : index
      %15 = vector.load %arg6[%14, %c6, %c0_12] : memref<16x48x128xbf16, #tpu.memory_space<vmem>>, vector<8x16x128xbf16>
      %16 = vector.shape_cast %15 : vector<8x16x128xbf16> to vector<128x128xbf16>
      %c0_13 = arith.constant 0 : index
      %c0_14 = arith.constant 0 : index
      %c0_15 = arith.constant 0 : index
      %17 = vector.load %arg3[%c0_13, %c0_14, %c0_15] : memref<1x2688x128xbf16, #tpu.memory_space<vmem>>, vector<1x128x128xbf16>
      %18 = vector.shape_cast %17 : vector<1x128x128xbf16> to vector<128x128xbf16>
      %cst_16 = arith.constant dense<0.000000e+00> : vector<128x128xf32>
      %19 = tpu.matmul %16, %18, %cst_16 {dimension_numbers = #tpu.dot_dimension_numbers<[1], [0], [0], [1], [0, 0, 1, 1], [], []>} : vector<128x128xbf16>, vector<128x128xbf16>, vector<128x128xf32> -> vector<128x128xf32>
      %20 = arith.addf %13, %19 : vector<128x128xf32>
      %21 = arith.index_cast %12 : i32 to index
      %c7 = arith.constant 7 : index
      %c0_17 = arith.constant 0 : index
      %22 = vector.load %arg6[%21, %c7, %c0_17] : memref<16x48x128xbf16, #tpu.memory_space<vmem>>, vector<8x16x128xbf16>
      %23 = vector.shape_cast %22 : vector<8x16x128xbf16> to vector<128x128xbf16>
      %c0_18 = arith.constant 0 : index
      %c128 = arith.constant 128 : index
      %c0_19 = arith.constant 0 : index
      %24 = vector.load %arg3[%c0_18, %c128, %c0_19] : memref<1x2688x128xbf16, #tpu.memory_space<vmem>>, vector<1x128x128xbf16>
      %25 = vector.shape_cast %24 : vector<1x128x128xbf16> to vector<128x128xbf16>
      %cst_20 = arith.constant dense<0.000000e+00> : vector<128x128xf32>
      %26 = tpu.matmul %23, %25, %cst_20 {dimension_numbers = #tpu.dot_dimension_numbers<[1], [0], [0], [1], [0, 0, 1, 1], [], []>} : vector<128x128xbf16>, vector<128x128xbf16>, vector<128x128xf32> -> vector<128x128xf32>
      %27 = arith.addf %20, %26 : vector<128x128xf32>
      %28 = arith.index_cast %12 : i32 to index
      %c8 = arith.constant 8 : index
      %c0_21 = arith.constant 0 : index
      %29 = vector.load %arg6[%28, %c8, %c0_21] : memref<16x48x128xbf16, #tpu.memory_space<vmem>>, vector<8x16x128xbf16>
      %30 = vector.shape_cast %29 : vector<8x16x128xbf16> to vector<128x128xbf16>
      %c0_22 = arith.constant 0 : index
      %c256 = arith.constant 256 : index
      %c0_23 = arith.constant 0 : index
      %31 = vector.load %arg3[%c0_22, %c256, %c0_23] : memref<1x2688x128xbf16, #tpu.memory_space<vmem>>, vector<1x128x128xbf16>
      %32 = vector.shape_cast %31 : vector<1x128x128xbf16> to vector<128x128xbf16>
      %cst_24 = arith.constant dense<0.000000e+00> : vector<128x128xf32>
      %33 = tpu.matmul %30, %32, %cst_24 {dimension_numbers = #tpu.dot_dimension_numbers<[1], [0], [0], [1], [0, 0, 1, 1], [], []>} : vector<128x128xbf16>, vector<128x128xbf16>, vector<128x128xf32> -> vector<128x128xf32>
      %34 = arith.addf %27, %33 : vector<128x128xf32>
      %35 = arith.index_cast %12 : i32 to index
      %c9 = arith.constant 9 : index
      %c0_25 = arith.constant 0 : index
      %36 = vector.load %arg6[%35, %c9, %c0_25] : memref<16x48x128xbf16, #tpu.memory_space<vmem>>, vector<8x16x128xbf16>
      %37 = vector.shape_cast %36 : vector<8x16x128xbf16> to vector<128x128xbf16>
      %c0_26 = arith.constant 0 : index
      %c384 = arith.constant 384 : index
      %c0_27 = arith.constant 0 : index
      %38 = vector.load %arg3[%c0_26, %c384, %c0_27] : memref<1x2688x128xbf16, #tpu.memory_space<vmem>>, vector<1x128x128xbf16>
      %39 = vector.shape_cast %38 : vector<1x128x128xbf16> to vector<128x128xbf16>
      %cst_28 = arith.constant dense<0.000000e+00> : vector<128x128xf32>
      %40 = tpu.matmul %37, %39, %cst_28 {dimension_numbers = #tpu.dot_dimension_numbers<[1], [0], [0], [1], [0, 0, 1, 1], [], []>} : vector<128x128xbf16>, vector<128x128xbf16>, vector<128x128xf32> -> vector<128x128xf32>
      %41 = arith.addf %34, %40 : vector<128x128xf32>
      %42 = arith.index_cast %12 : i32 to index
      %c10 = arith.constant 10 : index
      %c0_29 = arith.constant 0 : index
      %43 = vector.load %arg6[%42, %c10, %c0_29] : memref<16x48x128xbf16, #tpu.memory_space<vmem>>, vector<8x16x128xbf16>
      %44 = vector.shape_cast %43 : vector<8x16x128xbf16> to vector<128x128xbf16>
      %c0_30 = arith.constant 0 : index
      %c512 = arith.constant 512 : index
      %c0_31 = arith.constant 0 : index
      %45 = vector.load %arg3[%c0_30, %c512, %c0_31] : memref<1x2688x128xbf16, #tpu.memory_space<vmem>>, vector<1x128x128xbf16>
      %46 = vector.shape_cast %45 : vector<1x128x128xbf16> to vector<128x128xbf16>
      %cst_32 = arith.constant dense<0.000000e+00> : vector<128x128xf32>
      %47 = tpu.matmul %44, %46, %cst_32 {dimension_numbers = #tpu.dot_dimension_numbers<[1], [0], [0], [1], [0, 0, 1, 1], [], []>} : vector<128x128xbf16>, vector<128x128xbf16>, vector<128x128xf32> -> vector<128x128xf32>
      %48 = arith.addf %41, %47 : vector<128x128xf32>
      %49 = arith.index_cast %12 : i32 to index
      %c11 = arith.constant 11 : index
      %c0_33 = arith.constant 0 : index
      %50 = vector.load %arg6[%49, %c11, %c0_33] : memref<16x48x128xbf16, #tpu.memory_space<vmem>>, vector<8x16x128xbf16>
      %51 = vector.shape_cast %50 : vector<8x16x128xbf16> to vector<128x128xbf16>
      %c0_34 = arith.constant 0 : index
      %c640 = arith.constant 640 : index
      %c0_35 = arith.constant 0 : index
      %52 = vector.load %arg3[%c0_34, %c640, %c0_35] : memref<1x2688x128xbf16, #tpu.memory_space<vmem>>, vector<1x128x128xbf16>
      %53 = vector.shape_cast %52 : vector<1x128x128xbf16> to vector<128x128xbf16>
      %cst_36 = arith.constant dense<0.000000e+00> : vector<128x128xf32>
      %54 = tpu.matmul %51, %53, %cst_36 {dimension_numbers = #tpu.dot_dimension_numbers<[1], [0], [0], [1], [0, 0, 1, 1], [], []>} : vector<128x128xbf16>, vector<128x128xbf16>, vector<128x128xf32> -> vector<128x128xf32>
      %55 = arith.addf %48, %54 : vector<128x128xf32>
      %56 = arith.index_cast %12 : i32 to index
      %c12 = arith.constant 12 : index
      %c0_37 = arith.constant 0 : index
      %57 = vector.load %arg6[%56, %c12, %c0_37] : memref<16x48x128xbf16, #tpu.memory_space<vmem>>, vector<8x16x128xbf16>
      %58 = vector.shape_cast %57 : vector<8x16x128xbf16> to vector<128x128xbf16>
      %c0_38 = arith.constant 0 : index
      %c768 = arith.constant 768 : index
      %c0_39 = arith.constant 0 : index
      %59 = vector.load %arg3[%c0_38, %c768, %c0_39] : memref<1x2688x128xbf16, #tpu.memory_space<vmem>>, vector<1x128x128xbf16>
      %60 = vector.shape_cast %59 : vector<1x128x128xbf16> to vector<128x128xbf16>
      %cst_40 = arith.constant dense<0.000000e+00> : vector<128x128xf32>
      %61 = tpu.matmul %58, %60, %cst_40 {dimension_numbers = #tpu.dot_dimension_numbers<[1], [0], [0], [1], [0, 0, 1, 1], [], []>} : vector<128x128xbf16>, vector<128x128xbf16>, vector<128x128xf32> -> vector<128x128xf32>
      %62 = arith.addf %55, %61 : vector<128x128xf32>
      %63 = arith.index_cast %12 : i32 to index
      %c13 = arith.constant 13 : index
      %c0_41 = arith.constant 0 : index
      %64 = vector.load %arg6[%63, %c13, %c0_41] : memref<16x48x128xbf16, #tpu.memory_space<vmem>>, vector<8x16x128xbf16>
      %65 = vector.shape_cast %64 : vector<8x16x128xbf16> to vector<128x128xbf16>
      %c0_42 = arith.constant 0 : index
      %c896 = arith.constant 896 : index
      %c0_43 = arith.constant 0 : index
      %66 = vector.load %arg3[%c0_42, %c896, %c0_43] : memref<1x2688x128xbf16, #tpu.memory_space<vmem>>, vector<1x128x128xbf16>
      %67 = vector.shape_cast %66 : vector<1x128x128xbf16> to vector<128x128xbf16>
      %cst_44 = arith.constant dense<0.000000e+00> : vector<128x128xf32>
      %68 = tpu.matmul %65, %67, %cst_44 {dimension_numbers = #tpu.dot_dimension_numbers<[1], [0], [0], [1], [0, 0, 1, 1], [], []>} : vector<128x128xbf16>, vector<128x128xbf16>, vector<128x128xf32> -> vector<128x128xf32>
      %69 = arith.addf %62, %68 : vector<128x128xf32>
      %70 = arith.index_cast %12 : i32 to index
      %c14 = arith.constant 14 : index
      %c0_45 = arith.constant 0 : index
      %71 = vector.load %arg6[%70, %c14, %c0_45] : memref<16x48x128xbf16, #tpu.memory_space<vmem>>, vector<8x16x128xbf16>
      %72 = vector.shape_cast %71 : vector<8x16x128xbf16> to vector<128x128xbf16>
      %c0_46 = arith.constant 0 : index
      %c1024 = arith.constant 1024 : index
      %c0_47 = arith.constant 0 : index
      %73 = vector.load %arg3[%c0_46, %c1024, %c0_47] : memref<1x2688x128xbf16, #tpu.memory_space<vmem>>, vector<1x128x128xbf16>
      %74 = vector.shape_cast %73 : vector<1x128x128xbf16> to vector<128x128xbf16>
      %cst_48 = arith.constant dense<0.000000e+00> : vector<128x128xf32>
      %75 = tpu.matmul %72, %74, %cst_48 {dimension_numbers = #tpu.dot_dimension_numbers<[1], [0], [0], [1], [0, 0, 1, 1], [], []>} : vector<128x128xbf16>, vector<128x128xbf16>, vector<128x128xf32> -> vector<128x128xf32>
      %76 = arith.addf %69, %75 : vector<128x128xf32>
      %77 = arith.index_cast %12 : i32 to index
      %c15 = arith.constant 15 : index
      %c0_49 = arith.constant 0 : index
      %78 = vector.load %arg6[%77, %c15, %c0_49] : memref<16x48x128xbf16, #tpu.memory_space<vmem>>, vector<8x16x128xbf16>
      %79 = vector.shape_cast %78 : vector<8x16x128xbf16> to vector<128x128xbf16>
      %c0_50 = arith.constant 0 : index
      %c1152 = arith.constant 1152 : index
      %c0_51 = arith.constant 0 : index
      %80 = vector.load %arg3[%c0_50, %c1152, %c0_51] : memref<1x2688x128xbf16, #tpu.memory_space<vmem>>, vector<1x128x128xbf16>
      %81 = vector.shape_cast %80 : vector<1x128x128xbf16> to vector<128x128xbf16>
      %cst_52 = arith.constant dense<0.000000e+00> : vector<128x128xf32>
      %82 = tpu.matmul %79, %81, %cst_52 {dimension_numbers = #tpu.dot_dimension_numbers<[1], [0], [0], [1], [0, 0, 1, 1], [], []>} : vector<128x128xbf16>, vector<128x128xbf16>, vector<128x128xf32> -> vector<128x128xf32>
      %83 = arith.addf %76, %82 : vector<128x128xf32>
      %84 = arith.index_cast %12 : i32 to index
      %c16_53 = arith.constant 16 : index
      %c0_54 = arith.constant 0 : index
      %85 = vector.load %arg6[%84, %c16_53, %c0_54] : memref<16x48x128xbf16, #tpu.memory_space<vmem>>, vector<8x16x128xbf16>
      %86 = vector.shape_cast %85 : vector<8x16x128xbf16> to vector<128x128xbf16>
      %c0_55 = arith.constant 0 : index
      %c1280 = arith.constant 1280 : index
      %c0_56 = arith.constant 0 : index
      %87 = vector.load %arg3[%c0_55, %c1280, %c0_56] : memref<1x2688x128xbf16, #tpu.memory_space<vmem>>, vector<1x128x128xbf16>
      %88 = vector.shape_cast %87 : vector<1x128x128xbf16> to vector<128x128xbf16>
      %cst_57 = arith.constant dense<0.000000e+00> : vector<128x128xf32>
      %89 = tpu.matmul %86, %88, %cst_57 {dimension_numbers = #tpu.dot_dimension_numbers<[1], [0], [0], [1], [0, 0, 1, 1], [], []>} : vector<128x128xbf16>, vector<128x128xbf16>, vector<128x128xf32> -> vector<128x128xf32>
      %90 = arith.addf %83, %89 : vector<128x128xf32>
      %91 = arith.index_cast %12 : i32 to index
      %c17 = arith.constant 17 : index
      %c0_58 = arith.constant 0 : index
      %92 = vector.load %arg6[%91, %c17, %c0_58] : memref<16x48x128xbf16, #tpu.memory_space<vmem>>, vector<8x16x128xbf16>
      %93 = vector.shape_cast %92 : vector<8x16x128xbf16> to vector<128x128xbf16>
      %c0_59 = arith.constant 0 : index
      %c1408 = arith.constant 1408 : index
      %c0_60 = arith.constant 0 : index
      %94 = vector.load %arg3[%c0_59, %c1408, %c0_60] : memref<1x2688x128xbf16, #tpu.memory_space<vmem>>, vector<1x128x128xbf16>
      %95 = vector.shape_cast %94 : vector<1x128x128xbf16> to vector<128x128xbf16>
      %cst_61 = arith.constant dense<0.000000e+00> : vector<128x128xf32>
      %96 = tpu.matmul %93, %95, %cst_61 {dimension_numbers = #tpu.dot_dimension_numbers<[1], [0], [0], [1], [0, 0, 1, 1], [], []>} : vector<128x128xbf16>, vector<128x128xbf16>, vector<128x128xf32> -> vector<128x128xf32>
      %97 = arith.addf %90, %96 : vector<128x128xf32>
      %98 = arith.index_cast %12 : i32 to index
      %c18 = arith.constant 18 : index
      %c0_62 = arith.constant 0 : index
      %99 = vector.load %arg6[%98, %c18, %c0_62] : memref<16x48x128xbf16, #tpu.memory_space<vmem>>, vector<8x16x128xbf16>
      %100 = vector.shape_cast %99 : vector<8x16x128xbf16> to vector<128x128xbf16>
      %c0_63 = arith.constant 0 : index
      %c1536 = arith.constant 1536 : index
      %c0_64 = arith.constant 0 : index
      %101 = vector.load %arg3[%c0_63, %c1536, %c0_64] : memref<1x2688x128xbf16, #tpu.memory_space<vmem>>, vector<1x128x128xbf16>
      %102 = vector.shape_cast %101 : vector<1x128x128xbf16> to vector<128x128xbf16>
      %cst_65 = arith.constant dense<0.000000e+00> : vector<128x128xf32>
      %103 = tpu.matmul %100, %102, %cst_65 {dimension_numbers = #tpu.dot_dimension_numbers<[1], [0], [0], [1], [0, 0, 1, 1], [], []>} : vector<128x128xbf16>, vector<128x128xbf16>, vector<128x128xf32> -> vector<128x128xf32>
      %104 = arith.addf %97, %103 : vector<128x128xf32>
      %105 = arith.index_cast %12 : i32 to index
      %c19 = arith.constant 19 : index
      %c0_66 = arith.constant 0 : index
      %106 = vector.load %arg6[%105, %c19, %c0_66] : memref<16x48x128xbf16, #tpu.memory_space<vmem>>, vector<8x16x128xbf16>
      %107 = vector.shape_cast %106 : vector<8x16x128xbf16> to vector<128x128xbf16>
      %c0_67 = arith.constant 0 : index
      %c1664 = arith.constant 1664 : index
      %c0_68 = arith.constant 0 : index
      %108 = vector.load %arg3[%c0_67, %c1664, %c0_68] : memref<1x2688x128xbf16, #tpu.memory_space<vmem>>, vector<1x128x128xbf16>
      %109 = vector.shape_cast %108 : vector<1x128x128xbf16> to vector<128x128xbf16>
      %cst_69 = arith.constant dense<0.000000e+00> : vector<128x128xf32>
      %110 = tpu.matmul %107, %109, %cst_69 {dimension_numbers = #tpu.dot_dimension_numbers<[1], [0], [0], [1], [0, 0, 1, 1], [], []>} : vector<128x128xbf16>, vector<128x128xbf16>, vector<128x128xf32> -> vector<128x128xf32>
      %111 = arith.addf %104, %110 : vector<128x128xf32>
      %112 = arith.index_cast %12 : i32 to index
      %c20 = arith.constant 20 : index
      %c0_70 = arith.constant 0 : index
      %113 = vector.load %arg6[%112, %c20, %c0_70] : memref<16x48x128xbf16, #tpu.memory_space<vmem>>, vector<8x16x128xbf16>
      %114 = vector.shape_cast %113 : vector<8x16x128xbf16> to vector<128x128xbf16>
      %c0_71 = arith.constant 0 : index
      %c1792 = arith.constant 1792 : index
      %c0_72 = arith.constant 0 : index
      %115 = vector.load %arg3[%c0_71, %c1792, %c0_72] : memref<1x2688x128xbf16, #tpu.memory_space<vmem>>, vector<1x128x128xbf16>
      %116 = vector.shape_cast %115 : vector<1x128x128xbf16> to vector<128x128xbf16>
      %cst_73 = arith.constant dense<0.000000e+00> : vector<128x128xf32>
      %117 = tpu.matmul %114, %116, %cst_73 {dimension_numbers = #tpu.dot_dimension_numbers<[1], [0], [0], [1], [0, 0, 1, 1], [], []>} : vector<128x128xbf16>, vector<128x128xbf16>, vector<128x128xf32> -> vector<128x128xf32>
      %118 = arith.addf %111, %117 : vector<128x128xf32>
      %119 = arith.index_cast %12 : i32 to index
      %c21 = arith.constant 21 : index
      %c0_74 = arith.constant 0 : index
      %120 = vector.load %arg6[%119, %c21, %c0_74] : memref<16x48x128xbf16, #tpu.memory_space<vmem>>, vector<8x16x128xbf16>
      %121 = vector.shape_cast %120 : vector<8x16x128xbf16> to vector<128x128xbf16>
      %c0_75 = arith.constant 0 : index
      %c1920 = arith.constant 1920 : index
      %c0_76 = arith.constant 0 : index
      %122 = vector.load %arg3[%c0_75, %c1920, %c0_76] : memref<1x2688x128xbf16, #tpu.memory_space<vmem>>, vector<1x128x128xbf16>
      %123 = vector.shape_cast %122 : vector<1x128x128xbf16> to vector<128x128xbf16>
      %cst_77 = arith.constant dense<0.000000e+00> : vector<128x128xf32>
      %124 = tpu.matmul %121, %123, %cst_77 {dimension_numbers = #tpu.dot_dimension_numbers<[1], [0], [0], [1], [0, 0, 1, 1], [], []>} : vector<128x128xbf16>, vector<128x128xbf16>, vector<128x128xf32> -> vector<128x128xf32>
      %125 = arith.addf %118, %124 : vector<128x128xf32>
      %126 = arith.index_cast %12 : i32 to index
      %c22 = arith.constant 22 : index
      %c0_78 = arith.constant 0 : index
      %127 = vector.load %arg6[%126, %c22, %c0_78] : memref<16x48x128xbf16, #tpu.memory_space<vmem>>, vector<8x16x128xbf16>
      %128 = vector.shape_cast %127 : vector<8x16x128xbf16> to vector<128x128xbf16>
      %c0_79 = arith.constant 0 : index
      %c2048 = arith.constant 2048 : index
      %c0_80 = arith.constant 0 : index
      %129 = vector.load %arg3[%c0_79, %c2048, %c0_80] : memref<1x2688x128xbf16, #tpu.memory_space<vmem>>, vector<1x128x128xbf16>
      %130 = vector.shape_cast %129 : vector<1x128x128xbf16> to vector<128x128xbf16>
      %cst_81 = arith.constant dense<0.000000e+00> : vector<128x128xf32>
      %131 = tpu.matmul %128, %130, %cst_81 {dimension_numbers = #tpu.dot_dimension_numbers<[1], [0], [0], [1], [0, 0, 1, 1], [], []>} : vector<128x128xbf16>, vector<128x128xbf16>, vector<128x128xf32> -> vector<128x128xf32>
      %132 = arith.addf %125, %131 : vector<128x128xf32>
      %133 = arith.index_cast %12 : i32 to index
      %c23 = arith.constant 23 : index
      %c0_82 = arith.constant 0 : index
      %134 = vector.load %arg6[%133, %c23, %c0_82] : memref<16x48x128xbf16, #tpu.memory_space<vmem>>, vector<8x16x128xbf16>
      %135 = vector.shape_cast %134 : vector<8x16x128xbf16> to vector<128x128xbf16>
      %c0_83 = arith.constant 0 : index
      %c2176 = arith.constant 2176 : index
      %c0_84 = arith.constant 0 : index
      %136 = vector.load %arg3[%c0_83, %c2176, %c0_84] : memref<1x2688x128xbf16, #tpu.memory_space<vmem>>, vector<1x128x128xbf16>
      %137 = vector.shape_cast %136 : vector<1x128x128xbf16> to vector<128x128xbf16>
      %cst_85 = arith.constant dense<0.000000e+00> : vector<128x128xf32>
      %138 = tpu.matmul %135, %137, %cst_85 {dimension_numbers = #tpu.dot_dimension_numbers<[1], [0], [0], [1], [0, 0, 1, 1], [], []>} : vector<128x128xbf16>, vector<128x128xbf16>, vector<128x128xf32> -> vector<128x128xf32>
      %139 = arith.addf %132, %138 : vector<128x128xf32>
      %140 = arith.index_cast %12 : i32 to index
      %c24 = arith.constant 24 : index
      %c0_86 = arith.constant 0 : index
      %141 = vector.load %arg6[%140, %c24, %c0_86] : memref<16x48x128xbf16, #tpu.memory_space<vmem>>, vector<8x16x128xbf16>
      %142 = vector.shape_cast %141 : vector<8x16x128xbf16> to vector<128x128xbf16>
      %c0_87 = arith.constant 0 : index
      %c2304 = arith.constant 2304 : index
      %c0_88 = arith.constant 0 : index
      %143 = vector.load %arg3[%c0_87, %c2304, %c0_88] : memref<1x2688x128xbf16, #tpu.memory_space<vmem>>, vector<1x128x128xbf16>
      %144 = vector.shape_cast %143 : vector<1x128x128xbf16> to vector<128x128xbf16>
      %cst_89 = arith.constant dense<0.000000e+00> : vector<128x128xf32>
      %145 = tpu.matmul %142, %144, %cst_89 {dimension_numbers = #tpu.dot_dimension_numbers<[1], [0], [0], [1], [0, 0, 1, 1], [], []>} : vector<128x128xbf16>, vector<128x128xbf16>, vector<128x128xf32> -> vector<128x128xf32>
      %146 = arith.addf %139, %145 : vector<128x128xf32>
      %147 = arith.index_cast %12 : i32 to index
      %c25 = arith.constant 25 : index
      %c0_90 = arith.constant 0 : index
      %148 = vector.load %arg6[%147, %c25, %c0_90] : memref<16x48x128xbf16, #tpu.memory_space<vmem>>, vector<8x16x128xbf16>
      %149 = vector.shape_cast %148 : vector<8x16x128xbf16> to vector<128x128xbf16>
      %c0_91 = arith.constant 0 : index
      %c2432 = arith.constant 2432 : index
      %c0_92 = arith.constant 0 : index
      %150 = vector.load %arg3[%c0_91, %c2432, %c0_92] : memref<1x2688x128xbf16, #tpu.memory_space<vmem>>, vector<1x128x128xbf16>
      %151 = vector.shape_cast %150 : vector<1x128x128xbf16> to vector<128x128xbf16>
      %cst_93 = arith.constant dense<0.000000e+00> : vector<128x128xf32>
      %152 = tpu.matmul %149, %151, %cst_93 {dimension_numbers = #tpu.dot_dimension_numbers<[1], [0], [0], [1], [0, 0, 1, 1], [], []>} : vector<128x128xbf16>, vector<128x128xbf16>, vector<128x128xf32> -> vector<128x128xf32>
      %153 = arith.addf %146, %152 : vector<128x128xf32>
      %154 = arith.index_cast %12 : i32 to index
      %c26 = arith.constant 26 : index
      %c0_94 = arith.constant 0 : index
      %155 = vector.load %arg6[%154, %c26, %c0_94] : memref<16x48x128xbf16, #tpu.memory_space<vmem>>, vector<8x16x128xbf16>
      %156 = vector.shape_cast %155 : vector<8x16x128xbf16> to vector<128x128xbf16>
      %c0_95 = arith.constant 0 : index
      %c2560 = arith.constant 2560 : index
      %c0_96 = arith.constant 0 : index
      %157 = vector.load %arg3[%c0_95, %c2560, %c0_96] : memref<1x2688x128xbf16, #tpu.memory_space<vmem>>, vector<1x128x128xbf16>
      %158 = vector.shape_cast %157 : vector<1x128x128xbf16> to vector<128x128xbf16>
      %cst_97 = arith.constant dense<0.000000e+00> : vector<128x128xf32>
      %159 = tpu.matmul %156, %158, %cst_97 {dimension_numbers = #tpu.dot_dimension_numbers<[1], [0], [0], [1], [0, 0, 1, 1], [], []>} : vector<128x128xbf16>, vector<128x128xbf16>, vector<128x128xf32> -> vector<128x128xf32>
      %160 = arith.addf %153, %159 : vector<128x128xf32>
      %161 = vector.broadcast %7 : vector<1x128xf32> to vector<128x128xf32>
      %162 = arith.addf %160, %161 : vector<128x128xf32>
      %163 = vector.shape_cast %162 : vector<128x128xf32> to vector<8x16x128xf32>
      %164 = arith.index_cast %12 : i32 to index
      %c0_98 = arith.constant 0 : index
      %c0_99 = arith.constant 0 : index
      %165 = vector.load %arg5[%164, %c0_98, %c0_99] : memref<16x16x128xf32, #tpu.memory_space<vmem>>, vector<8x16x128xf32>
      tpu.vector_store %arg5[%164, %c0_98, %c0_99], %163 {strides = array<i32>} : memref<16x16x128xf32, #tpu.memory_space<vmem>>, vector<8x16x128xf32>,
    }
    %c2_i32_9 = arith.constant 2 : i32
    return
  }
  func.func @transform_0(%arg0: i32, %arg1: i32) -> (i32, i32, i32) {
    %c0_i32 = arith.constant 0 : i32
    %c0_i32_0 = arith.constant 0 : i32
    return %arg1, %c0_i32, %arg0 : i32, i32, i32
  }
  func.func @transform_1(%arg0: i32, %arg1: i32) -> (i32, i32, i32) {
    %c0_i32 = arith.constant 0 : i32
    %c0_i32_0 = arith.constant 0 : i32
    %c0_i32_1 = arith.constant 0 : i32
    return %arg0, %c0_i32, %c0_i32_0 : i32, i32, i32
  }
  func.func @transform_2(%arg0: i32, %arg1: i32) -> (i32, i32, i32) {
    %c0_i32 = arith.constant 0 : i32
    %c0_i32_0 = arith.constant 0 : i32
    %c0_i32_1 = arith.constant 0 : i32
    return %arg0, %c0_i32, %c0_i32_0 : i32, i32, i32
  }
  func.func @transform_3(%arg0: i32, %arg1: i32) -> (i32, i32, i32) {
    %c0_i32 = arith.constant 0 : i32
    %c0_i32_0 = arith.constant 0 : i32
    return %arg1, %c0_i32, %arg0 : i32, i32, i32
  }
}

</mosaic_0001>

<bundles_post_ra>
// kernel: tpu_custom_call.1
= control target key start
LH: loop header
LB: loop body
LE: loop exit
PB: predicated region body
PF: predicated region fallthrough
CT: control target
= control target key end

     0   :  { %s10090_s0 = inlined_call_operand.hbm [shape: f32[16,16,256], index: 0, kind: input, shape index: {}]   ;;  %s10091_s1 = inlined_call_operand.hbm [shape: bf16[2,2688,128], index: 1, kind: input, shape index: {}]   ;;  %s10092_s2 = inlined_call_operand.hbm [shape: f32[2,1,128], index: 2, kind: input, shape index: {}]   ;;  %s10093_s3 = inlined_call_operand.hbm [shape: f32[16,16,256], index: 3, kind: output, shape index: {}]  }
   0x1   :  { %10106 = sst [smem:[#allocation14_spill]] %s10090_s0 }
   0x2   :  { %8 = vsyncpa [#allocation4], 0 }
   0x3   :  { %10 = vsyncpa [#allocation4 + $0x1], 0 }
   0x4   :  { %11 = vsyncpa [#allocation7], 0 }
   0x5   :  { %12 = vsyncpa [#allocation5], 0 }
   0x6   :  { %14 = vsyncpa [#allocation5 + $0x1], 0  ;;  %s8287_s12 = smov 0   ;;  %s8289_s13 = smov 0  }
   0x7   :  { %s8291_s14 = smov 0   ;;  %s8293_s15 = smov 0  }
   0x8   :  { %s8295_s16 = smov 0   ;;  %s8297_s17 = smov 0  }
   0x9 LB: > { %s32_s18 = sadd.s32 1, %s8244_s16  ;;  %s41_s19 = sadd.s32 1, %s8236_s14  ;;  %s8248_s17 = sphi %s8297_s17, %s20_s17   ;;  %s8244_s16 = sphi %s8295_s16, %s10131_s16   ;;  %s8240_s15 = sphi %s8293_s15, %s10130_s15   ;;  %s8236_s14 = sphi %s8291_s14, %s10129_s14   ;;  %s8232_s13 = sphi %s8289_s13, %s10128_s13   ;;  %s8228_s12 = sphi %s8287_s12, %s10127_s12  }
   0xa   : > { %p34_p0 = scmp.ge.s32.totalorder %s32_s18, 2  ;;  %p48_p1 = scmp.ne.s32.totalorder %s8236_s14, %s8232_s13 }
   0xb   : > { %p49_p2 = scmp.eq.s32.totalorder %s8248_s17, 0  ;;  %p7828_p5 = scmp.lt.s32.totalorder %s8248_s17, 2 }
   0xc   : > { %s10133_s18 = smov (%p34_p0, %s32_s18), 0  ;;  %s174_s21 = sand.u32 1, %s8248_s17  }
   0xd   : > { %p50_p4 = por %p49_p2, %p48_p1  ;;  %s37_s20 = ssub.s32 %s8244_s16, %s10133_s18 }
   0xe   : > { %p39_p6 = scmp.eq.s32.totalorder %s37_s20, 0  ;;  %s176_s22 = sand.u32 1, %s8236_s14  }
   0xf   : > { %s6276_s23 = sshll.u32 %s8244_s16, 7  ;;  %s6275_s25 = sshll.u32 %s176_s22, 8 }
  0x10   : > { %s8335_s24 = scalar_select %p39_p6, %s8236_s14, %s41_s19  }
  0x11   : > { %s10107_s0 = sld [smem:[#allocation14_spill]]  ;;  %p8344_p7 = pnand %p7828_p5, %p50_p4 }
  0x12   : > { %s178_s30 = scalar_lea.vmem [#allocation3], %s6275_s25  ;;  %s8350_s5 = scalar_lea.sflag [#allocation4], %s174_s21 }
  0x13   : > { %s10108_s29 = scalar_select %p8344_p7, 1, 0 }
  0x14   : > { %s187_s4 = sshll.u32 %s178_s30, 4  ;;  %p10094_p9 = pneg %p8344_p7  ;;  %s8348_s4 = int_to_ptr.vmem [resolvable:$true] %s187_s4 }
  0x17   : > { %s8342_s28 = scalar_lea.hbm %s10107_s0, %s6276_s23  ;;  %s8069_s9 = scalar_lea.hbm %s10107_s0, 8192 }
  0x18   : > { %s8064_s6 = scalar_lea.hbm %s8342_s28, 4096  ;;  %p8070_p12 = scmp.lt.u32.totalorder %s8342_s28, %s10107_s0 }
  0x19   : > { %p8065_p8 = scmp.ne.s32.totalorder %s8342_s28, %s8064_s6  ;;  %p8071_p13 = scmp.lt.u32.totalorder %s8069_s9, %s8064_s6 }
  0x1a   : > { %p8073_p2 = scmp.lt.u32.totalorder %s8064_s6, %s8342_s28 }
  0x1b   : > { %p8067_p10 = pnand %p10094_p9, %p8065_p8  ;;  %p8072_p0 = por %p8071_p13, %p8070_p12 }
  0x1d   : > { %p8068_p11 = pneg %p8067_p10  ;;  %p8074_p4 = por %p8073_p2, %p8072_p0 }
  0x1f   : > { %p8075_p5 = pnand %p8074_p4, %p8068_p11 }
  0x21   : > { %8078 = shalt.err (!%p8075_p5)
}
  0x22   : > { %s8079_s19 = scalar_lea.vmem %s8348_s4, 4096  ;;  %s8254_s20 = smov [#allocation3]  }
  0x23   : > { %p8080_p6 = scmp.ne.s32.totalorder %s8348_s4, %s8079_s19  ;;  %s8084_s21 = sshll.u32 %s8254_s20, 4  ;;  %s8085_s21 = int_to_ptr.vmem [resolvable:$false] %s8084_s21 }
  0x24   : > { %s8086_s23 = scalar_lea.vmem %s8085_s21, 8192  ;;  %p8087_p3 = scmp.lt.s32.totalorder %s8348_s4, %s8085_s21 }
  0x25   : > { %p8082_p8 = pnand %p8080_p6, %p10094_p9  ;;  %p8088_p12 = scmp.lt.s32.totalorder %s8086_s23, %s8079_s19 }
  0x27   : > { %p8083_p10 = pneg %p8082_p8  ;;  %p8089_p13 = por %p8088_p12, %p8087_p3 }
  0x29   : > { %p8090_p0 = pnand %p8089_p13, %p8083_p10 }
  0x2b   : > { %8093 = shalt.err (!%p8090_p0)
}
  0x2c   : > { %s8255_s25 = smov 256   ;;  %s8256_s26 = smov 128  }
  0x2d   : > { %s8257_s27 = smov 8   ;;  %s8379_s30 = sadd.s32 4294967295, %s8248_s17  }
  0x2e   : > { %7820 = dma.hbm_to_vmem [thread:$0]  (!%p8344_p7), %s8342_s28, 4096, %s8348_s4, %s8350_s5, %s8255_s25, %s8256_s26, %s8257_s27  }
  0x2f   : > { %s6271_s6 = sadd.s32 4294967294, %s8248_s17   ;;  %p54_p3 = scmp.ne.s32.totalorder %s8232_s13, %s8228_s12 }
  0x30   : > { %p55_p11 = scmp.eq.s32.totalorder %s8379_s30, 0  ;;  %p132_p2 = scmp.eq.s32.totalorder %s8379_s30, 1 }
  0x31   : > { %p138_p4 = scmp.eq.s32.totalorder %s6271_s6, 1  ;;  %p6272_p5 = scmp.ge.s32.totalorder %s8248_s17, 1 }
  0x32   : > { %p8390_p6 = por %p132_p2, %p48_p1  ;;  %p145_p10 = scmp.lt.s32.totalorder %s8248_s17, 3 }
  0x33   : > { %p8394_p8 = por %p138_p4, %p54_p3  ;;  %s7804_s28 = smul.u32 21504, %s8240_s15 }
  0x34   : > { %s10109_s7 = scalar_select %p8390_p6, 1, 0 }
  0x35   : > { %s10110_s8 = scalar_select %p8394_p8, 1, 0 }
  0x36   : > { %p8400_p12 = por %p55_p11, %p54_p3  ;;  %p8404_p13 = pnand %p6272_p5, %p145_p10 }
  0x37   : > { %s8411_s19 = scalar_lea.hbm %s10091_s1, %s7804_s28  ;;  %s8258_s20 = smov [#allocation6]  }
  0x38   : > { %s10111_s4 = scalar_select %p8400_p12, 1, 0 }
  0x39   : > { %s10112_s9 = scalar_select %p8404_p13, 1, 0 }
  0x3a   : > { %s160_s21 = sshll.u32 %s8258_s20, 4  ;;  %p7813_p1 = pneg %p8404_p13  ;;  %s8416_s21 = int_to_ptr.vmem [resolvable:$true] %s160_s21 }
  0x3b   : > { %s6277_s23 = sshll.u32 %s8244_s16, 4  ;;  %s200_s28 = scalar_lea.vmem [#allocation8], %s176_s22 }
  0x3c   : > { %p8420_p0 = pnand %p7813_p1, %p8400_p12  ;;  %s8427_s6 = scalar_lea.hbm %s10092_s2, %s6277_s23 }
  0x3d   : > { %s207_s10 = sshll.u32 %s200_s28, 4  ;;  %s8094_s11 = scalar_lea.hbm %s8411_s19, 21504  ;;  %s8431_s10 = int_to_ptr.vmem [resolvable:$true] %s207_s10 }
  0x3e   : > { %p8095_p3 = scmp.ne.s32.totalorder %s8411_s19, %s8094_s11  ;;  %p8096_p11 = pneg %p8420_p0 }
  0x3f   : > { %s8099_s26 = scalar_lea.hbm %s10091_s1, 43008  ;;  %p8100_p5 = scmp.lt.u32.totalorder %s8411_s19, %s10091_s1 }
  0x40   : > { %p8097_p2 = pnand %p8096_p11, %p8095_p3  ;;  %p8101_p10 = scmp.lt.u32.totalorder %s8099_s26, %s8094_s11 }
  0x41   : > { %p8103_p9 = scmp.lt.u32.totalorder %s8094_s11, %s8411_s19 }
  0x42   : > { %p8098_p4 = pneg %p8097_p2  ;;  %p8102_p1 = por %p8101_p10, %p8100_p5 }
  0x44   : > { %p8104_p8 = por %p8103_p9, %p8102_p1 }
  0x46   : > { %p8105_p6 = pnand %p8104_p8, %p8098_p4 }
  0x48   : > { %8108 = shalt.err (!%p8105_p6)
}
  0x49   : > { %s8109_s22 = scalar_lea.vmem %s8416_s21, 21504  ;;  %p8117_p13 = scmp.lt.s32.totalorder %s8416_s21, %s8416_s21 }
  0x4a   : > { %p8110_p3 = scmp.ne.s32.totalorder %s8416_s21, %s8109_s22  ;;  %p8118_p7 = scmp.lt.s32.totalorder %s8109_s22, %s8109_s22 }
  0x4c   : > { %p8112_p2 = pnand %p8110_p3, %p8096_p11  ;;  %p8119_p5 = por %p8118_p7, %p8117_p13 }
  0x4e   : > { %p8113_p12 = pneg %p8112_p2 }
  0x50   : > { %p8120_p10 = pnand %p8119_p5, %p8113_p12 }
  0x52   : > { %8123 = shalt.err (!%p8120_p10)
}
  0x53   : > { %s8259_s0 = smov 64   ;;  %s8260_s28 = smov 4  }
  0x54   : > { %7816 = dma.hbm_to_vmem [thread:$0]  (!%p8420_p0), %s8411_s19, 21504, %s8416_s21, [#allocation7], %s8259_s0, %s8259_s0, %s8260_s28  }
  0x55   : > { %s8124_s11 = scalar_lea.hbm %s8427_s6, 16  ;;  %p10114_p6 = scmp.ne.s32.totalorder %s10108_s29, 0 }
  0x56   : > { %p8125_p9 = scmp.ne.s32.totalorder %s8427_s6, %s8124_s11  ;;  %s8129_s27 = scalar_lea.hbm %s10092_s2, 32 }
  0x57   : > { %p10115_p8 = pneg %p10114_p6  ;;  %p8130_p12 = scmp.lt.u32.totalorder %s8427_s6, %s10092_s2 }
  0x58   : > { %p8131_p13 = scmp.lt.u32.totalorder %s8129_s27, %s8124_s11  ;;  %p8133_p1 = scmp.lt.u32.totalorder %s8124_s11, %s8427_s6 }
  0x59   : > { %p8127_p11 = pnand %p8125_p9, %p10115_p8 }
  0x5a   : > { %p8132_p4 = por %p8131_p13, %p8130_p12 }
  0x5b   : > { %p8128_p7 = pneg %p8127_p11 }
  0x5c   : > { %p8134_p3 = por %p8133_p1, %p8132_p4 }
  0x5e   : > { %p8135_p2 = pnand %p8134_p3, %p8128_p7 }
  0x60   : > { %8138 = shalt.err (!%p8135_p2)
}
  0x61   : > { %s8139_s19 = scalar_lea.vmem %s8431_s10, 16  ;;  %p10116_p5 = pmov %p10115_p8 }
  0x62   : > { %p8140_p0 = scmp.ne.s32.totalorder %s8431_s10, %s8139_s19  ;;  %s8261_s21 = smov [#allocation8]  }
  0x63   : > { %s8144_s25 = sshll.u32 %s8261_s21, 4  ;;  %s8145_s25 = int_to_ptr.vmem [resolvable:$false] %s8144_s25 }
  0x64   : > { %p8142_p10 = pnand %p8140_p0, %p10116_p5  ;;  %s8146_s0 = scalar_lea.vmem %s8145_s25, 32 }
  0x65   : > { %p8147_p8 = scmp.lt.s32.totalorder %s8431_s10, %s8145_s25  ;;  %p8148_p11 = scmp.lt.s32.totalorder %s8146_s0, %s8139_s19 }
  0x66   : > { %p8143_p9 = pneg %p8142_p10 }
  0x67   : > { %p8149_p12 = por %p8148_p11, %p8147_p8 }
  0x69   : > { %p8150_p13 = pnand %p8149_p12, %p8143_p9 }
  0x6b   : > { %8153 = shalt.err (!%p8150_p13)
}
  0x6c   : > { %7823 = dma.hbm_to_vmem [thread:$0]  (!%p10114_p6), %s8427_s6, 16, %s8431_s10, %s8350_s5  }
  0x6d   : > { %p10117_p7 = scmp.ne.s32.totalorder %s10112_s9, 0 }
  0x6e   : > { %s218_s28 = sand.u32 (!%p10117_p7), 1, %s8379_s30   ;;  %s8487_s11 = sand.u32 (!%p10117_p7), 1, %s8232_s13  }
  0x6f   : > { %216 = sbr.rel (%p10117_p7) target bundleno = 745 (0x2e9), region = 32  ;;  %s6279_s20 = sshll.u32 (!%p10117_p7), %s8487_s11, 8 }
  0x70   : > { %s219_s26 = scalar_lea.sflag (!%p10117_p7), [#allocation4], %s218_s28  ;;  %s8492_s27 = scalar_lea.vmem (!%p10117_p7), [#allocation3], %s6279_s20 }
  0x71   : > { %p10118_p4 = scmp.ne.s32.totalorder (!%p10117_p7), %s10111_s4, 0 }
  0x76   : > { %8211 = dma.done.wait (%p10118_p4), %s219_s26, 4096  }
  0x77   : > { %8213 = vsyncadd (%p10118_p4), %s219_s26, 4294963200 }
  0x78   : > { %8215 = dma.done.wait (%p10118_p4), [#allocation7], 21504  }
  0x79   : > { %8217 = vsyncadd (%p10118_p4), [#allocation7], 4294945792  ;;  %s234_s29 = scalar_lea.vmem [#allocation8], %s8487_s11 }
  0x7a   : > { %8219 = dma.done.wait (%p10118_p4), %s219_s26, 16  }
  0x7b   : > { %8221 = vsyncadd (%p10118_p4), %s219_s26, 4294967280  ;;  %v8262_v0 = vmov 0   ;;  %v8509_v1 = vld [vmem:[%s234_s29] ss:$0 sm:$0xff]  ;;  %v301_v3 = vld [vmem:[%s8492_s27 + $0x8] sm:$0xff]  ;;  %s8545_s5 = scalar_lea.vmem [#allocation9], %s6279_s20 }
  0x7c   : > { %268 = vst [vmem:[#allocation2] sm:$0xff] %v8262_v0  ;;  %269 = vst [vmem:[#allocation2 + $0x18] sm:$0xff] %v8262_v0  ;;  %v300_v2 = vld [vmem:[%s8492_s27] sm:$0xff]  ;;  %v302_v5 = vld [vmem:[%s8492_s27 + $0x10] sm:$0xff]  ;;  %s8547_s30 = smov 0  }
  0x7d   : > { %270 = vst [vmem:[#allocation2 + $0x30] sm:$0xff] %v8262_v0  ;;  %271 = vst [vmem:[#allocation2 + $0x48] sm:$0xff] %v8262_v0  ;;  %v332_v4 = vpack.c.bf16 %v301_v3, %v300_v2  ;;  %v303_v6 = vld [vmem:[%s8492_s27 + $0x18] sm:$0xff]  ;;  %v304_v7 = vld [vmem:[%s8492_s27 + $0x20] sm:$0xff] }
  0x7e   : > { %272 = vst [vmem:[#allocation2 + $0x60] sm:$0xff] %v8262_v0  ;;  %273 = vst [vmem:[#allocation2 + $0x78] sm:$0xff] %v8262_v0  ;;  %v333_v8 = vpack.c.bf16 %v303_v6, %v302_v5  ;;  %v305_v9 = vld [vmem:[%s8492_s27 + $0x28] sm:$0xff]  ;;  %v306_v10 = vld [vmem:[%s8492_s27 + $0x30] sm:$0xff] }
  0x7f   : > { %274 = vst [vmem:[#allocation2 + $0x90] sm:$0xff] %v8262_v0  ;;  %275 = vst [vmem:[#allocation2 + $0xa8] sm:$0xff] %v8262_v0  ;;  %v307_v11 = vld [vmem:[%s8492_s27 + $0x38] sm:$0xff]  ;;  %v334_v12 = vpack.c.bf16 %v305_v9, %v304_v7  ;;  %v308_v14 = vld [vmem:[%s8492_s27 + $0x40] sm:$0xff] }
  0x80   : > { %276 = vst [vmem:[#allocation2 + $0xc0] sm:$0xff] %v8262_v0  ;;  %277 = vst [vmem:[#allocation2 + $0xd8] sm:$0xff] %v8262_v0  ;;  %v335_v13 = vpack.c.bf16 %v307_v11, %v306_v10  ;;  %v309_v15 = vld [vmem:[%s8492_s27 + $0x48] sm:$0xff]  ;;  %v310_v16 = vld [vmem:[%s8492_s27 + $0x50] sm:$0xff] }
  0x81   : > { %278 = vst [vmem:[#allocation2 + $0xf0] sm:$0xff] %v8262_v0  ;;  %279 = vst [vmem:[#allocation2 + $0x108] sm:$0xff] %v8262_v0  ;;  %v336_v17 = vpack.c.bf16 %v309_v15, %v308_v14  ;;  %v311_v18 = vld [vmem:[%s8492_s27 + $0x58] sm:$0xff]  ;;  %v312_v19 = vld [vmem:[%s8492_s27 + $0x60] sm:$0xff] }
  0x82   : > { %280 = vst [vmem:[#allocation2 + $0x120] sm:$0xff] %v8262_v0  ;;  %281 = vst [vmem:[#allocation2 + $0x138] sm:$0xff] %v8262_v0  ;;  %v313_v20 = vld [vmem:[%s8492_s27 + $0x68] sm:$0xff]  ;;  %v337_v21 = vpack.c.bf16 %v311_v18, %v310_v16  ;;  %v314_v23 = vld [vmem:[%s8492_s27 + $0x70] sm:$0xff] }
  0x83   : > { %282 = vst [vmem:[#allocation2 + $0x150] sm:$0xff] %v8262_v0  ;;  %283 = vst [vmem:[#allocation2 + $0x168] sm:$0xff] %v8262_v0  ;;  %v338_v22 = vpack.c.bf16 %v313_v20, %v312_v19  ;;  %v315_v24 = vld [vmem:[%s8492_s27 + $0x78] sm:$0xff]  ;;  %v316_v25 = vld [vmem:[%s8492_s27 + $0x80] sm:$0xff] }
  0x84   : > { %284 = vst [vmem:[#allocation2 + $0x10] sm:$0xff] %v8262_v0  ;;  %285 = vst [vmem:[#allocation2 + $0x28] sm:$0xff] %v8262_v0  ;;  %v339_v26 = vpack.c.bf16 %v315_v24, %v314_v23  ;;  %v317_v27 = vld [vmem:[%s8492_s27 + $0x88] sm:$0xff]  ;;  %v318_v28 = vld [vmem:[%s8492_s27 + $0x90] sm:$0xff] }
  0x85   : > { %286 = vst [vmem:[#allocation2 + $0x40] sm:$0xff] %v8262_v0  ;;  %287 = vst [vmem:[#allocation2 + $0x58] sm:$0xff] %v8262_v0  ;;  %v319_v29 = vld [vmem:[%s8492_s27 + $0x98] sm:$0xff]  ;;  %v340_v30 = vpack.c.bf16 %v317_v27, %v316_v25  ;;  %v320_v32 = vld [vmem:[%s8492_s27 + $0xa0] sm:$0xff] }
  0x86   : > { %288 = vst [vmem:[#allocation2 + $0x70] sm:$0xff] %v8262_v0  ;;  %289 = vst [vmem:[#allocation2 + $0x88] sm:$0xff] %v8262_v0  ;;  %v341_v31 = vpack.c.bf16 %v319_v29, %v318_v28  ;;  %v321_v33 = vld [vmem:[%s8492_s27 + $0xa8] sm:$0xff]  ;;  %v322_v34 = vld [vmem:[%s8492_s27 + $0xb0] sm:$0xff] }
  0x87   : > { %290 = vst [vmem:[#allocation2 + $0xa0] sm:$0xff] %v8262_v0  ;;  %291 = vst [vmem:[#allocation2 + $0xb8] sm:$0xff] %v8262_v0  ;;  %v342_v35 = vpack.c.bf16 %v321_v33, %v320_v32  ;;  %v323_v36 = vld [vmem:[%s8492_s27 + $0xb8] sm:$0xff]  ;;  %v324_v37 = vld [vmem:[%s8492_s27 + $0xc0] sm:$0xff] }
  0x88   : > { %292 = vst [vmem:[#allocation2 + $0xd0] sm:$0xff] %v8262_v0  ;;  %293 = vst [vmem:[#allocation2 + $0xe8] sm:$0xff] %v8262_v0  ;;  %v325_v38 = vld [vmem:[%s8492_s27 + $0xc8] sm:$0xff]  ;;  %v343_v39 = vpack.c.bf16 %v323_v36, %v322_v34  ;;  %v326_v41 = vld [vmem:[%s8492_s27 + $0xd0] sm:$0xff] }
  0x89   : > { %294 = vst [vmem:[#allocation2 + $0x100] sm:$0xff] %v8262_v0  ;;  %295 = vst [vmem:[#allocation2 + $0x118] sm:$0xff] %v8262_v0  ;;  %v344_v40 = vpack.c.bf16 %v325_v38, %v324_v37  ;;  %v327_v42 = vld [vmem:[%s8492_s27 + $0xd8] sm:$0xff]  ;;  %v328_v43 = vld [vmem:[%s8492_s27 + $0xe0] sm:$0xff] }
  0x8a   : > { %296 = vst [vmem:[#allocation2 + $0x130] sm:$0xff] %v8262_v0  ;;  %297 = vst [vmem:[#allocation2 + $0x148] sm:$0xff] %v8262_v0  ;;  %v345_v44 = vpack.c.bf16 %v327_v42, %v326_v41  ;;  %v329_v45 = vld [vmem:[%s8492_s27 + $0xe8] sm:$0xff]  ;;  %v330_v46 = vld [vmem:[%s8492_s27 + $0xf0] sm:$0xff] }
  0x8b   : > { %298 = vst [vmem:[#allocation2 + $0x160] sm:$0xff] %v8262_v0  ;;  %299 = vst [vmem:[#allocation2 + $0x178] sm:$0xff] %v8262_v0  ;;  %v331_v47 = vld [vmem:[%s8492_s27 + $0xf8] sm:$0xff]  ;;  %v346_v48 = vpack.c.bf16 %v329_v45, %v328_v43 }
  0x8c   : > { %348 = vst [vmem:[#allocation2 + $0x8] sm:$0xff] %v332_v4  ;;  %349 = vst [vmem:[#allocation2 + $0x20] sm:$0xff] %v333_v8  ;;  %v347_v49 = vpack.c.bf16 %v331_v47, %v330_v46 }
  0x8d   : > { %350 = vst [vmem:[#allocation2 + $0x38] sm:$0xff] %v334_v12  ;;  %351 = vst [vmem:[#allocation2 + $0x50] sm:$0xff] %v335_v13 }
  0x8e   : > { %352 = vst [vmem:[#allocation2 + $0x68] sm:$0xff] %v336_v17  ;;  %353 = vst [vmem:[#allocation2 + $0x80] sm:$0xff] %v337_v21 }
  0x8f   : > { %354 = vst [vmem:[#allocation2 + $0x98] sm:$0xff] %v338_v22  ;;  %355 = vst [vmem:[#allocation2 + $0xb0] sm:$0xff] %v339_v26 }
  0x90   : > { %356 = vst [vmem:[#allocation2 + $0xc8] sm:$0xff] %v340_v30  ;;  %357 = vst [vmem:[#allocation2 + $0xe0] sm:$0xff] %v341_v31 }
  0x91   : > { %358 = vst [vmem:[#allocation2 + $0xf8] sm:$0xff] %v342_v35  ;;  %359 = vst [vmem:[#allocation2 + $0x110] sm:$0xff] %v343_v39 }
  0x92   : > { %360 = vst [vmem:[#allocation2 + $0x128] sm:$0xff] %v344_v40  ;;  %361 = vst [vmem:[#allocation2 + $0x140] sm:$0xff] %v345_v44 }
  0x93   : > { %362 = vst [vmem:[#allocation2 + $0x158] sm:$0xff] %v346_v48  ;;  %363 = vst [vmem:[#allocation2 + $0x170] sm:$0xff] %v347_v49 }
  0x94 LB: >> { %v7896_v50 = vld [vmem:[#allocation6 + $0x40] sm:$0xff]   ;;  %v7898_v52 = vld [vmem:[#allocation6 + $0x48] sm:$0xff]   ;;  %v7900_v54 = vld [vmem:[#allocation6 + $0x50] sm:$0xff]   ;;  %s6458_s4 = smul.u32 192, %s8252_s30  ;;  %vm464_vm0 = vsmask.f32 4352  ;;  %s8252_s30 = sphi %s8547_s30, %s370_s30  }
  0x95   : >> { %v7897_v51 = vld [vmem:[#allocation6 + $0x280] sm:$0xff]   ;;  %6796 = vmatprep.subr.bf16.mxu1 %v7896_v50  ;;  %v7899_v53 = vld [vmem:[#allocation6 + $0x288] sm:$0xff]   ;;  %v7901_v55 = vld [vmem:[#allocation6 + $0x290] sm:$0xff]   ;;  %vm407_vm1 = vcmask 1044480   ;;  %vm3324_vm2 = vsmask.f32 7424 }
  0x96   : >> { %7116 = vmatprep.subr.bf16.mxu0 %v7897_v51  ;;  %6797 = vmatpush3.bf16.msra.mxu1 %v7896_v50  ;;  %v7902_v56 = vld [vmem:[#allocation6 + $0x58] sm:$0xff]   ;;  %v7904_v58 = vld [vmem:[#allocation6 + $0x60] sm:$0xff]   ;;  %v7906_v60 = vld [vmem:[#allocation6 + $0x68] sm:$0xff]   ;;  %s8553_s9 = scalar_lea.vmem [#allocation2], %s6458_s4  ;;  %vm939_vm3 = vcmask 1043456   ;;  %vm3630_vm4 = vcmask 1046528  }
  0x97   : >> { %7117 = vmatpush3.bf16.msra.mxu0 %v7897_v51  ;;  %6798 = vmatprep.subr.bf16.mxu1 %v7898_v52  ;;  %v7903_v57 = vld [vmem:[#allocation6 + $0x298] sm:$0xff]   ;;  %v7905_v59 = vld [vmem:[#allocation6 + $0x2a0] sm:$0xff]   ;;  %v7907_v63 = vld [vmem:[#allocation6 + $0x2a8] sm:$0xff]   ;;  %vm1157_vm5 = vsmask.f32 3328  ;;  %vm1503_vm7 = vcmask 1042432  }
  0x98   : >> { %7118 = vmatprep.subr.bf16.mxu0 %v7899_v53  ;;  %v7908_v6 = vld [vmem:[#allocation6 + $0x70] sm:$0xff]   ;;  %v7910_v28 = vld [vmem:[#allocation6 + $0x78] sm:$0xff]   ;;  %v7912_v40 = vld [vmem:[#allocation6] sm:$0xff]   ;;  %vm3848_vm6 = vsmask.f32 6400  ;;  %vm4194_vm8 = vcmask 1045504  }
  0x99   : >> { %v7909_v19 = vld [vmem:[#allocation6 + $0x2b0] sm:$0xff]   ;;  %v7911_v32 = vld [vmem:[#allocation6 + $0x2b8] sm:$0xff]   ;;  %vm1721_vm9 = vsmask.f32 2304  ;;  %vm4412_vm10 = vsmask.f32 5376 }
  0x9a   : >> { %6799 = vmatpush3.bf16.msra.mxu1 %v7898_v52  ;;  %v8556_v61 = vld [vmem:[%s8553_s9] sm:$0xf8]  ;;  %v8559_v62 = vld [vmem:[%s8553_s9 + $0x8] sm:$0xf]  ;;  %v8572_v9 = vld [vmem:[%s8553_s9 + $0x18] sm:$0xf8] }
  0x9b   : >> { %7119 = vmatpush3.bf16.msra.mxu0 %v7899_v53  ;;  %6800 = vmatprep.subr.bf16.mxu1 %v7900_v54  ;;  %v466_v0 = vshrl.u32 %v8556_v61, 16  ;;  %v469_v2 = vshll.u32 %v8556_v61, 16  ;;  %v474_v3 = vshrl.u32 %v8559_v62, 16  ;;  %v477_v4 = vshll.u32 %v8559_v62, 16  ;;  %v8566_v5 = vld [vmem:[%s8553_s9 + $0x8] sm:$0xff]  ;;  %v8588_v27 = vld [vmem:[%s8553_s9 + $0x20] sm:$0xff] }
  0x9c   : >> { %7120 = vmatprep.subr.bf16.mxu0 %v7901_v55  ;;  %v2855_v7 = vshrl.u32 %v8566_v5, 16  ;;  %v2858_v8 = vshll.u32 %v8566_v5, 16  ;;  %7132 = vmatprep.mubr.bf16.mxu0 %v8566_v5  ;;  %v8575_v10 = vld [vmem:[%s8553_s9 + $0x20] sm:$0xf]  ;;  %v483_v16 = vshrl.u32 %v8572_v9, 16  ;;  %v486_v17 = vshll.u32 %v8572_v9, 16 }
  0x9d   : >> { %v468_v11 = vrot.slane %v466_v0, 3  ;;  %v471_v12 = vrot.slane %v469_v2, 4  ;;  %v476_v13 = vrot.slane %v474_v3, 3  ;;  %v479_v14 = vrot.slane %v477_v4, 4  ;;  %v8596_v37 = vld [vmem:[%s8553_s9 + $0x30] sm:$0xf8] }
  0x9e   : >> { %6801 = vmatpush3.bf16.msra.mxu1 %v7900_v54  ;;  %v2857_v15 = vrot.slane %v2855_v7, 7  ;;  %v491_v18 = vshrl.u32 %v8575_v10, 16  ;;  %v494_v22 = vshll.u32 %v8575_v10, 16  ;;  %v485_v24 = vrot.slane %v483_v16, 3  ;;  %v8599_v38 = vld [vmem:[%s8553_s9 + $0x38] sm:$0xf] }
  0x9f   : >> { %7121 = vmatpush3.bf16.msra.mxu0 %v7901_v55  ;;  %6802 = vmatprep.subr.bf16.mxu1 %v7902_v56  ;;  %v472_v20 = vor.u32 %v471_v12, %v468_v11  ;;  %v480_v21 = vor.u32 %v479_v14, %v476_v13  ;;  %v488_v25 = vrot.slane %v486_v17, 4  ;;  %v2867_v31 = vshrl.u32 %v8588_v27, 16  ;;  %v8602_v39 = vld [vmem:[%s8553_s9 + $0x38] sm:$0xff]  ;;  %v8609_v45 = vld [vmem:[%s8553_s9 + $0x48] sm:$0xf8]  ;;  %v7913_v55 = vld [vmem:[#allocation6 + $0x2c0] sm:$0xff]  }
  0xa0   : >> { %7122 = vmatprep.subr.bf16.mxu0 %v7903_v57  ;;  %v8585_v23 = vor.u32 %v2858_v8, %v2857_v15  ;;  %v493_v26 = vrot.slane %v491_v18, 3  ;;  %v496_v30 = vrot.slane %v494_v22, 4  ;;  %v2870_v34 = vshll.u32 %v8588_v27, 16  ;;  %v8619_v50 = vld [vmem:[%s8553_s9 + $0x50] sm:$0xf]  ;;  %v7914_v13 = vld [vmem:[#allocation6 + $0x8] sm:$0xff]  }
  0xa1   : >> { %v481_v29 = vsel %vm464_vm0, %v472_v20, %v480_v21  ;;  %v489_v33 = vor.u32 %v488_v25, %v485_v24  ;;  %v2869_v36 = vrot.slane %v2867_v31, 7  ;;  %v500_v41 = vshrl.u32 %v8596_v37, 16  ;;  %v7915_v17 = vld [vmem:[#allocation6 + $0x2c8] sm:$0xff]   ;;  %v7916_v21 = vld [vmem:[#allocation6 + $0x10] sm:$0xff]   ;;  %v8644_v24 = vld [vmem:[%s8553_s9 + $0x60] sm:$0xf8] }
  0xa2   : >> { %6803 = vmatpush3.bf16.msra.mxu1 %v7902_v56  ;;  %6812 = vmatprep.mubr.bf16.mxu1 %v481_v29  ;;  %v497_v35 = vor.u32 %v496_v30, %v493_v26  ;;  %v503_v42 = vshll.u32 %v8596_v37, 16  ;;  %v508_v43 = vshrl.u32 %v8599_v38, 16  ;;  %v511_v44 = vshll.u32 %v8599_v38, 16  ;;  %v8647_v25 = vld [vmem:[%s8553_s9 + $0x68] sm:$0xf]  ;;  %s6459_s6 = sshll.u32 %s8252_s30, 7 }
  0xa3   : >> { %7123 = vmatpush3.bf16.msra.mxu0 %v7903_v57  ;;  %6804 = vmatprep.subr.bf16.mxu1 %v7904_v58  ;;  %v8614_v47 = vor.u32 %v2870_v34, %v2869_v36  ;;  %v2879_v48 = vshrl.u32 %v8602_v39, 16  ;;  %v2882_v49 = vshll.u32 %v8602_v39, 16  ;;  %v502_v51 = vrot.slane %v500_v41, 3  ;;  %v8650_v26 = vld [vmem:[%s8553_s9 + $0x68] sm:$0xff]  ;;  %s9993_s10 = scalar_lea.vmem %s8545_s5, %s6459_s6 [#allocation9]  ;;  %s370_s30 = sadd.s32 1, %s8252_s30  }
  0xa4   : >> { %7124 = vmatprep.subr.bf16.mxu0 %v7905_v59  ;;  %v498_v46 = vsel %vm464_vm0, %v489_v33, %v497_v35  ;;  %v505_v52 = vrot.slane %v503_v42, 4  ;;  %v510_v53 = vrot.slane %v508_v43, 3  ;;  %v513_v54 = vrot.slane %v511_v44, 4  ;;  %v8658_v33 = vld [vmem:[%s8553_s9 + $0x78] sm:$0xf8]  ;;  %v7917_v35 = vld [vmem:[#allocation6 + $0x2d0] sm:$0xff]  }
  0xa5   : >> { %v2881_v56 = vrot.slane %v2879_v48, 7  ;;  %v517_v57 = vshrl.u32 %v8609_v45, 16  ;;  %v528_v2 = vshll.u32 %v8619_v50, 16  ;;  %v537_v29 = vshll.u32 %v8644_v24, 16  ;;  %v8663_v42 = vld [vmem:[%s8553_s9 + $0x80] sm:$0xf] }
  0xa6   : >> { %6805 = vmatpush3.bf16.msra.mxu1 %v7904_v58  ;;  %v520_v58 = vshll.u32 %v8609_v45, 16  ;;  %v514_v0 = vor.u32 %v513_v54, %v510_v53  ;;  %v542_v30 = vshrl.u32 %v8647_v25, 16  ;;  %v2903_v36 = vshrl.u32 %v8650_v26, 16  ;;  %p367_p6 = scmp.ge.s32.totalorder %s370_s30, 2  }
  0xa7   : >> { %7125 = vmatpush3.bf16.msra.mxu0 %v7905_v59  ;;  %6806 = vmatprep.subr.bf16.mxu1 %v7906_v60  ;;  %v525_v59 = vshrl.u32 %v8619_v50, 16  ;;  %v8633_v4 = vor.u32 %v2882_v49, %v2881_v56  ;;  %v530_v14 = vrot.slane %v528_v2, 4  ;;  %v2906_v41 = vshll.u32 %v8650_v26, 16  ;;  %s6455_s23 = sshll.u32 (%p367_p6), %s8240_s15, 7  ;;  %s6147_s25 = sshll.u32 (%p367_p6), %s8545_s5, 4  ;;  %s10041_s25 = int_to_ptr.vmem [resolvable:$true] %s6147_s25 }
  0xa8   : >> { %7126 = vmatprep.subr.bf16.mxu0 %v7907_v63  ;;  %v522_v11 = vrot.slane %v520_v58, 4  ;;  %v539_v44 = vrot.slane %v537_v29, 4  ;;  %v554_v54 = vshll.u32 %v8658_v33, 16  ;;  %v8690_v29 = vld [vmem:[%s8553_s9 + $0x90] sm:$0xf8]  ;;  %vm2067_vm11 = vcmask 1041408   ;;  %s10038_s21 = scalar_lea.hbm (%p367_p6), %s10093_s3, %s6455_s23 }
  0xa9   : >> { %v527_v12 = vrot.slane %v525_v59, 3  ;;  %v562_v59 = vshll.u32 %v8663_v42, 16  ;;  %vm2285_vm12 = vsmask.f32 1280  ;;  %vm2631_vm13 = vcmask 1040384   ;;  %s6132_s0 = scalar_lea.sflag (%p367_p6), [#allocation5], %s8487_s11 }
  0xaa   : >> { %6807 = vmatpush3.bf16.msra.mxu1 %v7906_v60  ;;  %v8627_v60 = vld [vmem:[%s8553_s9 + $0x50] sm:$0xff]  ;;  %vm2849_vm14 = vsmask.f32 256  ;;  %s8154_s28 = scalar_lea.vmem (%p367_p6), %s10041_s25, 4096  ;;  %p10124_p3 = scmp.ne.s32.totalorder (%p367_p6), %s10109_s7, 0 }
  0xab   : >> { %7127 = vmatpush3.bf16.msra.mxu0 %v7907_v63  ;;  %6808 = vmatprep.subr.bf16.mxu1 %v7908_v6  ;;  %v506_v63 = vor.u32 %v505_v52, %v502_v51  ;;  %v2891_v3 = vshrl.u32 %v8627_v60, 16  ;;  %v2894_v16 = vshll.u32 %v8627_v60, 16  ;;  %v531_v20 = vor.u32 %v530_v14, %v527_v12  ;;  %p8155_p1 = scmp.ne.s32.totalorder (%p367_p6), %s10041_s25, %s8154_s28  ;;  %s8263_s20 = smov (%p367_p6), [#allocation9]  }
  0xac   : >> { %7128 = vmatprep.subr.bf16.mxu0 %v7909_v19  ;;  %v2905_v52 = vrot.slane %v2903_v36, 7  ;;  %v564_v14 = vrot.slane %v562_v59, 4  ;;  %s8158_s26 = sshll.u32 (%p367_p6), %s8263_s20, 4  ;;  %s8159_s26 = int_to_ptr.vmem [resolvable:$false] %s8158_s26 }
  0xad   : >> { %v2893_v15 = vrot.slane %v2891_v3, 7  ;;  %v515_v18 = vsel %vm464_vm0, %v506_v63, %v514_v0  ;;  %v8674_v63 = vld [vmem:[%s8553_s9 + $0x80] sm:$0xff]  ;;  %v7918_v0 = vld [vmem:[#allocation6 + $0x18] sm:$0xff]   ;;  %p8156_p2 = pnand (%p367_p6), %p8155_p1, %p10124_p3  ;;  %s8160_s15 = scalar_lea.vmem (%p367_p6), %s8159_s26, 8192 }
  0xae   : >> { %6809 = vmatpush3.bf16.msra.mxu1 %v7908_v6  ;;  %v519_v6 = vrot.slane %v517_v57, 3  ;;  %v8678_v2 = vor.u32 %v2906_v41, %v2905_v52  ;;  %v10102_v12 = vshrl.u32 %v8674_v63, 16  ;;  %v8705_v52 = vld [vmem:[%s8553_s9 + $0xa8] sm:$0xf8]  ;;  %p8161_p5 = scmp.lt.s32.totalorder (%p367_p6), %s10041_s25, %s8159_s26  ;;  %p8162_p10 = scmp.lt.s32.totalorder (%p367_p6), %s8160_s15, %s8154_s28 }
  0xaf   : >> { %7129 = vmatpush3.bf16.msra.mxu0 %v7909_v19  ;;  %6810 = vmatprep.subr.bf16.mxu1 %v7910_v28  ;;  %v8641_v22 = vor.u32 %v2894_v16, %v2893_v15  ;;  %v10103_v15 = vshll.u32 %v8674_v63, 16  ;;  %p8157_p0 = pneg (%p367_p6), %p8156_p2 }
  0xb0   : >> { %7130 = vmatprep.subr.bf16.mxu0 %v7911_v32  ;;  %v523_v19 = vor.u32 %v522_v11, %v519_v6  ;;  %v556_v6 = vrot.slane %v554_v54, 4  ;;  %v7921_v54 = vld [vmem:[#allocation6 + $0x2e0] sm:$0xff]   ;;  %p8163_p9 = por (%p367_p6), %p8162_p10, %p8161_p5 }
  0xb2   : >> { %6811 = vmatpush3.bf16.msra.mxu1 %v7910_v28  ;;  %v534_v28 = vshrl.u32 %v8644_v24, 16  ;;  %v532_v56 = vsel %vm464_vm0, %v523_v19, %v531_v20  ;;  %v2917_v19 = vrot.slane %v10102_v12, 7  ;;  %v8686_v20 = vld [vmem:[%s8553_s9 + $0x98] sm:$0xff]  ;;  %v7923_v12 = vld [vmem:[#allocation6 + $0x2e8] sm:$0xff]   ;;  %p8164_p8 = pnand (%p367_p6), %p8163_p9, %p8157_p0 }
  0xb3   : >> { %7131 = vmatpush3.bf16.msra.mxu0 %v7911_v32  ;;  %6828 = vmatprep.subr.bf16.mxu1 %v7912_v40  ;;  %v545_v32 = vshll.u32 %v8647_v25, 16 }
  0xb4   : >> { %7148 = vmatprep.subr.bf16.mxu0 %v7913_v55  ;;  %v536_v43 = vrot.slane %v534_v28, 3 }
  0xb5   : >> { %6813 = vmatmul.mubr.bf16.vlgmr.msra.gmra.mrb[0].mxu1 %v498_v46  ;;  %v544_v46 = vrot.slane %v542_v30, 3  ;;  %v547_v51 = vrot.slane %v545_v32, 4  ;;  %v8693_v30 = vld [vmem:[%s8553_s9 + $0x98] sm:$0xf]  ;;  %v10101_v32 = vshrl.u32 %v8686_v20, 16 }
  0xb6   : >> { %7133 = vmatmul.mubr.bf16.vlgmr.msra.gmra.mrb[0].mxu0 %v8588_v27  ;;  %6829 = vmatpush3.bf16.msra.mxu1 %v7912_v40  ;;  %v551_v40 = vshrl.u32 %v8658_v33, 16  ;;  %v540_v57 = vor.u32 %v539_v44, %v536_v43  ;;  %v7920_v43 = vld [vmem:[#allocation6 + $0x20] sm:$0xff]   ;;  %v8699_v44 = vor.u32 %v10103_v15, %v2917_v19 }
  0xb7   : >> { %7149 = vmatpush3.bf16.msra.mxu0 %v7913_v55  ;;  %6830 = vmatprep.subr.bf16.mxu1 %v7914_v13  ;;  %v559_v55 = vshrl.u32 %v8663_v42, 16  ;;  %v548_v58 = vor.u32 %v547_v51, %v544_v46  ;;  %v568_v46 = vshrl.u32 %v8690_v29, 16  ;;  %v576_v51 = vshrl.u32 %v8693_v30, 16 }
  0xb8   : >> { %7150 = vmatprep.subr.bf16.mxu0 %v7915_v17  ;;  %6816 = vmatprep.mubr.bf16.mxu1 %v515_v18  ;;  %v553_v53 = vrot.slane %v551_v40, 3  ;;  %v2930_v40 = vshll.u32 %v8686_v20, 16 }
  0xb9   : >> { %7136 = vmatprep.mubr.bf16.mxu0 %v8602_v39  ;;  %v561_v11 = vrot.slane %v559_v55, 3  ;;  %v2929_v55 = vrot.slane %v10101_v32, 7  ;;  %v570_v59 = vrot.slane %v568_v46, 3  ;;  %v8723_v32 = vld [vmem:[%s8553_s9 + $0xb0] sm:$0xff] }
  0xba   : >> { %6831 = vmatpush3.bf16.msra.mxu1 %v7914_v13  ;;  %v7919_v13 = vld [vmem:[#allocation6 + $0x2d8] sm:$0xff]   ;;  %v557_v18 = vor.u32 %v556_v6, %v553_v53 }
  0xbb   : >> { %7151 = vmatpush3.bf16.msra.mxu0 %v7915_v17  ;;  %6832 = vmatprep.subr.bf16.mxu1 %v7916_v21  ;;  %v549_v17 = vsel %vm464_vm0, %v540_v57, %v548_v58  ;;  %v565_v28 = vor.u32 %v564_v14, %v561_v11  ;;  %v585_v57 = vshrl.u32 %v8705_v52, 16  ;;  %v7922_v58 = vld [vmem:[#allocation6 + $0x28] sm:$0xff]   ;;  %v578_v11 = vrot.slane %v576_v51, 3 }
  0xbc   : >> { %7152 = vmatprep.subr.bf16.mxu0 %v7917_v35  ;;  %v588_v14 = vshll.u32 %v8705_v52, 16 }
  0xbd   : >> { %6817 = vmatmul.mubr.bf16.gmra.mrb[4].mxu1 %v532_v56  ;;  %v566_v53 = vsel %vm464_vm0, %v557_v18, %v565_v28  ;;  %v8712_v56 = vld [vmem:[%s8553_s9 + $0xb0] sm:$0xf]  ;;  %v8719_v18 = vor.u32 %v2930_v40, %v2929_v55  ;;  %v587_v19 = vrot.slane %v585_v57, 3  ;;  %v10105_v55 = vshll.u32 %v8723_v32, 16 }
  0xbe   : >> { %7137 = vmatmul.mubr.bf16.gmra.mrb[4].mxu0 %v8627_v60  ;;  %6833 = vmatpush3.bf16.msra.mxu1 %v7916_v21  ;;  %v571_v21 = vshll.u32 %v8690_v29, 16  ;;  %v593_v28 = vshrl.u32 %v8712_v56, 16  ;;  %v596_v51 = vshll.u32 %v8712_v56, 16 }
  0xbf   : >> { %7153 = vmatpush3.bf16.msra.mxu0 %v7917_v35  ;;  %6834 = vmatprep.subr.bf16.mxu1 %v7918_v0  ;;  %v579_v35 = vshll.u32 %v8693_v30, 16 }
  0xc0   : >> { %7154 = vmatprep.subr.bf16.mxu0 %v7919_v13  ;;  %6820 = vmatprep.mubr.bf16.mxu1 %v549_v17  ;;  %v573_v6 = vrot.slane %v571_v21, 4  ;;  %v590_v21 = vrot.slane %v588_v14, 4  ;;  %v595_v15 = vrot.slane %v593_v28, 3  ;;  %v598_v57 = vrot.slane %v596_v51, 4  ;;  %v376_v14 = vld [vmem:[%s8553_s9 + $0x8] sm:$0x7] }
  0xc1   : >> { %7140 = vmatprep.mubr.bf16.mxu0 %v8650_v26  ;;  %v581_v17 = vrot.slane %v579_v35, 4  ;;  %v7925_v51 = vld [vmem:[#allocation6 + $0x2f0] sm:$0xff]   ;;  %v3402_v26 = vrot.slane %v2930_v40, 1 }
  0xc2   : >> { %6835 = vmatpush3.bf16.msra.mxu1 %v7918_v0  ;;  %v574_v46 = vor.u32 %v573_v6, %v570_v59  ;;  %v10104_v0 = vshrl.u32 %v8723_v32, 16  ;;  %v591_v6 = vor.u32 %v590_v21, %v587_v19  ;;  %v3342_v19 = vrot.slane %v2870_v34, 1  ;;  %v378_v21 = vld [vmem:[%s8553_s9 + $0x20] sm:$0x7] }
  0xc3   : >> { %7155 = vmatpush3.bf16.msra.mxu0 %v7919_v13  ;;  %6836 = vmatprep.subr.bf16.mxu1 %v7920_v43  ;;  %v582_v35 = vor.u32 %v581_v17, %v578_v11  ;;  %v3330_v11 = vrot.slane %v2858_v8, 1  ;;  %v7924_v17 = vld [vmem:[#allocation6 + $0x30] sm:$0xff]   ;;  %v409_v8 = vrot.slane %v376_v14, 3 }
  0xc4   : >> { %7156 = vmatprep.subr.bf16.mxu0 %v7921_v54  ;;  %v2941_v13 = vrot.slane %v10104_v0, 7  ;;  %v411_v0 = vrot.slane %v8572_v9, 3  ;;  %v3343_v9 = vor.u32 %v3342_v19, %v2867_v31  ;;  %v7930_v19 = vld [vmem:[#allocation6 + $0x88] sm:$0xff]  }
  0xc5   : >> { %6821 = vmatmul.mubr.bf16.gmra.mrb[8].mxu1 %v566_v53  ;;  %v583_v59 = vsel %vm464_vm0, %v574_v46, %v582_v35  ;;  %v599_v53 = vor.u32 %v598_v57, %v595_v15  ;;  %v8741_v46 = vld [vmem:[%s8553_s9 + $0x10] sm:$0x1]  ;;  %v7926_v15 = vld [vmem:[#allocation6 + $0x38] sm:$0xff]   ;;  %v8749_v35 = vld [vmem:[%s8553_s9 + $0x28] sm:$0x1]  ;;  %v3331_v57 = vor.u32 %v3330_v11, %v2855_v7  ;;  %v3354_v11 = vrot.slane %v2882_v49, 1 }
  0xc6   : >> { %7141 = vmatmul.mubr.bf16.gmra.mrb[8].mxu0 %v8674_v63  ;;  %6837 = vmatpush3.bf16.msra.mxu1 %v7920_v43  ;;  %v8737_v28 = vor.u32 %v10105_v55, %v2941_v13  ;;  %v408_v43 = vrot.slane %v8556_v61, 3  ;;  %v3345_v13 = vshll.u32 %v8749_v35, 16  ;;  %v7928_v55 = vld [vmem:[#allocation6 + $0x80] sm:$0xff]  }
  0xc7   : >> { %7157 = vmatpush3.bf16.msra.mxu0 %v7921_v54  ;;  %6838 = vmatprep.subr.bf16.mxu1 %v7922_v58  ;;  %v3333_v54 = vshll.u32 %v8741_v46, 16  ;;  %v600_v61 = vsel %vm464_vm0, %v591_v6, %v599_v53  ;;  %v8758_v6 = vld [vmem:[%s8553_s9 + $0x40] sm:$0x1]  ;;  %v3355_v27 = vor.u32 %v3354_v11, %v2879_v48  ;;  %v7934_v11 = vld [vmem:[#allocation6 + $0x98] sm:$0xff]  }
  0xc8   : >> { %7158 = vmatprep.subr.bf16.mxu0 %v7923_v12  ;;  %6824 = vmatprep.mubr.bf16.mxu1 %v583_v59  ;;  %v7927_v59 = vld [vmem:[#allocation6 + $0x2f8] sm:$0xff]   ;;  %v410_v14 = vsel %vm407_vm1, %v408_v43, %v409_v8  ;;  %v7929_v7 = vld [vmem:[#allocation6 + $0x300] sm:$0xff]   ;;  %v3357_v53 = vshll.u32 %v8758_v6, 16  ;;  %v3347_v43 = vrot.slane %v3345_v13, 1  ;;  %v414_v8 = vrot.slane %v8596_v37, 3 }
  0xc9   : >> { %7144 = vmatprep.mubr.bf16.mxu0 %v8686_v20  ;;  %v3335_v34 = vrot.slane %v3333_v54, 1  ;;  %v8770_v54 = vld [vmem:[%s8553_s9 + $0x58] sm:$0x1] }
  0xca   : >> { %6839 = vmatpush3.bf16.msra.mxu1 %v7922_v58  ;;  %v412_v58 = vrot.slane %v378_v21, 3  ;;  %v3369_v49 = vshll.u32 %v8770_v54, 16  ;;  %v3359_v31 = vrot.slane %v3357_v53, 1  ;;  %v3348_v37 = vsel %vm3324_vm2, %v3343_v9, %v3347_v43  ;;  %v386_v9 = vld [vmem:[%s8553_s9 + $0x80] sm:$0x7] }
  0xcb   : >> { %7159 = vmatpush3.bf16.msra.mxu0 %v7923_v12  ;;  %6840 = vmatprep.subr.bf16.mxu1 %v7924_v17  ;;  %v3336_v5 = vsel %vm3324_vm2, %v3331_v57, %v3335_v34  ;;  %v380_v12 = vld [vmem:[%s8553_s9 + $0x38] sm:$0x7]  ;;  %v8781_v57 = vld [vmem:[%s8553_s9 + $0x70] sm:$0x1]  ;;  %v7931_v34 = vld [vmem:[#allocation6 + $0x308] sm:$0xff]   ;;  %v420_v53 = vrot.slane %v8644_v24, 3 }
  0xcc   : >> { %7160 = vmatprep.subr.bf16.mxu0 %v7925_v51  ;;  %v415_v21 = vrot.slane %v380_v12, 3  ;;  %v3371_v13 = vrot.slane %v3369_v49, 1  ;;  %v8793_v12 = vld [vmem:[%s8553_s9 + $0x88] sm:$0x1]  ;;  %v10119_v43 = vshll.u32 %v8674_v63, 16 }
  0xcd   : >> { %6825 = vmatmul.mubr.bf16.gmra.mrb[12].mxu1 %v600_v61  ;;  %v3366_v61 = vrot.slane %v2894_v16, 1  ;;  %v384_v16 = vld [vmem:[%s8553_s9 + $0x68] sm:$0x7]  ;;  %v388_v49 = vld [vmem:[%s8553_s9 + $0x98] sm:$0x7] }
  0xce   : >> { %7145 = vmatmul.mubr.bf16.gmra.mrb[12].mxu0 %v8723_v32  ;;  %6841 = vmatpush3.bf16.msra.mxu1 %v7924_v17  ;;  %v382_v17 = vld [vmem:[%s8553_s9 + $0x50] sm:$0x7]  ;;  %v416_v39 = vsel %vm407_vm1, %v414_v8, %v415_v21  ;;  %v3390_v8 = vrot.slane %v10119_v43, 1  ;;  %v8804_v21 = vld [vmem:[%s8553_s9 + $0xa0] sm:$0x1]  ;;  %v10123_v43 = vshrl.u32 %v8723_v32, 16 }
  0xcf   : >> { %7161 = vmatpush3.bf16.msra.mxu0 %v7925_v51  ;;  %6842 = vmatprep.subr.bf16.mxu1 %v7926_v15  ;;  %v413_v51 = vsel %vm407_vm1, %v411_v0, %v412_v58  ;;  %v418_v48 = vrot.slane %v382_v17, 3  ;;  %v7932_v0 = vld [vmem:[#allocation6 + $0x90] sm:$0xff]   ;;  %v3378_v58 = vrot.slane %v2906_v41, 1  ;;  %v421_v41 = vrot.slane %v384_v16, 3 }
  0xd0   : >> { %7162 = vmatprep.subr.bf16.mxu0 %v7927_v59  ;;  %6844 = vmatprep.mubr.bf16.mxu1 %v410_v14  ;;  %v7933_v14 = vld [vmem:[#allocation6 + $0x310] sm:$0xff]   ;;  %v3393_v17 = vshll.u32 %v8793_v12, 16  ;;  %v429_v16 = vrot.slane %v8705_v52, 3  ;;  %v8835_v52 = vld [vmem:[%s8553_s9 + $0x8] sm:$0xfe] }
  0xd1   : >> { %7164 = vmatprep.mubr.bf16.mxu0 %v3336_v5  ;;  %v3381_v5 = vshll.u32 %v8781_v57, 16  ;;  %v3379_v60 = vor.u32 %v3378_v58, %v2903_v36  ;;  %v8812_v36 = vld [vmem:[%s8553_s9 + $0xb0] sm:$0x7] }
  0xd2   : >> { %6843 = vmatpush3.bf16.msra.mxu1 %v7926_v15  ;;  %v417_v15 = vrot.slane %v8609_v45, 3  ;;  %v3367_v45 = vor.u32 %v3366_v61, %v2891_v3 }
  0xd3   : >> { %7163 = vmatpush3.bf16.msra.mxu0 %v7927_v59  ;;  %6860 = vmatprep.subr.bf16.mxu1 %v7928_v55  ;;  %v3360_v59 = vsel %vm3324_vm2, %v3355_v27, %v3359_v31  ;;  %v3383_v3 = vrot.slane %v3381_v5, 1  ;;  %v422_v27 = vsel %vm407_vm1, %v420_v53, %v421_v41  ;;  %v424_v31 = vrot.slane %v386_v9, 3  ;;  %v7939_v53 = vld [vmem:[#allocation6 + $0x328] sm:$0xff]   ;;  %v8839_v9 = vld [vmem:[%s8553_s9 + $0x18] sm:$0xf0] }
  0xd4   : >> { %7180 = vmatprep.subr.bf16.mxu0 %v7929_v7  ;;  %v3372_v24 = vsel %vm3324_vm2, %v3367_v45, %v3371_v13  ;;  %v427_v13 = vrot.slane %v388_v49, 3  ;;  %v10122_v5 = vshll.u32 %v8723_v32, 16  ;;  %v3631_v32 = vrot.slane %v8835_v52, 1 }
  0xd5   : >> { %6845 = vmatmul.mubr.bf16.vlgmr.msra.gmra.mrb[0].mxu1 %v413_v51  ;;  %v423_v51 = vrot.slane %v8658_v33, 3  ;;  %v3384_v61 = vsel %vm3324_vm2, %v3379_v60, %v3383_v3  ;;  %v7936_v33 = vld [vmem:[#allocation6 + $0xa0] sm:$0xff]  }
  0xd6   : >> { %7165 = vmatmul.mubr.bf16.vlgmr.msra.gmra.mrb[0].mxu0 %v3348_v37  ;;  %6861 = vmatpush3.bf16.msra.mxu1 %v7928_v55  ;;  %v419_v55 = vsel %vm407_vm1, %v417_v15, %v418_v48  ;;  %v3405_v37 = vshll.u32 %v8804_v21, 16  ;;  %v3395_v15 = vrot.slane %v3393_v17, 1  ;;  %v426_v48 = vrot.slane %v8690_v29, 3  ;;  %v8842_v60 = vld [vmem:[%s8553_s9 + $0x20] sm:$0xfe] }
  0xd7   : >> { %7181 = vmatpush3.bf16.msra.mxu0 %v7929_v7  ;;  %6862 = vmatprep.subr.bf16.mxu1 %v7930_v19  ;;  %v7935_v7 = vld [vmem:[#allocation6 + $0x318] sm:$0xff]   ;;  %v3414_v45 = vrot.slane %v10122_v5, 1  ;;  %v425_v29 = vsel %vm407_vm1, %v423_v51, %v424_v31  ;;  %v941_v51 = vrot.slane %v8559_v62, 4  ;;  %v3634_v31 = vrot.slane %v8842_v60, 1  ;;  %v7945_v5 = vld [vmem:[#allocation6 + $0x340] sm:$0xff]  }
  0xd8   : >> { %7182 = vmatprep.subr.bf16.mxu0 %v7931_v34  ;;  %6848 = vmatprep.mubr.bf16.mxu1 %v416_v39  ;;  %v7937_v39 = vld [vmem:[#allocation6 + $0x320] sm:$0xff]   ;;  %v3407_v58 = vrot.slane %v3405_v37, 1  ;;  %v3635_v37 = vrot.slane %v8749_v35, 1  ;;  %v8860_v62 = vld [vmem:[%s8553_s9 + $0x38] sm:$0xfe] }
  0xd9   : >> { %7168 = vmatprep.mubr.bf16.mxu0 %v3360_v59  ;;  %v10121_v59 = vshrl.u32 %v8686_v20, 16  ;;  %v8832_v20 = vld [vmem:[%s8553_s9] sm:$0xf0] }
  0xda   : >> { %6863 = vmatpush3.bf16.msra.mxu1 %v7930_v19  ;;  %v8817_v19 = vld [vmem:[%s8553_s9 + $0xb8] sm:$0x1]  ;;  %v940_v49 = vrot.slane %v8832_v20, 4 }
  0xdb   : >> { %7183 = vmatpush3.bf16.msra.mxu0 %v7931_v34  ;;  %6864 = vmatprep.subr.bf16.mxu1 %v7932_v0  ;;  %v10120_v34 = vshrl.u32 %v8674_v63, 16  ;;  %v430_v63 = vrot.slane %v8812_v36, 3  ;;  %v944_v36 = vrot.slane %v8575_v10, 4  ;;  %v8863_v10 = vld [vmem:[%s8553_s9 + $0x48] sm:$0xf0] }
  0xdc   : >> { %7184 = vmatprep.subr.bf16.mxu0 %v7933_v14 }
  0xdd   : >> { %6849 = vmatmul.mubr.bf16.gmra.mrb[4].mxu1 %v419_v55  ;;  %v3391_v40 = vor.u32 %v3390_v8, %v10120_v34  ;;  %v3417_v55 = vshll.u32 %v8817_v19, 16  ;;  %v3415_v8 = vor.u32 %v3414_v45, %v10123_v43  ;;  %v8867_v34 = vld [vmem:[%s8553_s9 + $0x50] sm:$0xfe]  ;;  %v8884_v45 = vld [vmem:[%s8553_s9 + $0x68] sm:$0xfe] }
  0xde   : >> { %7169 = vmatmul.mubr.bf16.gmra.mrb[4].mxu0 %v3372_v24  ;;  %6865 = vmatpush3.bf16.msra.mxu1 %v7932_v0  ;;  %v3403_v0 = vor.u32 %v3402_v26, %v10121_v59  ;;  %v7941_v24 = vld [vmem:[#allocation6 + $0x330] sm:$0xff]   ;;  %v3632_v26 = vrot.slane %v8741_v46, 1  ;;  %v7942_v46 = vld [vmem:[#allocation6 + $0xb8] sm:$0xff]   ;;  %v949_v59 = vrot.slane %v8863_v10, 4  ;;  %v7947_v43 = vld [vmem:[#allocation6 + $0x348] sm:$0xff]  }
  0xdf   : >> { %7185 = vmatpush3.bf16.msra.mxu0 %v7933_v14  ;;  %6866 = vmatprep.subr.bf16.mxu1 %v7934_v11  ;;  %v7938_v14 = vld [vmem:[#allocation6 + $0xa8] sm:$0xff]   ;;  %v3396_v41 = vsel %vm3324_vm2, %v3391_v40, %v3395_v15  ;;  %v3419_v17 = vrot.slane %v3417_v55, 1  ;;  %v947_v40 = vrot.slane %v8599_v38, 4  ;;  %v3638_v15 = vrot.slane %v8758_v6, 1  ;;  %v8887_v55 = vld [vmem:[%s8553_s9 + $0x78] sm:$0xf0] }
  0xe0   : >> { %7186 = vmatprep.subr.bf16.mxu0 %v7935_v7  ;;  %6852 = vmatprep.mubr.bf16.mxu1 %v422_v27  ;;  %v3408_v3 = vsel %vm3324_vm2, %v3403_v0, %v3407_v58  ;;  %v943_v27 = vrot.slane %v8839_v9, 4  ;;  %v950_v0 = vrot.slane %v8619_v50, 4  ;;  %v3640_v38 = vrot.slane %v8867_v34, 1  ;;  %v8880_v58 = vld [vmem:[%s8553_s9 + $0x60] sm:$0xf0] }
  0xe1   : >> { %7172 = vmatprep.mubr.bf16.mxu0 %v3384_v61  ;;  %v8857_v61 = vld [vmem:[%s8553_s9 + $0x30] sm:$0xf0]  ;;  %v3420_v35 = vsel %vm3324_vm2, %v3415_v8, %v3419_v17  ;;  %v3641_v6 = vrot.slane %v8770_v54, 1  ;;  %v8890_v50 = vld [vmem:[%s8553_s9 + $0x80] sm:$0xfe]  ;;  %v3644_v54 = vrot.slane %v8781_v57, 1 }
  0xe2   : >> { %6867 = vmatpush3.bf16.msra.mxu1 %v7934_v11  ;;  %v428_v11 = vsel %vm407_vm1, %v426_v48, %v427_v13  ;;  %v946_v48 = vrot.slane %v8857_v61, 4  ;;  %v3637_v13 = vrot.slane %v8860_v62, 1  ;;  %v955_v8 = vrot.slane %v8887_v55, 4 }
  0xe3   : >> { %7187 = vmatpush3.bf16.msra.mxu0 %v7935_v7  ;;  %6868 = vmatprep.subr.bf16.mxu1 %v7936_v33  ;;  %v7940_v7 = vld [vmem:[#allocation6 + $0xb0] sm:$0xff]   ;;  %v956_v17 = vrot.slane %v8663_v42, 4  ;;  %v3647_v57 = vrot.slane %v8793_v12, 1 }
  0xe4   : >> { %7188 = vmatprep.subr.bf16.mxu0 %v7937_v39  ;;  %v948_v42 = vsel %vm939_vm3, %v946_v48, %v947_v40  ;;  %v3639_v12 = vsel %vm3630_vm4, %v3637_v13, %v3638_v15  ;;  %v1162_v48 = vshll.u32 %v8832_v20, 16 }
  0xe5   : >> { %6853 = vmatmul.mubr.bf16.gmra.mrb[8].mxu1 %v425_v29  ;;  %v953_v29 = vrot.slane %v8647_v25, 4  ;;  %v3646_v25 = vrot.slane %v8890_v50, 1  ;;  %v8929_v40 = vsel %vm939_vm3, %v955_v8, %v956_v17 }
  0xe6   : >> { %7173 = vmatmul.mubr.bf16.gmra.mrb[8].mxu0 %v3396_v41  ;;  %6869 = vmatpush3.bf16.msra.mxu1 %v7936_v33  ;;  %v431_v33 = vsel %vm407_vm1, %v429_v16, %v430_v63  ;;  %v942_v16 = vsel %vm939_vm3, %v940_v49, %v941_v51  ;;  %v3633_v63 = vsel %vm3630_vm4, %v3631_v32, %v3632_v26  ;;  %v952_v41 = vrot.slane %v8880_v58, 4  ;;  %v8908_v26 = vld [vmem:[%s8553_s9 + $0x98] sm:$0xfe] }
  0xe7   : >> { %7189 = vmatpush3.bf16.msra.mxu0 %v7937_v39  ;;  %6870 = vmatprep.subr.bf16.mxu1 %v7938_v14  ;;  %v7943_v39 = vld [vmem:[#allocation6 + $0x338] sm:$0xff]   ;;  %v959_v49 = vrot.slane %v8693_v30, 4  ;;  %v3650_v51 = vrot.slane %v8804_v21, 1  ;;  %v951_v32 = vsel %vm939_vm3, %v949_v59, %v950_v0  ;;  %v7949_v30 = vld [vmem:[#allocation6 + $0x350] sm:$0xff]   ;;  %v8932_v15 = vsel %vm3630_vm4, %v3646_v25, %v3647_v57 }
  0xe8   : >> { %7190 = vmatprep.subr.bf16.mxu0 %v7939_v53  ;;  %6856 = vmatprep.mubr.bf16.mxu1 %v428_v11  ;;  %v3643_v11 = vrot.slane %v8884_v45, 1  ;;  %v8921_v21 = vsel %vm939_vm3, %v952_v41, %v953_v29  ;;  %v962_v59 = vrot.slane %v8712_v56, 4  ;;  %v3653_v0 = vrot.slane %v8817_v19, 1  ;;  %v7950_v56 = vld [vmem:[#allocation6 + $0xd8] sm:$0xff]  }
  0xe9   : >> { %7176 = vmatprep.mubr.bf16.mxu0 %v3408_v3  ;;  %v7946_v3 = vld [vmem:[#allocation6 + $0xc8] sm:$0xff]   ;;  %v7951_v19 = vld [vmem:[#allocation6 + $0x358] sm:$0xff]  }
  0xea   : >> { %6871 = vmatpush3.bf16.msra.mxu1 %v7938_v14  ;;  %v7944_v14 = vld [vmem:[#allocation6 + $0xc0] sm:$0xff]  }
  0xeb   : >> { %7191 = vmatpush3.bf16.msra.mxu0 %v7939_v53  ;;  %6872 = vmatprep.subr.bf16.mxu1 %v7940_v7  ;;  %v945_v53 = vsel %vm939_vm3, %v943_v27, %v944_v36  ;;  %v8911_v36 = vld [vmem:[%s8553_s9 + $0xa8] sm:$0xf0]  ;;  %v7948_v27 = vld [vmem:[#allocation6 + $0xd0] sm:$0xff]  }
  0xec   : >> { %7192 = vmatprep.subr.bf16.mxu0 %v7941_v24  ;;  %v961_v13 = vrot.slane %v8911_v36, 4 }
  0xed   : >> { %6857 = vmatmul.mubr.bf16.gmra.mrb[12].mxu1 %v431_v33 }
  0xee   : >> { %7177 = vmatmul.mubr.bf16.gmra.mrb[12].mxu0 %v3420_v35  ;;  %6873 = vmatpush3.bf16.msra.mxu1 %v7940_v7  ;;  %v3636_v7 = vsel %vm3630_vm4, %v3634_v31, %v3635_v37  ;;  %v3642_v31 = vsel %vm3630_vm4, %v3640_v38, %v3641_v6  ;;  %v8918_v37 = vld [vmem:[%s8553_s9 + $0xb0] sm:$0xfe]  ;;  %v1159_v35 = vshrl.u32 %v8832_v20, 16 }
  0xef   : >> { %7193 = vmatpush3.bf16.msra.mxu0 %v7941_v24  ;;  %6874 = vmatprep.subr.bf16.mxu1 %v7942_v46  ;;  %v8903_v24 = vld [vmem:[%s8553_s9 + $0x90] sm:$0xf0]  ;;  %v3652_v38 = vrot.slane %v8918_v37, 1 }
  0xf0   : >> { %7194 = vmatprep.subr.bf16.mxu0 %v7943_v39  ;;  %6876 = vmatprep.mubr.bf16.mxu1 %v942_v16  ;;  %v958_v33 = vrot.slane %v8903_v24, 4  ;;  %v8940_v16 = vld [vmem:[%s8553_s9 + $0x8] sm:$0x1f]  ;;  %v8950_v29 = vrot.slane %v1159_v35, 4 }
  0xf1   : >> { %7196 = vmatprep.mubr.bf16.mxu0 %v3633_v63  ;;  %v1167_v6 = vshrl.u32 %v8940_v16, 16  ;;  %v1170_v20 = vshll.u32 %v8940_v16, 16  ;;  %v8947_v63 = vld [vmem:[%s8553_s9 + $0x10] sm:$0x3] }
  0xf2   : >> { %6875 = vmatpush3.bf16.msra.mxu1 %v7942_v46  ;;  %v8924_v46 = vsel %vm3630_vm4, %v3643_v11, %v3644_v54  ;;  %v8952_v54 = vrot.slane %v1162_v48, 5  ;;  %v3861_v41 = vshll.u32 %v8947_v63, 16 }
  0xf3   : >> { %7195 = vmatpush3.bf16.msra.mxu0 %v7943_v39  ;;  %6892 = vmatprep.subr.bf16.mxu1 %v7944_v14  ;;  %v3649_v39 = vrot.slane %v8908_v26, 1  ;;  %v1169_v11 = vrot.slane %v1167_v6, 4  ;;  %v1172_v8 = vrot.slane %v1170_v20, 5  ;;  %v7952_v6 = vld [vmem:[#allocation6 + $0xe0] sm:$0xff]   ;;  %v8981_v20 = vsel %vm939_vm3, %v961_v13, %v962_v59 }
  0xf4   : >> { %7212 = vmatprep.subr.bf16.mxu0 %v7945_v5  ;;  %v8965_v57 = vrot.slane %v3861_v41, 2  ;;  %v1193_v41 = vshrl.u32 %v8857_v61, 16 }
  0xf5   : >> { %6877 = vmatmul.mubr.bf16.vlgmr.msra.gmra.mrb[0].mxu1 %v945_v53  ;;  %v3858_v53 = vshrl.u32 %v8947_v63, 16  ;;  %v1173_v13 = vor.u32 %v1172_v8, %v1169_v11  ;;  %v1196_v11 = vshll.u32 %v8857_v61, 16 }
  0xf6   : >> { %7197 = vmatmul.mubr.bf16.vlgmr.msra.gmra.mrb[0].mxu0 %v3636_v7  ;;  %6893 = vmatpush3.bf16.msra.mxu1 %v7944_v14  ;;  %v3850_v14 = vshrl.u32 %v8835_v52, 16  ;;  %v1176_v7 = vshrl.u32 %v8839_v9, 16 }
  0xf7   : >> { %7213 = vmatpush3.bf16.msra.mxu0 %v7945_v5  ;;  %6894 = vmatprep.subr.bf16.mxu1 %v7946_v3  ;;  %v3853_v5 = vshll.u32 %v8835_v52, 16  ;;  %v8961_v52 = vld [vmem:[%s8553_s9 + $0x20] sm:$0x1f]  ;;  %v9015_v61 = vrot.slane %v1196_v11, 5 }
  0xf8   : >> { %7214 = vmatprep.subr.bf16.mxu0 %v7947_v43  ;;  %6880 = vmatprep.mubr.bf16.mxu1 %v948_v42  ;;  %v8956_v17 = vrot.slane %v3850_v14, 1  ;;  %v8970_v42 = vsel %vm939_vm3, %v958_v33, %v959_v49  ;;  %v1184_v35 = vshrl.u32 %v8961_v52, 16  ;;  %v1187_v48 = vshll.u32 %v8961_v52, 16  ;;  %v8978_v14 = vld [vmem:[%s8553_s9 + $0x28] sm:$0x3] }
  0xf9   : >> { %7200 = vmatprep.mubr.bf16.mxu0 %v3639_v12  ;;  %v8958_v25 = vrot.slane %v3853_v5, 2  ;;  %v8973_v12 = vsel %vm3630_vm4, %v3649_v39, %v3650_v51  ;;  %v3867_v49 = vshrl.u32 %v8842_v60, 16  ;;  %v7953_v51 = vld [vmem:[#allocation6 + $0x360] sm:$0xff]   ;;  %v8985_v33 = vsel %vm3630_vm4, %v3652_v38, %v3653_v0 }
  0xfa   : >> { %6895 = vmatpush3.bf16.msra.mxu1 %v7946_v3  ;;  %v8963_v3 = vrot.slane %v3858_v53, 1  ;;  %v1186_v39 = vrot.slane %v1184_v35, 4  ;;  %v1189_v5 = vrot.slane %v1187_v48, 5 }
  0xfb   : >> { %7215 = vmatpush3.bf16.msra.mxu0 %v7947_v43  ;;  %6896 = vmatprep.subr.bf16.mxu1 %v7948_v27  ;;  %v1179_v43 = vshll.u32 %v8839_v9, 16  ;;  %v1178_v9 = vrot.slane %v1176_v7, 4  ;;  %v8991_v59 = vrot.slane %v3867_v49, 1  ;;  %v3856_v0 = vor.u32 %v8958_v25, %v8956_v17  ;;  %v9023_v49 = vld [vmem:[%s8553_s9 + $0x50] sm:$0x1f] }
  0xfc   : >> { %7216 = vmatprep.subr.bf16.mxu0 %v7949_v30  ;;  %v1190_v8 = vor.u32 %v1189_v5, %v1186_v39  ;;  %v7956_v39 = vld [vmem:[#allocation6 + $0xf0] sm:$0xff]  }
  0xfd   : >> { %6881 = vmatmul.mubr.bf16.gmra.mrb[4].mxu1 %v951_v32  ;;  %v1181_v32 = vrot.slane %v1179_v43, 5  ;;  %v9013_v43 = vrot.slane %v1193_v41, 4 }
  0xfe   : >> { %7201 = vmatmul.mubr.bf16.gmra.mrb[4].mxu0 %v3642_v31  ;;  %6897 = vmatpush3.bf16.msra.mxu1 %v7948_v27  ;;  %v3870_v31 = vshll.u32 %v8842_v60, 16  ;;  %v1165_v27 = vor.u32 %v8952_v54, %v8950_v29  ;;  %v3864_v60 = vor.u32 %v8965_v57, %v8963_v3  ;;  %v9001_v54 = vld [vmem:[%s8553_s9 + $0x38] sm:$0x1f]  ;;  %v9007_v3 = vld [vmem:[%s8553_s9 + $0x40] sm:$0x3]  ;;  %v7955_v57 = vld [vmem:[#allocation6 + $0x368] sm:$0xff]  }
  0xff   : >> { %7217 = vmatpush3.bf16.msra.mxu0 %v7949_v30  ;;  %6898 = vmatprep.subr.bf16.mxu1 %v7950_v56  ;;  %v3875_v30 = vshrl.u32 %v8978_v14, 16  ;;  %v1182_v53 = vor.u32 %v1181_v32, %v1178_v9  ;;  %v1201_v25 = vshrl.u32 %v9001_v54, 16  ;;  %v3887_v9 = vshll.u32 %v8860_v62, 16 }
 0x100   : >> { %7218 = vmatprep.subr.bf16.mxu0 %v7951_v19  ;;  %6884 = vmatprep.mubr.bf16.mxu1 %v8921_v21  ;;  %v3872_v38 = vrot.slane %v3870_v31, 2  ;;  %v3878_v21 = vshll.u32 %v8978_v14, 16  ;;  %v9011_v7 = vsel %vm1157_vm5, %v1165_v27, %v1173_v13  ;;  %v3892_v32 = vshrl.u32 %v9007_v3, 16 }
 0x101   : >> { %7204 = vmatprep.mubr.bf16.mxu0 %v8924_v46  ;;  %v3877_v29 = vrot.slane %v3875_v30, 1  ;;  %v7954_v46 = vld [vmem:[#allocation6 + $0xe8] sm:$0xff]   ;;  %v9026_v5 = vrot.slane %v1201_v25, 4  ;;  %v1210_v27 = vshrl.u32 %v8863_v10, 16  ;;  %v9034_v13 = vsel %vm1157_vm5, %v1182_v53, %v1190_v8  ;;  %v7957_v30 = vld [vmem:[#allocation6 + $0x370] sm:$0xff]  }
 0x102   : >> { %6899 = vmatpush3.bf16.msra.mxu1 %v7950_v56  ;;  %v3880_v17 = vrot.slane %v3878_v21, 2  ;;  %v3884_v56 = vshrl.u32 %v8860_v62, 16  ;;  %v3873_v35 = vor.u32 %v3872_v38, %v8991_v59  ;;  %v3865_v62 = vsel %vm3848_vm6, %v3856_v0, %v3864_v60  ;;  %v7958_v60 = vld [vmem:[#allocation6 + $0xf8] sm:$0xff]  }
 0x103   : >> { %7219 = vmatpush3.bf16.msra.mxu0 %v7951_v19  ;;  %6900 = vmatprep.subr.bf16.mxu1 %v7952_v6  ;;  %v1204_v19 = vshll.u32 %v9001_v54, 16  ;;  %v1199_v38 = vor.u32 %v9015_v61, %v9013_v43  ;;  %v9047_v21 = vrot.slane %v3892_v32, 1  ;;  %v1218_v0 = vshrl.u32 %v9023_v49, 16 }
 0x104   : >> { %7220 = vmatprep.subr.bf16.mxu0 %v7953_v51  ;;  %v3881_v48 = vor.u32 %v3880_v17, %v3877_v29  ;;  %v9036_v59 = vrot.slane %v3884_v56, 1  ;;  %v1221_v29 = vshll.u32 %v9023_v49, 16 }
 0x105   : >> { %6885 = vmatmul.mubr.bf16.gmra.mrb[8].mxu1 %v8929_v40  ;;  %v9028_v31 = vrot.slane %v1204_v19, 5  ;;  %v3895_v40 = vshll.u32 %v9007_v3, 16  ;;  %v9063_v17 = vrot.slane %v1218_v0, 4  ;;  %v7959_v19 = vld [vmem:[#allocation6 + $0x378] sm:$0xff]  }
 0x106   : >> { %7205 = vmatmul.mubr.bf16.gmra.mrb[8].mxu0 %v8932_v15  ;;  %6901 = vmatpush3.bf16.msra.mxu1 %v7952_v6  ;;  %v1213_v15 = vshll.u32 %v8863_v10, 16  ;;  %v9040_v6 = vld [vmem:[%s8553_s9 + $0x58] sm:$0x3]  ;;  %v9051_v10 = vrot.slane %v1210_v27, 4  ;;  %v9056_v41 = vsel %vm3848_vm6, %v3873_v35, %v3881_v48  ;;  %v9065_v25 = vrot.slane %v1221_v29, 5 }
 0x107   : >> { %7221 = vmatpush3.bf16.msra.mxu0 %v7953_v51  ;;  %6902 = vmatprep.subr.bf16.mxu1 %v7954_v46  ;;  %v9045_v51 = vrot.slane %v3887_v9, 2  ;;  %v3897_v53 = vrot.slane %v3895_v40, 2  ;;  %v1207_v11 = vor.u32 %v9028_v31, %v9026_v5  ;;  %v3912_v9 = vshll.u32 %v9040_v6, 16  ;;  %v9082_v27 = vld [vmem:[%s8553_s9 + $0x70] sm:$0x3] }
 0x108   : >> { %7222 = vmatprep.subr.bf16.mxu0 %v7955_v57  ;;  %6888 = vmatprep.mubr.bf16.mxu1 %v8970_v42  ;;  %v3901_v42 = vshrl.u32 %v8867_v34, 16  ;;  %v9060_v8 = vrot.slane %v1213_v15, 5  ;;  %v1230_v31 = vshll.u32 %v8880_v58, 16  ;;  %v7961_v15 = vld [vmem:[#allocation6 + $0x380] sm:$0xff]  }
 0x109   : >> { %7208 = vmatprep.mubr.bf16.mxu0 %v8973_v12  ;;  %v3904_v12 = vshll.u32 %v8867_v34, 16  ;;  %v3890_v35 = vor.u32 %v9045_v51, %v9036_v59  ;;  %v9074_v34 = vld [vmem:[%s8553_s9 + $0x68] sm:$0x1f]  ;;  %v3898_v32 = vor.u32 %v3897_v53, %v9047_v21  ;;  %v7960_v59 = vld [vmem:[#allocation6 + $0x100] sm:$0xff]   ;;  %v3914_v0 = vrot.slane %v3912_v9, 2 }
 0x10a   : >> { %6903 = vmatpush3.bf16.msra.mxu1 %v7954_v46  ;;  %v9067_v56 = vrot.slane %v3901_v42, 1  ;;  %v3909_v46 = vshrl.u32 %v9040_v6, 16  ;;  %v1235_v40 = vshrl.u32 %v9074_v34, 16  ;;  %v1216_v51 = vor.u32 %v9060_v8, %v9051_v10  ;;  %v9095_v29 = vld [vmem:[%s8553_s9 + $0x80] sm:$0x1f] }
 0x10b   : >> { %7223 = vmatpush3.bf16.msra.mxu0 %v7955_v57  ;;  %6904 = vmatprep.subr.bf16.mxu1 %v7956_v39  ;;  %v3906_v48 = vrot.slane %v3904_v12, 2  ;;  %v1227_v57 = vshrl.u32 %v8880_v58, 16  ;;  %v1238_v21 = vshll.u32 %v9074_v34, 16  ;;  %v1224_v58 = vor.u32 %v9065_v25, %v9063_v17  ;;  %v7962_v12 = vld [vmem:[#allocation6 + $0x108] sm:$0xff]  }
 0x10c   : >> { %7224 = vmatprep.subr.bf16.mxu0 %v7957_v30  ;;  %v3911_v5 = vrot.slane %v3909_v46, 1  ;;  %v1237_v10 = vrot.slane %v1235_v40, 4  ;;  %v3921_v8 = vshll.u32 %v8884_v45, 16  ;;  %v1244_v46 = vshrl.u32 %v8887_v55, 16 }
 0x10d   : >> { %6889 = vmatmul.mubr.bf16.gmra.mrb[12].mxu1 %v8981_v20  ;;  %v9087_v20 = vrot.slane %v1227_v57, 4  ;;  %v3907_v53 = vor.u32 %v3906_v48, %v9067_v56  ;;  %v1240_v42 = vrot.slane %v1238_v21, 5  ;;  %v3929_v56 = vshll.u32 %v9082_v27, 16  ;;  %v9103_v48 = vld [vmem:[%s8553_s9 + $0x88] sm:$0x3] }
 0x10e   : >> { %7209 = vmatmul.mubr.bf16.gmra.mrb[12].mxu0 %v8985_v33  ;;  %6905 = vmatpush3.bf16.msra.mxu1 %v7956_v39  ;;  %v1232_v33 = vrot.slane %v1230_v31, 5  ;;  %v3918_v39 = vshrl.u32 %v8884_v45, 16  ;;  %v3915_v17 = vor.u32 %v3914_v0, %v3911_v5  ;;  %v3899_v45 = vsel %vm3848_vm6, %v3890_v35, %v3898_v32 }
 0x10f   : >> { %7225 = vmatpush3.bf16.msra.mxu0 %v7957_v30  ;;  %6906 = vmatprep.subr.bf16.mxu1 %v7958_v60  ;;  %v3926_v30 = vshrl.u32 %v9082_v27, 16  ;;  %v3923_v9 = vrot.slane %v3921_v8, 2  ;;  %v3931_v31 = vrot.slane %v3929_v56, 2  ;;  %v1247_v40 = vshll.u32 %v8887_v55, 16  ;;  %v9140_v8 = vld [vmem:[%s8553_s9 + $0xa0] sm:$0x3] }
 0x110   : >> { %7226 = vmatprep.subr.bf16.mxu0 %v7959_v19  ;;  %6908 = vmatprep.mubr.bf16.mxu1 %v9011_v7  ;;  %v3920_v25 = vrot.slane %v3918_v39, 1  ;;  %v1208_v7 = vsel %vm1157_vm5, %v1199_v38, %v1207_v11  ;;  %v1233_v5 = vor.u32 %v1232_v33, %v9087_v20  ;;  %v1252_v0 = vshrl.u32 %v9095_v29, 16 }
 0x111   : >> { %7228 = vmatprep.mubr.bf16.mxu0 %v3865_v62  ;;  %v3928_v57 = vrot.slane %v3926_v30, 1  ;;  %v7963_v62 = vld [vmem:[#allocation6 + $0x388] sm:$0xff]   ;;  %v1255_v61 = vshll.u32 %v9095_v29, 16  ;;  %v3935_v38 = vshrl.u32 %v8890_v50, 16  ;;  %v1225_v11 = vsel %vm1157_vm5, %v1216_v51, %v1224_v58  ;;  %v7964_v51 = vld [vmem:[#allocation6 + $0x110] sm:$0xff]   ;;  %v7966_v30 = vld [vmem:[#allocation6 + $0x118] sm:$0xff]  }
 0x112   : >> { %6907 = vmatpush3.bf16.msra.mxu1 %v7958_v60  ;;  %v1241_v60 = vor.u32 %v1240_v42, %v1237_v10  ;;  %v3924_v43 = vor.u32 %v3923_v9, %v3920_v25  ;;  %v3938_v32 = vshll.u32 %v8890_v50, 16  ;;  %v9120_v55 = vrot.slane %v1244_v46, 4  ;;  %v7965_v58 = vld [vmem:[#allocation6 + $0x390] sm:$0xff]  }
 0x113   : >> { %7227 = vmatpush3.bf16.msra.mxu0 %v7959_v19  ;;  %6924 = vmatprep.subr.bf16.mxu1 %v7960_v59  ;;  %v3916_v19 = vsel %vm3848_vm6, %v3907_v53, %v3915_v17  ;;  %v3932_v35 = vor.u32 %v3931_v31, %v3928_v57  ;;  %v9122_v20 = vrot.slane %v1247_v40, 5  ;;  %v3943_v21 = vshrl.u32 %v9103_v48, 16  ;;  %v9145_v9 = vld [vmem:[%s8553_s9 + $0xb0] sm:$0x1f] }
 0x114   : >> { %7244 = vmatprep.subr.bf16.mxu0 %v7961_v15  ;;  %v3946_v33 = vshll.u32 %v9103_v48, 16  ;;  %v9129_v53 = vrot.slane %v1252_v0, 4  ;;  %v9131_v50 = vrot.slane %v1255_v61, 5  ;;  %v1242_v39 = vsel %vm1157_vm5, %v1233_v5, %v1241_v60 }
 0x115   : >> { %6909 = vmatmul.mubr.bf16.vlgmr.msra.gmra.mrb[0].mxu1 %v9034_v13  ;;  %v9127_v13 = vld [vmem:[%s8553_s9 + $0x98] sm:$0x1f]  ;;  %v3933_v10 = vsel %vm3848_vm6, %v3924_v43, %v3932_v35  ;;  %v3940_v42 = vrot.slane %v3938_v32, 2  ;;  %v3945_v17 = vrot.slane %v3943_v21, 1  ;;  %v1250_v57 = vor.u32 %v9122_v20, %v9120_v55 }
 0x116   : >> { %7229 = vmatmul.mubr.bf16.vlgmr.msra.gmra.mrb[0].mxu0 %v9056_v41  ;;  %6925 = vmatpush3.bf16.msra.mxu1 %v7960_v59  ;;  %v9133_v41 = vrot.slane %v3935_v38, 1  ;;  %v1261_v59 = vshrl.u32 %v8903_v24, 16  ;;  %v3948_v25 = vrot.slane %v3946_v33, 2  ;;  %v1269_v56 = vshrl.u32 %v9127_v13, 16  ;;  %v9159_v35 = vld [vmem:[%s8553_s9 + $0xb8] sm:$0x3] }
 0x117   : >> { %7245 = vmatpush3.bf16.msra.mxu0 %v7961_v15  ;;  %6926 = vmatprep.subr.bf16.mxu1 %v7962_v12  ;;  %v1264_v15 = vshll.u32 %v8903_v24, 16  ;;  %v1272_v46 = vshll.u32 %v9127_v13, 16  ;;  %v3955_v0 = vshll.u32 %v8908_v26, 16  ;;  %v3960_v60 = vshrl.u32 %v9140_v8, 16 }
 0x118   : >> { %7246 = vmatprep.subr.bf16.mxu0 %v7963_v62  ;;  %6912 = vmatprep.mubr.bf16.mxu1 %v1208_v7  ;;  %v7967_v7 = vld [vmem:[#allocation6 + $0x398] sm:$0xff]   ;;  %v9149_v5 = vrot.slane %v1261_v59, 4  ;;  %v1271_v31 = vrot.slane %v1269_v56, 4  ;;  %v3941_v43 = vor.u32 %v3940_v42, %v9133_v41  ;;  %v3963_v38 = vshll.u32 %v9140_v8, 16  ;;  %v7969_v59 = vld [vmem:[#allocation6 + $0x3a0] sm:$0xff]  }
 0x119   : >> { %7232 = vmatprep.mubr.bf16.mxu0 %v3899_v45  ;;  %v1266_v24 = vrot.slane %v1264_v15, 5  ;;  %v3952_v45 = vshrl.u32 %v8908_v26, 16  ;;  %v1274_v40 = vrot.slane %v1272_v46, 5  ;;  %v3957_v32 = vrot.slane %v3955_v0, 2 }
 0x11a   : >> { %6927 = vmatpush3.bf16.msra.mxu1 %v7962_v12  ;;  %v1258_v12 = vor.u32 %v9131_v50, %v9129_v53  ;;  %v3962_v55 = vrot.slane %v3960_v60, 1  ;;  %v1278_v20 = vshrl.u32 %v8911_v36, 16  ;;  %v3965_v26 = vrot.slane %v3963_v38, 2  ;;  %v7968_v50 = vld [vmem:[#allocation6 + $0x120] sm:$0xff]   ;;  %v9176_v60 = vld [vmem:[%s8553_s9 + $0x8] sm:$0xfc] }
 0x11b   : >> { %7247 = vmatpush3.bf16.msra.mxu0 %v7963_v62  ;;  %6928 = vmatprep.subr.bf16.mxu1 %v7964_v51  ;;  %v3954_v61 = vrot.slane %v3952_v45, 1  ;;  %v3949_v62 = vor.u32 %v3948_v25, %v3945_v17  ;;  %v1281_v21 = vshll.u32 %v8911_v36, 16  ;;  %v1286_v33 = vshrl.u32 %v9145_v9, 16  ;;  %v7970_v36 = vld [vmem:[#allocation6 + $0x128] sm:$0xff]  }
 0x11c   : >> { %7248 = vmatprep.subr.bf16.mxu0 %v7965_v58  ;;  %v1289_v53 = vshll.u32 %v9145_v9, 16  ;;  %v1267_v41 = vor.u32 %v1266_v24, %v9149_v5  ;;  %v1275_v42 = vor.u32 %v1274_v40, %v1271_v31  ;;  %v1280_v15 = vrot.slane %v1278_v20, 4  ;;  %v7971_v5 = vld [vmem:[#allocation6 + $0x3a8] sm:$0xff]  }
 0x11d   : >> { %6913 = vmatmul.mubr.bf16.gmra.mrb[4].mxu1 %v1225_v11  ;;  %v3969_v11 = vshrl.u32 %v8918_v37, 16  ;;  %v1283_v17 = vrot.slane %v1281_v21, 5  ;;  %v3972_v25 = vshll.u32 %v8918_v37, 16  ;;  %v3980_v56 = vshll.u32 %v9159_v35, 16 }
 0x11e   : >> { %7233 = vmatmul.mubr.bf16.gmra.mrb[4].mxu0 %v3916_v19  ;;  %6929 = vmatpush3.bf16.msra.mxu1 %v7964_v51  ;;  %v3958_v19 = vor.u32 %v3957_v32, %v3954_v61  ;;  %v3966_v51 = vor.u32 %v3965_v26, %v3962_v55  ;;  %v3950_v46 = vsel %vm3848_vm6, %v3941_v43, %v3949_v62  ;;  %v1288_v24 = vrot.slane %v1286_v33, 4  ;;  %v9184_v61 = vld [vmem:[%s8553_s9 + $0x20] sm:$0xfc]  ;;  %v7972_v32 = vld [vmem:[#allocation6 + $0x130] sm:$0xff]  }
 0x11f   : >> { %7249 = vmatpush3.bf16.msra.mxu0 %v7965_v58  ;;  %6930 = vmatprep.subr.bf16.mxu1 %v7966_v30  ;;  %v3977_v58 = vshrl.u32 %v9159_v35, 16  ;;  %v1291_v45 = vrot.slane %v1289_v53, 5  ;;  %v3971_v37 = vrot.slane %v3969_v11, 1  ;;  %v3974_v31 = vrot.slane %v3972_v25, 2  ;;  %v7973_v26 = vld [vmem:[#allocation6 + $0x3b0] sm:$0xff]   ;;  %v7974_v11 = vld [vmem:[#allocation6 + $0x138] sm:$0xff]  }
 0x120   : >> { %7250 = vmatprep.subr.bf16.mxu0 %v7967_v7  ;;  %6916 = vmatprep.mubr.bf16.mxu1 %v1242_v39  ;;  %v1259_v39 = vsel %vm1157_vm5, %v1250_v57, %v1258_v12  ;;  %v3982_v0 = vrot.slane %v3980_v56, 2  ;;  %v1276_v57 = vsel %vm1157_vm5, %v1267_v41, %v1275_v42  ;;  %v3967_v12 = vsel %vm3848_vm6, %v3958_v19, %v3966_v51  ;;  %v9194_v41 = vld [vmem:[%s8553_s9 + $0x30] sm:$0xe0]  ;;  %v7975_v51 = vld [vmem:[#allocation6 + $0x3b8] sm:$0xff]  }
 0x121   : >> { %7236 = vmatprep.mubr.bf16.mxu0 %v3933_v10  ;;  %v9173_v10 = vld [vmem:[%s8553_s9] sm:$0xe0]  ;;  %v3979_v40 = vrot.slane %v3977_v58, 1  ;;  %v1284_v43 = vor.u32 %v1283_v17, %v1280_v15  ;;  %v1505_v62 = vrot.slane %v8940_v16, 5  ;;  %v3975_v55 = vor.u32 %v3974_v31, %v3971_v37  ;;  %v9203_v15 = vld [vmem:[%s8553_s9 + $0x48] sm:$0xe0] }
 0x122   : >> { %6931 = vmatpush3.bf16.msra.mxu1 %v7966_v30  ;;  %v9179_v30 = vld [vmem:[%s8553_s9 + $0x18] sm:$0xe0]  ;;  %v1504_v38 = vrot.slane %v9173_v10, 5  ;;  %v4195_v21 = vrot.slane %v9176_v60, 2  ;;  %v4196_v33 = vrot.slane %v8947_v63, 2  ;;  %v1508_v16 = vrot.slane %v8961_v52, 5 }
 0x123   : >> { %7251 = vmatpush3.bf16.msra.mxu0 %v7967_v7  ;;  %6932 = vmatprep.subr.bf16.mxu1 %v7968_v50  ;;  %v1292_v7 = vor.u32 %v1291_v45, %v1288_v24  ;;  %v3983_v20 = vor.u32 %v3982_v0, %v3979_v40  ;;  %v1507_v53 = vrot.slane %v9179_v30, 5  ;;  %v1511_v42 = vrot.slane %v9001_v54, 5  ;;  %v9200_v63 = vld [vmem:[%s8553_s9 + $0x38] sm:$0xfc]  ;;  %v9207_v17 = vld [vmem:[%s8553_s9 + $0x50] sm:$0xfc] }
 0x124   : >> { %7252 = vmatprep.subr.bf16.mxu0 %v7969_v59  ;;  %v4197_v54 = vsel %vm4194_vm8, %v4195_v21, %v4196_v33  ;;  %v1510_v25 = vrot.slane %v9194_v41, 5  ;;  %v4201_v58 = vrot.slane %v9200_v63, 2  ;;  %v4202_v56 = vrot.slane %v9007_v3, 2  ;;  %v9223_v40 = vld [vmem:[%s8553_s9 + $0x68] sm:$0xfc] }
 0x125   : >> { %6917 = vmatmul.mubr.bf16.gmra.mrb[8].mxu1 %v1259_v39  ;;  %v1293_v19 = vsel %vm1157_vm5, %v1284_v43, %v1292_v7  ;;  %v3984_v52 = vsel %vm3848_vm6, %v3975_v55, %v3983_v20  ;;  %v1514_v39 = vrot.slane %v9023_v49, 5  ;;  %v1513_v24 = vrot.slane %v9203_v15, 5  ;;  %v9226_v3 = vld [vmem:[%s8553_s9 + $0x78] sm:$0xe0]  ;;  %v9245_v55 = vld [vmem:[%s8553_s9 + $0xa8] sm:$0xe0] }
 0x126   : >> { %7237 = vmatmul.mubr.bf16.gmra.mrb[8].mxu0 %v3950_v46  ;;  %6933 = vmatpush3.bf16.msra.mxu1 %v7968_v50  ;;  %v4198_v50 = vrot.slane %v9184_v61, 2  ;;  %v9216_v46 = vld [vmem:[%s8553_s9 + $0x60] sm:$0xe0]  ;;  %v4204_v45 = vrot.slane %v9207_v17, 2  ;;  %v4205_v37 = vrot.slane %v9040_v6, 2  ;;  %v1517_v31 = vrot.slane %v9074_v34, 5 }
 0x127   : >> { %7253 = vmatpush3.bf16.msra.mxu0 %v7969_v59  ;;  %6934 = vmatprep.subr.bf16.mxu1 %v7970_v36  ;;  %v4199_v59 = vrot.slane %v8978_v14, 2  ;;  %v1506_v14 = vsel %vm1503_vm7, %v1504_v38, %v1505_v62  ;;  %v1516_v49 = vrot.slane %v9216_v46, 5  ;;  %v4208_v0 = vrot.slane %v9082_v27, 2  ;;  %v9231_v6 = vld [vmem:[%s8553_s9 + $0x80] sm:$0xfc] }
 0x128   : >> { %7254 = vmatprep.subr.bf16.mxu0 %v7971_v5  ;;  %6920 = vmatprep.mubr.bf16.mxu1 %v1276_v57  ;;  %v7978_v57 = vld [vmem:[#allocation6 + $0x148] sm:$0xff]   ;;  %v1509_v34 = vsel %vm1503_vm7, %v1507_v53, %v1508_v16  ;;  %v4207_v43 = vrot.slane %v9223_v40, 2  ;;  %v1519_v7 = vrot.slane %v9226_v3, 5  ;;  %v1512_v62 = vsel %vm1503_vm7, %v1510_v25, %v1511_v42  ;;  %v9242_v27 = vld [vmem:[%s8553_s9 + $0x98] sm:$0xfc]  ;;  %v7980_v53 = vld [vmem:[#allocation6 + $0x150] sm:$0xff]  }
 0x129   : >> { %7240 = vmatprep.mubr.bf16.mxu0 %v3967_v12  ;;  %v7979_v12 = vld [vmem:[#allocation6 + $0x3c8] sm:$0xff]   ;;  %v4200_v38 = vsel %vm4194_vm8, %v4198_v50, %v4199_v59  ;;  %v1520_v20 = vrot.slane %v9095_v29, 5  ;;  %v4211_v21 = vrot.slane %v9103_v48, 2  ;;  %v1523_v33 = vrot.slane %v9127_v13, 5  ;;  %v9259_v13 = vld [vmem:[%s8553_s9 + $0xb0] sm:$0xfc] }
 0x12a   : >> { %6935 = vmatpush3.bf16.msra.mxu1 %v7970_v36  ;;  %v7976_v36 = vld [vmem:[#allocation6 + $0x140] sm:$0xff]   ;;  %v4213_v50 = vrot.slane %v9242_v27, 2  ;;  %v1525_v59 = vrot.slane %v9245_v55, 5  ;;  %v4203_v29 = vsel %vm4194_vm8, %v4201_v58, %v4202_v56  ;;  %v1515_v42 = vsel %vm1503_vm7, %v1513_v24, %v1514_v39  ;;  %v7982_v56 = vld [vmem:[#allocation6 + $0x158] sm:$0xff]  }
 0x12b   : >> { %7255 = vmatpush3.bf16.msra.mxu0 %v7971_v5  ;;  %6936 = vmatprep.subr.bf16.mxu1 %v7972_v32  ;;  %v7977_v5 = vld [vmem:[#allocation6 + $0x3c0] sm:$0xff]   ;;  %v4206_v48 = vsel %vm4194_vm8, %v4204_v45, %v4205_v37  ;;  %v4217_v25 = vrot.slane %v9159_v35, 2  ;;  %v1726_v58 = vshll.u32 %v9173_v10, 16  ;;  %v4414_v45 = vshrl.u32 %v9176_v60, 16 }
 0x12c   : >> { %7256 = vmatprep.subr.bf16.mxu0 %v7973_v26 }
 0x12d   : >> { %6921 = vmatmul.mubr.bf16.gmra.mrb[12].mxu1 %v1293_v19  ;;  %v7981_v19 = vld [vmem:[#allocation6 + $0x3d0] sm:$0xff]   ;;  %v1728_v37 = vrot.slane %v1726_v58, 6 }
 0x12e   : >> { %7241 = vmatmul.mubr.bf16.gmra.mrb[12].mxu0 %v3984_v52  ;;  %6937 = vmatpush3.bf16.msra.mxu1 %v7972_v32  ;;  %v9239_v32 = vld [vmem:[%s8553_s9 + $0x90] sm:$0xe0]  ;;  %v1526_v52 = vrot.slane %v9145_v9, 5 }
 0x12f   : >> { %7257 = vmatpush3.bf16.msra.mxu0 %v7973_v26  ;;  %6938 = vmatprep.subr.bf16.mxu1 %v7974_v11  ;;  %v4210_v26 = vrot.slane %v9231_v6, 2  ;;  %v1522_v16 = vrot.slane %v9239_v32, 5 }
 0x130   : >> { %7258 = vmatprep.subr.bf16.mxu0 %v7975_v51  ;;  %6940 = vmatprep.mubr.bf16.mxu1 %v1506_v14  ;;  %v1723_v14 = vshrl.u32 %v9173_v10, 16  ;;  %v9286_v10 = vld [vmem:[%s8553_s9 + $0x10] sm:$0x7] }
 0x131   : >> { %7260 = vmatprep.mubr.bf16.mxu0 %v4197_v54  ;;  %v9266_v54 = vsel %vm1503_vm7, %v1519_v7, %v1520_v20  ;;  %v9274_v39 = vsel %vm1503_vm7, %v1522_v16, %v1523_v33  ;;  %v1740_v33 = vshrl.u32 %v9179_v30, 16  ;;  %v1743_v16 = vshll.u32 %v9179_v30, 16 }
 0x132   : >> { %6939 = vmatpush3.bf16.msra.mxu1 %v7974_v11  ;;  %v4214_v11 = vrot.slane %v9140_v8, 2  ;;  %v4209_v8 = vsel %vm4194_vm8, %v4207_v43, %v4208_v0  ;;  %v1725_v24 = vrot.slane %v1723_v14, 5  ;;  %v7983_v0 = vld [vmem:[#allocation6 + $0x3d8] sm:$0xff]   ;;  %v4422_v43 = vshrl.u32 %v9286_v10, 16 }
 0x133   : >> { %7259 = vmatpush3.bf16.msra.mxu0 %v7975_v51  ;;  %6956 = vmatprep.subr.bf16.mxu1 %v7976_v36  ;;  %v1518_v51 = vsel %vm1503_vm7, %v1516_v49, %v1517_v31  ;;  %v4417_v49 = vshll.u32 %v9176_v60, 16  ;;  %v7984_v60 = vld [vmem:[#allocation6 + $0x160] sm:$0xff]   ;;  %v9315_v30 = vrot.slane %v1740_v33, 5 }
 0x134   : >> { %7276 = vmatprep.subr.bf16.mxu0 %v7977_v5  ;;  %v9277_v9 = vsel %vm4194_vm8, %v4213_v50, %v4214_v11  ;;  %v7985_v50 = vld [vmem:[#allocation6 + $0x3e0] sm:$0xff]   ;;  %v1729_v11 = vor.u32 %v1728_v37, %v1725_v24 }
 0x135   : >> { %6941 = vmatmul.mubr.bf16.vlgmr.msra.gmra.mrb[0].mxu1 %v1509_v34  ;;  %v4216_v34 = vrot.slane %v9259_v13, 2  ;;  %v9294_v20 = vrot.slane %v4417_v49, 3  ;;  %v9342_v33 = vld [vmem:[%s8553_s9 + $0x40] sm:$0x7] }
 0x136   : >> { %7261 = vmatmul.mubr.bf16.vlgmr.msra.gmra.mrb[0].mxu0 %v4200_v38  ;;  %6957 = vmatpush3.bf16.msra.mxu1 %v7976_v36  ;;  %v9269_v36 = vsel %vm4194_vm8, %v4210_v26, %v4211_v21  ;;  %v9297_v26 = vld [vmem:[%s8553_s9 + $0x20] sm:$0x3f] }
 0x137   : >> { %7277 = vmatpush3.bf16.msra.mxu0 %v7977_v5  ;;  %6958 = vmatprep.subr.bf16.mxu1 %v7978_v57  ;;  %v9280_v5 = vld [vmem:[%s8553_s9 + $0x8] sm:$0x3f]  ;;  %v1748_v14 = vshrl.u32 %v9297_v26, 16  ;;  %v1751_v58 = vshll.u32 %v9297_v26, 16 }
 0x138   : >> { %7278 = vmatprep.subr.bf16.mxu0 %v7979_v12  ;;  %6944 = vmatprep.mubr.bf16.mxu1 %v1512_v62  ;;  %v1731_v31 = vshrl.u32 %v9280_v5, 16  ;;  %v1734_v35 = vshll.u32 %v9280_v5, 16  ;;  %v9292_v62 = vrot.slane %v4414_v45, 2  ;;  %v9308_v45 = vld [vmem:[%s8553_s9 + $0x28] sm:$0x7] }
 0x139   : >> { %7264 = vmatprep.mubr.bf16.mxu0 %v4203_v29  ;;  %v1750_v24 = vrot.slane %v1748_v14, 5  ;;  %v1753_v37 = vrot.slane %v1751_v58, 6  ;;  %v4439_v49 = vshrl.u32 %v9308_v45, 16 }
 0x13a   : >> { %6959 = vmatpush3.bf16.msra.mxu1 %v7978_v57  ;;  %v4425_v57 = vshll.u32 %v9286_v10, 16  ;;  %v1733_v7 = vrot.slane %v1731_v31, 5  ;;  %v1736_v38 = vrot.slane %v1734_v35, 6  ;;  %v4434_v31 = vshll.u32 %v9184_v61, 16 }
 0x13b   : >> { %7279 = vmatpush3.bf16.msra.mxu0 %v7979_v12  ;;  %6960 = vmatprep.subr.bf16.mxu1 %v7980_v53  ;;  %v9299_v12 = vrot.slane %v4422_v43, 2  ;;  %v9320_v35 = vsel %vm4194_vm8, %v4216_v34, %v4217_v25  ;;  %v4442_v25 = vshll.u32 %v9308_v45, 16  ;;  %v4441_v34 = vrot.slane %v4439_v49, 2  ;;  %v7990_v49 = vld [vmem:[#allocation6 + $0x178] sm:$0xff]  }
 0x13c   : >> { %7280 = vmatprep.subr.bf16.mxu0 %v7981_v19  ;;  %v9301_v21 = vrot.slane %v4425_v57, 3  ;;  %v1737_v29 = vor.u32 %v1736_v38, %v1733_v7  ;;  %v9334_v57 = vld [vmem:[%s8553_s9 + $0x38] sm:$0x3f]  ;;  %v1757_v7 = vshrl.u32 %v9194_v41, 16  ;;  %v4448_v38 = vshrl.u32 %v9200_v63, 16 }
 0x13d   : >> { %6945 = vmatmul.mubr.bf16.gmra.mrb[4].mxu1 %v1515_v42  ;;  %v9313_v42 = vsel %vm1503_vm7, %v1525_v59, %v1526_v52  ;;  %v4420_v59 = vor.u32 %v9294_v20, %v9292_v62  ;;  %v1754_v20 = vor.u32 %v1753_v37, %v1750_v24  ;;  %v4459_v37 = vshll.u32 %v9342_v33, 16 }
 0x13e   : >> { %7265 = vmatmul.mubr.bf16.gmra.mrb[4].mxu0 %v4206_v48  ;;  %6961 = vmatpush3.bf16.msra.mxu1 %v7980_v53  ;;  %v4431_v53 = vshrl.u32 %v9184_v61, 16  ;;  %v1745_v48 = vrot.slane %v1743_v16, 6  ;;  %v9328_v43 = vsel %vm1721_vm9, %v1729_v11, %v1737_v29  ;;  %v4428_v61 = vor.u32 %v9301_v21, %v9299_v12 }
 0x13f   : >> { %7281 = vmatpush3.bf16.msra.mxu0 %v7981_v19  ;;  %6962 = vmatprep.subr.bf16.mxu1 %v7982_v56  ;;  %v7986_v19 = vld [vmem:[#allocation6 + $0x168] sm:$0xff]   ;;  %v4444_v12 = vrot.slane %v4442_v25, 3  ;;  %v1765_v21 = vshrl.u32 %v9334_v57, 16  ;;  %v1759_v11 = vrot.slane %v1757_v7, 5  ;;  %v9351_v58 = vrot.slane %v4448_v38, 2 }
 0x140   : >> { %7282 = vmatprep.subr.bf16.mxu0 %v7983_v0  ;;  %6948 = vmatprep.mubr.bf16.mxu1 %v1518_v51  ;;  %v9324_v52 = vrot.slane %v4431_v53, 2  ;;  %v7987_v51 = vld [vmem:[#allocation6 + $0x3e8] sm:$0xff]   ;;  %v1746_v62 = vor.u32 %v1745_v48, %v9315_v30  ;;  %v4451_v30 = vshll.u32 %v9200_v63, 16  ;;  %v4456_v53 = vshrl.u32 %v9342_v33, 16  ;;  %v7988_v48 = vld [vmem:[#allocation6 + $0x170] sm:$0xff]  }
 0x141   : >> { %7268 = vmatprep.mubr.bf16.mxu0 %v4209_v8  ;;  %v4436_v8 = vrot.slane %v4434_v31, 3  ;;  %v1767_v14 = vrot.slane %v1765_v21, 5  ;;  %v1774_v31 = vshrl.u32 %v9203_v15, 16 }
 0x142   : >> { %6963 = vmatpush3.bf16.msra.mxu1 %v7982_v56  ;;  %v1760_v56 = vshll.u32 %v9194_v41, 16  ;;  %v1768_v41 = vshll.u32 %v9334_v57, 16  ;;  %v9359_v63 = vrot.slane %v4451_v30, 3 }
 0x143   : >> { %7283 = vmatpush3.bf16.msra.mxu0 %v7983_v0  ;;  %6964 = vmatprep.subr.bf16.mxu1 %v7984_v60  ;;  %v9345_v0 = vld [vmem:[%s8553_s9 + $0x50] sm:$0x3f]  ;;  %v4437_v16 = vor.u32 %v4436_v8, %v9324_v52  ;;  %v9364_v8 = vsel %vm1721_vm9, %v1746_v62, %v1754_v20  ;;  %v7991_v20 = vld [vmem:[#allocation6 + $0x3f8] sm:$0xff]  }
 0x144   : >> { %7284 = vmatprep.subr.bf16.mxu0 %v7985_v50  ;;  %v1762_v29 = vrot.slane %v1760_v56, 6  ;;  %v1770_v24 = vrot.slane %v1768_v41, 6  ;;  %v1782_v7 = vshrl.u32 %v9345_v0, 16  ;;  %v4454_v38 = vor.u32 %v9359_v63, %v9351_v58  ;;  %v7996_v58 = vld [vmem:[#allocation6 + $0x190] sm:$0xff]  }
 0x145   : >> { %6949 = vmatmul.mubr.bf16.gmra.mrb[8].mxu1 %v9266_v54  ;;  %v4445_v54 = vor.u32 %v4444_v12, %v4441_v34  ;;  %v9366_v34 = vrot.slane %v4456_v53, 2 }
 0x146   : >> { %7269 = vmatmul.mubr.bf16.gmra.mrb[8].mxu0 %v9269_v36  ;;  %6965 = vmatpush3.bf16.msra.mxu1 %v7984_v60  ;;  %v7989_v36 = vld [vmem:[#allocation6 + $0x3f0] sm:$0xff]   ;;  %v4429_v60 = vsel %vm4412_vm10, %v4420_v59, %v4428_v61  ;;  %v1763_v52 = vor.u32 %v1762_v29, %v1759_v11  ;;  %v1771_v25 = vor.u32 %v1770_v24, %v1767_v14  ;;  %v9372_v59 = vrot.slane %v4459_v37, 3  ;;  %v9397_v14 = vld [vmem:[%s8553_s9 + $0x68] sm:$0x3f]  ;;  %v7992_v37 = vld [vmem:[#allocation6 + $0x180] sm:$0xff]  }
 0x147   : >> { %7285 = vmatpush3.bf16.msra.mxu0 %v7985_v50  ;;  %6966 = vmatprep.subr.bf16.mxu1 %v7986_v19  ;;  %v1777_v50 = vshll.u32 %v9203_v15, 16  ;;  %v9374_v61 = vrot.slane %v1774_v31, 5  ;;  %v1785_v15 = vshll.u32 %v9345_v0, 16  ;;  %v9379_v56 = vsel %vm4412_vm10, %v4437_v16, %v4445_v54  ;;  %v9408_v24 = vld [vmem:[%s8553_s9 + $0x70] sm:$0x7] }
 0x148   : >> { %7286 = vmatprep.subr.bf16.mxu0 %v7987_v51  ;;  %6952 = vmatprep.mubr.bf16.mxu1 %v9274_v39  ;;  %v9370_v39 = vld [vmem:[%s8553_s9 + $0x58] sm:$0x7]  ;;  %v9387_v12 = vsel %vm1721_vm9, %v1763_v52, %v1771_v25  ;;  %v1784_v21 = vrot.slane %v1782_v7, 5  ;;  %v4462_v30 = vor.u32 %v9372_v59, %v9366_v34  ;;  %v1799_v54 = vshrl.u32 %v9397_v14, 16  ;;  %v7994_v59 = vld [vmem:[#allocation6 + $0x188] sm:$0xff]  }
 0x149   : >> { %7272 = vmatprep.mubr.bf16.mxu0 %v9277_v9  ;;  %v4465_v9 = vshrl.u32 %v9207_v17, 16  ;;  %v9383_v62 = vrot.slane %v1777_v50, 6  ;;  %v4473_v11 = vshrl.u32 %v9370_v39, 16  ;;  %v4476_v41 = vshll.u32 %v9370_v39, 16  ;;  %v9414_v50 = vld [vmem:[%s8553_s9 + $0x80] sm:$0x3f] }
 0x14a   : >> { %6967 = vmatpush3.bf16.msra.mxu1 %v7986_v19  ;;  %v4468_v19 = vshll.u32 %v9207_v17, 16  ;;  %v1791_v17 = vshrl.u32 %v9216_v46, 16  ;;  %v1801_v7 = vrot.slane %v1799_v54, 5  ;;  %v4463_v54 = vsel %vm4412_vm10, %v4454_v38, %v4462_v30 }
 0x14b   : >> { %7287 = vmatpush3.bf16.msra.mxu0 %v7987_v51  ;;  %6968 = vmatprep.subr.bf16.mxu1 %v7988_v48  ;;  %v1787_v51 = vrot.slane %v1785_v15, 6  ;;  %v9391_v16 = vrot.slane %v4465_v9, 2  ;;  %v9403_v53 = vrot.slane %v4473_v11, 2  ;;  %v1780_v31 = vor.u32 %v9383_v62, %v9374_v61 }
 0x14c   : >> { %7288 = vmatprep.subr.bf16.mxu0 %v7989_v36  ;;  %v9393_v29 = vrot.slane %v4468_v19, 3  ;;  %v4478_v52 = vrot.slane %v4476_v41, 3  ;;  %v4485_v9 = vshll.u32 %v9223_v40, 16  ;;  %v4490_v62 = vshrl.u32 %v9408_v24, 16  ;;  %v7995_v19 = vld [vmem:[#allocation6 + $0x408] sm:$0xff]  }
 0x14d   : >> { %6953 = vmatmul.mubr.bf16.gmra.mrb[12].mxu1 %v9313_v42  ;;  %v1794_v42 = vshll.u32 %v9216_v46, 16  ;;  %v7993_v46 = vld [vmem:[#allocation6 + $0x400] sm:$0xff]   ;;  %v1788_v25 = vor.u32 %v1787_v51, %v1784_v21  ;;  %v4493_v51 = vshll.u32 %v9408_v24, 16  ;;  %v1808_v11 = vshrl.u32 %v9226_v3, 16  ;;  %v9426_v41 = vld [vmem:[%s8553_s9 + $0x88] sm:$0x7] }
 0x14e   : >> { %7273 = vmatmul.mubr.bf16.gmra.mrb[12].mxu0 %v9320_v35  ;;  %6969 = vmatpush3.bf16.msra.mxu1 %v7988_v48  ;;  %v1793_v35 = vrot.slane %v1791_v17, 5  ;;  %v1802_v48 = vshll.u32 %v9397_v14, 16  ;;  %v4471_v61 = vor.u32 %v9393_v29, %v9391_v16  ;;  %v4487_v29 = vrot.slane %v4485_v9, 3 }
 0x14f   : >> { %7289 = vmatpush3.bf16.msra.mxu0 %v7989_v36  ;;  %6970 = vmatprep.subr.bf16.mxu1 %v7990_v49  ;;  %v1796_v34 = vrot.slane %v1794_v42, 6  ;;  %v4482_v36 = vshrl.u32 %v9223_v40, 16  ;;  %v4492_v17 = vrot.slane %v4490_v62, 2  ;;  %v4495_v40 = vrot.slane %v4493_v51, 3  ;;  %v9453_v51 = vld [vmem:[%s8553_s9 + $0xa0] sm:$0x7] }
 0x150   : >> { %7290 = vmatprep.subr.bf16.mxu0 %v7991_v20  ;;  %6972 = vmatprep.mubr.bf16.mxu1 %v9328_v43  ;;  %v1804_v15 = vrot.slane %v1802_v48, 6  ;;  %v4479_v43 = vor.u32 %v4478_v52, %v9403_v53  ;;  %v1810_v42 = vrot.slane %v1808_v11, 5  ;;  %v1816_v53 = vshrl.u32 %v9414_v50, 16 }
 0x151   : >> { %7292 = vmatprep.mubr.bf16.mxu0 %v4429_v60  ;;  %v4484_v21 = vrot.slane %v4482_v36, 2  ;;  %v1797_v60 = vor.u32 %v1796_v34, %v1793_v35  ;;  %v1819_v52 = vshll.u32 %v9414_v50, 16  ;;  %v4499_v35 = vshrl.u32 %v9231_v6, 16  ;;  %v7998_v36 = vld [vmem:[#allocation6 + $0x198] sm:$0xff]  }
 0x152   : >> { %6971 = vmatpush3.bf16.msra.mxu1 %v7990_v49  ;;  %v1805_v16 = vor.u32 %v1804_v15, %v1801_v7  ;;  %v1811_v49 = vshll.u32 %v9226_v3, 16  ;;  %v1818_v34 = vrot.slane %v1816_v53, 5  ;;  %v4496_v63 = vor.u32 %v4495_v40, %v4492_v17 }
 0x153   : >> { %7291 = vmatpush3.bf16.msra.mxu0 %v7991_v20  ;;  %6988 = vmatprep.subr.bf16.mxu1 %v7992_v37  ;;  %v1789_v20 = vsel %vm1721_vm9, %v1780_v31, %v1788_v25  ;;  %v4488_v3 = vor.u32 %v4487_v29, %v4484_v21  ;;  %v1821_v38 = vrot.slane %v1819_v52, 6  ;;  %v4507_v30 = vshrl.u32 %v9426_v41, 16  ;;  %v9443_v25 = vld [vmem:[%s8553_s9 + $0x98] sm:$0x3f] }
 0x154   : >> { %7308 = vmatprep.subr.bf16.mxu0 %v7993_v46  ;;  %v1813_v48 = vrot.slane %v1811_v49, 6  ;;  %v4510_v31 = vshll.u32 %v9426_v41, 16  ;;  %v1825_v7 = vshrl.u32 %v9239_v32, 16  ;;  %v1828_v21 = vshll.u32 %v9239_v32, 16 }
 0x155   : >> { %6973 = vmatmul.mubr.bf16.vlgmr.msra.gmra.mrb[0].mxu1 %v9364_v8  ;;  %v4502_v8 = vshll.u32 %v9231_v6, 16  ;;  %v1806_v6 = vsel %vm1721_vm9, %v1797_v60, %v1805_v16  ;;  %v1822_v9 = vor.u32 %v1821_v38, %v1818_v34  ;;  %v1836_v11 = vshll.u32 %v9443_v25, 16  ;;  %v9458_v60 = vld [vmem:[%s8553_s9 + $0xb0] sm:$0x3f]  ;;  %v7999_v16 = vld [vmem:[#allocation6 + $0x418] sm:$0xff]  }
 0x156   : >> { %7293 = vmatmul.mubr.bf16.vlgmr.msra.gmra.mrb[0].mxu0 %v9379_v56  ;;  %6989 = vmatpush3.bf16.msra.mxu1 %v7992_v37  ;;  %v4480_v56 = vsel %vm4412_vm10, %v4471_v61, %v4479_v43  ;;  %v7997_v37 = vld [vmem:[#allocation6 + $0x410] sm:$0xff]   ;;  %v1814_v15 = vor.u32 %v1813_v48, %v1810_v42  ;;  %v4512_v61 = vrot.slane %v4510_v31, 3  ;;  %v1833_v43 = vshrl.u32 %v9443_v25, 16  ;;  %v8000_v48 = vld [vmem:[#allocation6 + $0x1a0] sm:$0xff]  }
 0x157   : >> { %7309 = vmatpush3.bf16.msra.mxu0 %v7993_v46  ;;  %6990 = vmatprep.subr.bf16.mxu1 %v7994_v59  ;;  %v9448_v46 = vrot.slane %v4499_v35, 2  ;;  %v4504_v62 = vrot.slane %v4502_v8, 3  ;;  %v4497_v29 = vsel %vm4412_vm10, %v4488_v3, %v4496_v63  ;;  %v1827_v17 = vrot.slane %v1825_v7, 5  ;;  %v9468_v3 = vld [vmem:[%s8553_s9 + $0xb8] sm:$0x7] }
 0x158   : >> { %7310 = vmatprep.subr.bf16.mxu0 %v7995_v19  ;;  %6976 = vmatprep.mubr.bf16.mxu1 %v9387_v12  ;;  %v4509_v12 = vrot.slane %v4507_v30, 2  ;;  %v1830_v40 = vrot.slane %v1828_v21, 6  ;;  %v4516_v32 = vshrl.u32 %v9242_v27, 16  ;;  %v1838_v42 = vrot.slane %v1836_v11, 6  ;;  %v8002_v11 = vld [vmem:[#allocation6 + $0x1a8] sm:$0xff]  }
 0x159   : >> { %7296 = vmatprep.mubr.bf16.mxu0 %v4463_v54  ;;  %v4519_v49 = vshll.u32 %v9242_v27, 16  ;;  %v4524_v53 = vshrl.u32 %v9453_v51, 16  ;;  %v1823_v54 = vsel %vm1721_vm9, %v1814_v15, %v1822_v9  ;;  %v4527_v35 = vshll.u32 %v9453_v51, 16 }
 0x15a   : >> { %6991 = vmatpush3.bf16.msra.mxu1 %v7994_v59  ;;  %v1835_v59 = vrot.slane %v1833_v43, 5  ;;  %v4518_v52 = vrot.slane %v4516_v32, 2  ;;  %v4513_v34 = vor.u32 %v4512_v61, %v4509_v12  ;;  %v1842_v27 = vshrl.u32 %v9245_v55, 16 }
 0x15b   : >> { %7311 = vmatpush3.bf16.msra.mxu0 %v7995_v19  ;;  %6992 = vmatprep.subr.bf16.mxu1 %v7996_v58  ;;  %v4505_v19 = vor.u32 %v4504_v62, %v9448_v46  ;;  %v4521_v8 = vrot.slane %v4519_v49, 3  ;;  %v4526_v63 = vrot.slane %v4524_v53, 2  ;;  %v1845_v38 = vshll.u32 %v9245_v55, 16  ;;  %v8001_v46 = vld [vmem:[#allocation6 + $0x420] sm:$0xff]   ;;  %v9484_v49 = vld [vmem:[%s8553_s9 + $0x8] sm:$0xf8] }
 0x15c   : >> { %7312 = vmatprep.subr.bf16.mxu0 %v7997_v37  ;;  %v1850_v30 = vshrl.u32 %v9458_v60, 16  ;;  %v1853_v31 = vshll.u32 %v9458_v60, 16  ;;  %v4533_v15 = vshrl.u32 %v9259_v13, 16  ;;  %v4536_v12 = vshll.u32 %v9259_v13, 16 }
 0x15d   : >> { %6977 = vmatmul.mubr.bf16.gmra.mrb[4].mxu1 %v1789_v20  ;;  %v4529_v20 = vrot.slane %v4527_v35, 3  ;;  %v4522_v7 = vor.u32 %v4521_v8, %v4518_v52  ;;  %v1847_v62 = vrot.slane %v1845_v38, 6  ;;  %v4541_v61 = vshrl.u32 %v9468_v3, 16  ;;  %v8005_v35 = vld [vmem:[#allocation6 + $0x430] sm:$0xff]  }
 0x15e   : >> { %7297 = vmatmul.mubr.bf16.gmra.mrb[4].mxu0 %v4480_v56  ;;  %6993 = vmatpush3.bf16.msra.mxu1 %v7996_v58  ;;  %v1831_v56 = vor.u32 %v1830_v40, %v1827_v17  ;;  %v1839_v58 = vor.u32 %v1838_v42, %v1835_v59  ;;  %v1852_v21 = vrot.slane %v1850_v30, 5  ;;  %v1855_v55 = vrot.slane %v1853_v31, 6  ;;  %v9480_v17 = vld [vmem:[%s8553_s9] sm:$0xc0]  ;;  %v8004_v42 = vld [vmem:[#allocation6 + $0x1b0] sm:$0xff]   ;;  %v8006_v31 = vld [vmem:[#allocation6 + $0x1b8] sm:$0xff]  }
 0x15f   : >> { %7313 = vmatpush3.bf16.msra.mxu0 %v7997_v37  ;;  %6994 = vmatprep.subr.bf16.mxu1 %v7998_v36  ;;  %v4530_v9 = vor.u32 %v4529_v20, %v4526_v63  ;;  %v1844_v37 = vrot.slane %v1842_v27, 5  ;;  %v4514_v43 = vsel %vm4412_vm10, %v4505_v19, %v4513_v34  ;;  %v4538_v40 = vrot.slane %v4536_v12, 3  ;;  %v9491_v34 = vld [vmem:[%s8553_s9 + $0x20] sm:$0xf8]  ;;  %v9499_v30 = vld [vmem:[%s8553_s9 + $0x30] sm:$0xc0] }
 0x160   : >> { %7314 = vmatprep.subr.bf16.mxu0 %v7999_v16  ;;  %6980 = vmatprep.mubr.bf16.mxu1 %v1806_v6  ;;  %v4544_v6 = vshll.u32 %v9468_v3, 16  ;;  %v4543_v32 = vrot.slane %v4541_v61, 2  ;;  %v1840_v59 = vsel %vm1721_vm9, %v1831_v56, %v1839_v58  ;;  %v1856_v52 = vor.u32 %v1855_v55, %v1852_v21  ;;  %v9521_v55 = vld [vmem:[%s8553_s9 + $0x60] sm:$0xc0] }
 0x161   : >> { %7300 = vmatprep.mubr.bf16.mxu0 %v4497_v29  ;;  %v4535_v29 = vrot.slane %v4533_v15, 2  ;;  %v4531_v53 = vsel %vm4412_vm10, %v4522_v7, %v4530_v9  ;;  %v1848_v19 = vor.u32 %v1847_v62, %v1844_v37  ;;  %v2068_v63 = vrot.slane %v9480_v17, 6  ;;  %v9506_v7 = vld [vmem:[%s8553_s9 + $0x38] sm:$0xf8]  ;;  %v9513_v62 = vld [vmem:[%s8553_s9 + $0x48] sm:$0xc0] }
 0x162   : >> { %6995 = vmatpush3.bf16.msra.mxu1 %v7998_v36  ;;  %v8003_v36 = vld [vmem:[#allocation6 + $0x428] sm:$0xff]   ;;  %v4546_v13 = vrot.slane %v4544_v6, 3  ;;  %v4758_v27 = vrot.slane %v9484_v49, 3  ;;  %v4759_v20 = vrot.slane %v9286_v10, 3  ;;  %v4761_v56 = vrot.slane %v9491_v34, 3  ;;  %v8007_v15 = vld [vmem:[#allocation6 + $0x438] sm:$0xff]  }
 0x163   : >> { %7315 = vmatpush3.bf16.msra.mxu0 %v7999_v16  ;;  %6996 = vmatprep.subr.bf16.mxu1 %v8000_v48  ;;  %v9487_v16 = vld [vmem:[%s8553_s9 + $0x18] sm:$0xc0]  ;;  %v4762_v58 = vrot.slane %v9308_v45, 3  ;;  %v1857_v10 = vsel %vm1721_vm9, %v1848_v19, %v1856_v52  ;;  %v2074_v9 = vrot.slane %v9499_v30, 6  ;;  %v4765_v37 = vrot.slane %v9342_v33, 3  ;;  %v8008_v33 = vld [vmem:[#allocation6 + $0x1c0] sm:$0xff]  }
 0x164   : >> { %7316 = vmatprep.subr.bf16.mxu0 %v8001_v46  ;;  %v4547_v8 = vor.u32 %v4546_v13, %v4543_v32  ;;  %v2071_v38 = vrot.slane %v9487_v16, 6  ;;  %v9516_v45 = vld [vmem:[%s8553_s9 + $0x50] sm:$0xf8]  ;;  %v4760_v21 = vsel %vm407_vm1, %v4758_v27, %v4759_v20  ;;  %v8009_v12 = vld [vmem:[#allocation6 + $0x440] sm:$0xff]   ;;  %v4764_v61 = vrot.slane %v9506_v7, 3 }
 0x165   : >> { %6981 = vmatmul.mubr.bf16.gmra.mrb[8].mxu1 %v1823_v54  ;;  %v4539_v54 = vor.u32 %v4538_v40, %v4535_v29  ;;  %v2077_v6 = vrot.slane %v9513_v62, 6  ;;  %v4767_v29 = vrot.slane %v9516_v45, 3  ;;  %v9530_v40 = vld [vmem:[%s8553_s9 + $0x68] sm:$0xf8]  ;;  %v2080_v32 = vrot.slane %v9521_v55, 6  ;;  %v8012_v27 = vld [vmem:[#allocation6 + $0x1d0] sm:$0xff]  }
 0x166   : >> { %7301 = vmatmul.mubr.bf16.gmra.mrb[8].mxu0 %v4514_v43  ;;  %6997 = vmatpush3.bf16.msra.mxu1 %v8000_v48  ;;  %v2069_v48 = vrot.slane %v9280_v5, 6  ;;  %v2075_v5 = vrot.slane %v9334_v57, 6  ;;  %v2078_v43 = vrot.slane %v9345_v0, 6  ;;  %v4771_v13 = vrot.slane %v9408_v24, 3  ;;  %v8010_v0 = vld [vmem:[#allocation6 + $0x1c8] sm:$0xff]  }
 0x167   : >> { %7317 = vmatpush3.bf16.msra.mxu0 %v8001_v46  ;;  %6998 = vmatprep.subr.bf16.mxu1 %v8002_v11  ;;  %v2072_v46 = vrot.slane %v9297_v26, 6  ;;  %v4548_v26 = vsel %vm4412_vm10, %v4539_v54, %v4547_v8  ;;  %v4770_v19 = vrot.slane %v9530_v40, 3  ;;  %v9545_v52 = vld [vmem:[%s8553_s9 + $0x90] sm:$0xc0]  ;;  %v2084_v54 = vrot.slane %v9414_v50, 6 }
 0x168   : >> { %7318 = vmatprep.subr.bf16.mxu0 %v8003_v36  ;;  %6984 = vmatprep.mubr.bf16.mxu1 %v1840_v59  ;;  %v2070_v57 = vsel %vm2067_vm11, %v2068_v63, %v2069_v48  ;;  %v9535_v59 = vld [vmem:[%s8553_s9 + $0x78] sm:$0xc0]  ;;  %v4774_v8 = vrot.slane %v9426_v41, 3  ;;  %v9554_v48 = vld [vmem:[%s8553_s9 + $0xa8] sm:$0xc0]  ;;  %v4766_v50 = vsel %vm407_vm1, %v4764_v61, %v4765_v37 }
 0x169   : >> { %7304 = vmatprep.mubr.bf16.mxu0 %v4531_v53  ;;  %v4763_v53 = vsel %vm407_vm1, %v4761_v56, %v4762_v58  ;;  %v2083_v24 = vrot.slane %v9535_v59, 6  ;;  %v9551_v63 = vld [vmem:[%s8553_s9 + $0x98] sm:$0xf8]  ;;  %v8013_v56 = vld [vmem:[#allocation6 + $0x450] sm:$0xff]   ;;  %v2089_v58 = vrot.slane %v9554_v48, 6  ;;  %v4772_v37 = vsel %vm407_vm1, %v4770_v19, %v4771_v13 }
 0x16a   : >> { %6999 = vmatpush3.bf16.msra.mxu1 %v8002_v11  ;;  %v4768_v11 = vrot.slane %v9370_v39, 3  ;;  %v9538_v39 = vld [vmem:[%s8553_s9 + $0x80] sm:$0xf8]  ;;  %v4776_v41 = vrot.slane %v9551_v63, 3  ;;  %v9583_v61 = vld [vmem:[%s8553_s9 + $0x8] sm:$0x7f] }
 0x16b   : >> { %7319 = vmatpush3.bf16.msra.mxu0 %v8003_v36  ;;  %7000 = vmatprep.subr.bf16.mxu1 %v8004_v42  ;;  %v2081_v36 = vrot.slane %v9397_v14, 6  ;;  %v2073_v14 = vsel %vm2067_vm11, %v2071_v38, %v2072_v46  ;;  %v4773_v20 = vrot.slane %v9538_v39, 3  ;;  %v2086_v38 = vrot.slane %v9545_v52, 6  ;;  %v9590_v13 = vld [vmem:[%s8553_s9 + $0x10] sm:$0xf] }
 0x16c   : >> { %7320 = vmatprep.subr.bf16.mxu0 %v8005_v35  ;;  %v4777_v46 = vrot.slane %v9453_v51, 3  ;;  %v2090_v51 = vrot.slane %v9458_v60, 6 }
 0x16d   : >> { %6985 = vmatmul.mubr.bf16.gmra.mrb[12].mxu1 %v1857_v10  ;;  %v2079_v10 = vsel %vm2067_vm11, %v2077_v6, %v2078_v43  ;;  %v2287_v6 = vshrl.u32 %v9480_v17, 16  ;;  %v8015_v43 = vld [vmem:[#allocation6 + $0x458] sm:$0xff]  }
 0x16e   : >> { %7305 = vmatmul.mubr.bf16.gmra.mrb[12].mxu0 %v4548_v26  ;;  %7001 = vmatpush3.bf16.msra.mxu1 %v8004_v42  ;;  %v8011_v42 = vld [vmem:[#allocation6 + $0x448] sm:$0xff]   ;;  %v9573_v26 = vsel %vm2067_vm11, %v2083_v24, %v2084_v54  ;;  %v9597_v54 = vld [vmem:[%s8553_s9 + $0x20] sm:$0x7f] }
 0x16f   : >> { %7321 = vmatpush3.bf16.msra.mxu0 %v8005_v35  ;;  %7002 = vmatprep.subr.bf16.mxu1 %v8006_v31  ;;  %v2076_v35 = vsel %vm2067_vm11, %v2074_v9, %v2075_v5  ;;  %v9564_v5 = vld [vmem:[%s8553_s9 + $0xb0] sm:$0xf8]  ;;  %v2082_v9 = vsel %vm2067_vm11, %v2080_v32, %v2081_v36  ;;  %v2298_v36 = vshll.u32 %v9583_v61, 16  ;;  %v2289_v32 = vrot.slane %v2287_v6, 6 }
 0x170   : >> { %7322 = vmatprep.subr.bf16.mxu0 %v8007_v15  ;;  %7004 = vmatprep.mubr.bf16.mxu1 %v2070_v57  ;;  %v8014_v57 = vld [vmem:[#allocation6 + $0x1d8] sm:$0xff]   ;;  %v2307_v6 = vshll.u32 %v9487_v16, 16 }
 0x171   : >> { %7324 = vmatprep.mubr.bf16.mxu0 %v4760_v21  ;;  %v9576_v21 = vsel %vm407_vm1, %v4773_v20, %v4774_v8  ;;  %v4987_v20 = vshll.u32 %v9590_v13, 16 }
 0x172   : >> { %7003 = vmatpush3.bf16.msra.mxu1 %v8006_v31  ;;  %v2087_v31 = vrot.slane %v9443_v25, 6  ;;  %v4769_v25 = vsel %vm407_vm1, %v4767_v29, %v4768_v11  ;;  %v2290_v11 = vshll.u32 %v9480_v17, 16  ;;  %v2295_v29 = vshrl.u32 %v9583_v61, 16 }
 0x173   : >> { %7323 = vmatpush3.bf16.msra.mxu0 %v8007_v15  ;;  %7020 = vmatprep.subr.bf16.mxu1 %v8008_v33  ;;  %v4780_v15 = vrot.slane %v9468_v3, 3  ;;  %v2300_v17 = vrot.slane %v2298_v36, 7  ;;  %v4989_v36 = vrot.slane %v4987_v20, 4  ;;  %v9639_v20 = vld [vmem:[%s8553_s9 + $0x38] sm:$0x7f]  ;;  %v2324_v3 = vshll.u32 %v9499_v30, 16 }
 0x174   : >> { %7340 = vmatprep.subr.bf16.mxu0 %v8009_v12  ;;  %v2292_v19 = vrot.slane %v2290_v11, 7  ;;  %v2297_v24 = vrot.slane %v2295_v29, 6  ;;  %v9607_v11 = vld [vmem:[%s8553_s9 + $0x28] sm:$0xf] }
 0x175   : >> { %7005 = vmatmul.mubr.bf16.vlgmr.msra.gmra.mrb[0].mxu1 %v2073_v14  ;;  %v4976_v14 = vshrl.u32 %v9484_v49, 16 }
 0x176   : >> { %7325 = vmatmul.mubr.bf16.vlgmr.msra.gmra.mrb[0].mxu0 %v4763_v53  ;;  %7021 = vmatpush3.bf16.msra.mxu1 %v8008_v33  ;;  %v9579_v33 = vsel %vm2067_vm11, %v2086_v38, %v2087_v31  ;;  %v4979_v53 = vshll.u32 %v9484_v49, 16  ;;  %v9603_v49 = vsel %vm407_vm1, %v4776_v41, %v4777_v46  ;;  %v2293_v31 = vor.u32 %v2292_v19, %v2289_v32  ;;  %v8018_v32 = vld [vmem:[#allocation6 + $0x1e8] sm:$0xff]  }
 0x177   : >> { %7341 = vmatpush3.bf16.msra.mxu0 %v8009_v12  ;;  %7022 = vmatprep.subr.bf16.mxu1 %v8010_v0  ;;  %v4779_v12 = vrot.slane %v9564_v5, 3  ;;  %v2301_v29 = vor.u32 %v2300_v17, %v2297_v24  ;;  %v2309_v41 = vrot.slane %v2307_v6, 7  ;;  %v5001_v24 = vshrl.u32 %v9607_v11, 16  ;;  %v8019_v17 = vld [vmem:[#allocation6 + $0x468] sm:$0xff]  }
 0x178   : >> { %7342 = vmatprep.subr.bf16.mxu0 %v8011_v42  ;;  %7008 = vmatprep.mubr.bf16.mxu1 %v2076_v35  ;;  %v4984_v35 = vshrl.u32 %v9590_v13, 16  ;;  %v4981_v8 = vrot.slane %v4979_v53, 4  ;;  %v2315_v53 = vshll.u32 %v9597_v54, 16  ;;  %v2329_v6 = vshrl.u32 %v9639_v20, 16 }
 0x179   : >> { %7328 = vmatprep.mubr.bf16.mxu0 %v4766_v50  ;;  %v9631_v60 = vsel %vm407_vm1, %v4779_v12, %v4780_v15  ;;  %v8020_v15 = vld [vmem:[#allocation6 + $0x1f0] sm:$0xff]  }
 0x17a   : >> { %7023 = vmatpush3.bf16.msra.mxu1 %v8010_v0  ;;  %v2304_v0 = vshrl.u32 %v9487_v16, 16  ;;  %v4986_v50 = vrot.slane %v4984_v35, 3  ;;  %v4996_v16 = vshll.u32 %v9491_v34, 16  ;;  %v2317_v19 = vrot.slane %v2315_v53, 7 }
 0x17b   : >> { %7343 = vmatpush3.bf16.msra.mxu0 %v8011_v42  ;;  %7024 = vmatprep.subr.bf16.mxu1 %v8012_v27  ;;  %v4978_v42 = vrot.slane %v4976_v14, 3  ;;  %v2312_v14 = vshrl.u32 %v9597_v54, 16  ;;  %v5013_v53 = vshll.u32 %v9506_v7, 16 }
 0x17c   : >> { %7344 = vmatprep.subr.bf16.mxu0 %v8013_v56  ;;  %v9600_v38 = vrot.slane %v2304_v0, 6 }
 0x17d   : >> { %7009 = vmatmul.mubr.bf16.gmra.mrb[4].mxu1 %v2079_v10  ;;  %v8016_v10 = vld [vmem:[#allocation6 + $0x1e0] sm:$0xff]   ;;  %v4982_v46 = vor.u32 %v4981_v8, %v4978_v42  ;;  %v2314_v0 = vrot.slane %v2312_v14, 6  ;;  %v5010_v14 = vshrl.u32 %v9506_v7, 16  ;;  %v8022_v7 = vld [vmem:[#allocation6 + $0x1f8] sm:$0xff]  }
 0x17e   : >> { %7329 = vmatmul.mubr.bf16.gmra.mrb[4].mxu0 %v4769_v25  ;;  %7025 = vmatpush3.bf16.msra.mxu1 %v8012_v27  ;;  %v8017_v27 = vld [vmem:[#allocation6 + $0x460] sm:$0xff]   ;;  %v4993_v25 = vshrl.u32 %v9491_v34, 16  ;;  %v9623_v34 = vrot.slane %v4996_v16, 4  ;;  %v2310_v42 = vor.u32 %v2309_v41, %v9600_v38  ;;  %v2332_v38 = vshll.u32 %v9639_v20, 16 }
 0x17f   : >> { %7345 = vmatpush3.bf16.msra.mxu0 %v8013_v56  ;;  %7026 = vmatprep.subr.bf16.mxu1 %v8014_v57  ;;  %v4990_v56 = vor.u32 %v4989_v36, %v4986_v50  ;;  %v2318_v8 = vor.u32 %v2317_v19, %v2314_v0  ;;  %v9643_v50 = vld [vmem:[%s8553_s9 + $0x40] sm:$0xf]  ;;  %v5015_v0 = vrot.slane %v5013_v53, 4  ;;  %v9670_v19 = vld [vmem:[%s8553_s9 + $0x58] sm:$0xf] }
 0x180   : >> { %7346 = vmatprep.subr.bf16.mxu0 %v8015_v43  ;;  %7012 = vmatprep.mubr.bf16.mxu1 %v2082_v9  ;;  %v9619_v9 = vsel %vm2067_vm11, %v2089_v58, %v2090_v51  ;;  %v9621_v35 = vrot.slane %v4993_v25, 3  ;;  %v5003_v58 = vrot.slane %v5001_v24, 3  ;;  %v2321_v51 = vshrl.u32 %v9499_v30, 16  ;;  %v8021_v30 = vld [vmem:[#allocation6 + $0x470] sm:$0xff]   ;;  %v9688_v53 = vld [vmem:[%s8553_s9 + $0x68] sm:$0x7f] }
 0x181   : >> { %7332 = vmatprep.mubr.bf16.mxu0 %v4772_v37  ;;  %v5004_v37 = vshll.u32 %v9607_v11, 16  ;;  %v9647_v12 = vsel %vm464_vm0, %v4982_v46, %v4990_v56  ;;  %v2331_v46 = vrot.slane %v2329_v6, 6  ;;  %v2334_v41 = vrot.slane %v2332_v38, 7 }
 0x182   : >> { %7027 = vmatpush3.bf16.msra.mxu1 %v8014_v57  ;;  %v9634_v57 = vsel %vm2285_vm12, %v2293_v31, %v2301_v29  ;;  %v9649_v31 = vrot.slane %v2321_v51, 6  ;;  %v9654_v29 = vld [vmem:[%s8553_s9 + $0x50] sm:$0x7f]  ;;  %v4999_v36 = vor.u32 %v9623_v34, %v9621_v35  ;;  %v5018_v25 = vshrl.u32 %v9643_v50, 16 }
 0x183   : >> { %7347 = vmatpush3.bf16.msra.mxu0 %v8015_v43  ;;  %7028 = vmatprep.subr.bf16.mxu1 %v8016_v10  ;;  %v5006_v43 = vrot.slane %v5004_v37, 4  ;;  %v5012_v56 = vrot.slane %v5010_v14, 3  ;;  %v2338_v34 = vshrl.u32 %v9513_v62, 16  ;;  %v2335_v37 = vor.u32 %v2334_v41, %v2331_v46  ;;  %v8024_v46 = vld [vmem:[#allocation6 + $0x200] sm:$0xff]  }
 0x184   : >> { %7348 = vmatprep.subr.bf16.mxu0 %v8017_v27  ;;  %v5020_v24 = vrot.slane %v5018_v25, 3  ;;  %v2341_v51 = vshll.u32 %v9513_v62, 16  ;;  %v5030_v38 = vshll.u32 %v9516_v45, 16  ;;  %v5038_v14 = vshll.u32 %v9670_v19, 16  ;;  %v8025_v41 = vld [vmem:[#allocation6 + $0x480] sm:$0xff]  }
 0x185   : >> { %7013 = vmatmul.mubr.bf16.gmra.mrb[8].mxu1 %v9573_v26  ;;  %v9659_v26 = vrot.slane %v2324_v3, 7  ;;  %v5007_v16 = vor.u32 %v5006_v43, %v5003_v58  ;;  %v2346_v58 = vshrl.u32 %v9654_v29, 16  ;;  %v2340_v43 = vrot.slane %v2338_v34, 6 }
 0x186   : >> { %7333 = vmatmul.mubr.bf16.gmra.mrb[8].mxu0 %v9576_v21  ;;  %7029 = vmatpush3.bf16.msra.mxu1 %v8016_v10  ;;  %v5021_v21 = vshll.u32 %v9643_v50, 16  ;;  %v9667_v10 = vsel %vm2285_vm12, %v2310_v42, %v2318_v8  ;;  %v2349_v42 = vshll.u32 %v9654_v29, 16  ;;  %v5027_v3 = vshrl.u32 %v9516_v45, 16 }
 0x187   : >> { %7349 = vmatpush3.bf16.msra.mxu0 %v8017_v27  ;;  %7030 = vmatprep.subr.bf16.mxu1 %v8018_v32  ;;  %v2327_v27 = vor.u32 %v9659_v26, %v9649_v31  ;;  %v2343_v31 = vrot.slane %v2341_v51, 7  ;;  %v2348_v6 = vrot.slane %v2346_v58, 6  ;;  %v5008_v62 = vsel %vm464_vm0, %v4999_v36, %v5007_v16  ;;  %v9695_v36 = vld [vmem:[%s8553_s9 + $0x70] sm:$0xf]  ;;  %v9706_v51 = vld [vmem:[%s8553_s9 + $0x80] sm:$0x7f] }
 0x188   : >> { %7350 = vmatprep.subr.bf16.mxu0 %v8019_v17  ;;  %7016 = vmatprep.mubr.bf16.mxu1 %v9579_v33  ;;  %v5023_v35 = vrot.slane %v5021_v21, 4  ;;  %v8023_v33 = vld [vmem:[#allocation6 + $0x478] sm:$0xff]   ;;  %v9683_v26 = vrot.slane %v5027_v3, 3  ;;  %v9691_v45 = vrot.slane %v5030_v38, 4  ;;  %v2366_v34 = vshll.u32 %v9688_v53, 16 }
 0x189   : >> { %7336 = vmatprep.mubr.bf16.mxu0 %v9603_v49  ;;  %v5016_v49 = vor.u32 %v5015_v0, %v5012_v56  ;;  %v2344_v25 = vor.u32 %v2343_v31, %v2340_v43  ;;  %v5040_v56 = vrot.slane %v5038_v14, 4  ;;  %v2358_v0 = vshll.u32 %v9521_v55, 16 }
 0x18a   : >> { %7031 = vmatpush3.bf16.msra.mxu1 %v8018_v32  ;;  %v5024_v8 = vor.u32 %v5023_v35, %v5020_v24  ;;  %v2351_v32 = vrot.slane %v2349_v42, 7  ;;  %v5047_v42 = vshll.u32 %v9530_v40, 16  ;;  %v2372_v31 = vshrl.u32 %v9535_v59, 16 }
 0x18b   : >> { %7351 = vmatpush3.bf16.msra.mxu0 %v8019_v17  ;;  %7032 = vmatprep.subr.bf16.mxu1 %v8020_v15  ;;  %v5035_v17 = vshrl.u32 %v9670_v19, 16  ;;  %v9712_v58 = vrot.slane %v2358_v0, 7  ;;  %v2375_v14 = vshll.u32 %v9535_v59, 16  ;;  %v5064_v59 = vshll.u32 %v9538_v39, 16 }
 0x18c   : >> { %7352 = vmatprep.subr.bf16.mxu0 %v8021_v30  ;;  %v2352_v21 = vor.u32 %v2351_v32, %v2348_v6  ;;  %v5025_v24 = vsel %vm464_vm0, %v5016_v49, %v5024_v8  ;;  %v5052_v49 = vshrl.u32 %v9695_v36, 16  ;;  %v5055_v8 = vshll.u32 %v9695_v36, 16  ;;  %v9722_v6 = vld [vmem:[%s8553_s9 + $0x88] sm:$0xf] }
 0x18d   : >> { %7017 = vmatmul.mubr.bf16.gmra.mrb[12].mxu1 %v9619_v9  ;;  %v2355_v9 = vshrl.u32 %v9521_v55, 16  ;;  %v5037_v16 = vrot.slane %v5035_v17, 3  ;;  %v5049_v32 = vrot.slane %v5047_v42, 4  ;;  %v2377_v0 = vrot.slane %v2375_v14, 7 }
 0x18e   : >> { %7337 = vmatmul.mubr.bf16.gmra.mrb[12].mxu0 %v9631_v60  ;;  %7033 = vmatpush3.bf16.msra.mxu1 %v8020_v15  ;;  %v2363_v60 = vshrl.u32 %v9688_v53, 16  ;;  %v2336_v15 = vsel %vm2285_vm12, %v2327_v27, %v2335_v37  ;;  %v9710_v55 = vsel %vm2285_vm12, %v2344_v25, %v2352_v21  ;;  %v5044_v27 = vshrl.u32 %v9530_v40, 16  ;;  %v8028_v21 = vld [vmem:[#allocation6 + $0x210] sm:$0xff]  }
 0x18f   : >> { %7353 = vmatpush3.bf16.msra.mxu0 %v8021_v30  ;;  %7034 = vmatprep.subr.bf16.mxu1 %v8022_v7  ;;  %v9702_v35 = vrot.slane %v2355_v9, 6  ;;  %v8026_v30 = vld [vmem:[#allocation6 + $0x208] sm:$0xff]   ;;  %v2368_v37 = vrot.slane %v2366_v34, 7  ;;  %v5041_v43 = vor.u32 %v5040_v56, %v5037_v16  ;;  %v5054_v38 = vrot.slane %v5052_v49, 3  ;;  %v9742_v49 = vld [vmem:[%s8553_s9 + $0xa0] sm:$0xf] }
 0x190   : >> { %7354 = vmatprep.subr.bf16.mxu0 %v8023_v33  ;;  %7036 = vmatprep.mubr.bf16.mxu1 %v9634_v57  ;;  %v2365_v57 = vrot.slane %v2363_v60, 6  ;;  %v5046_v3 = vrot.slane %v5044_v27, 3  ;;  %v5057_v17 = vrot.slane %v5055_v8, 4  ;;  %v2383_v25 = vshll.u32 %v9706_v51, 16 }
 0x191   : >> { %7356 = vmatprep.mubr.bf16.mxu0 %v9647_v12  ;;  %v5033_v12 = vor.u32 %v9691_v45, %v9683_v26  ;;  %v2361_v40 = vor.u32 %v9712_v58, %v9702_v35  ;;  %v2380_v26 = vshrl.u32 %v9706_v51, 16  ;;  %v5061_v56 = vshrl.u32 %v9538_v39, 16  ;;  %v9733_v35 = vld [vmem:[%s8553_s9 + $0x98] sm:$0x7f] }
 0x192   : >> { %7035 = vmatpush3.bf16.msra.mxu1 %v8022_v7  ;;  %v8027_v7 = vld [vmem:[#allocation6 + $0x488] sm:$0xff]   ;;  %v2369_v45 = vor.u32 %v2368_v37, %v2365_v57  ;;  %v5050_v9 = vor.u32 %v5049_v32, %v5046_v3  ;;  %v5058_v16 = vor.u32 %v5057_v17, %v5054_v38  ;;  %v2385_v60 = vrot.slane %v2383_v25, 7  ;;  %v8030_v57 = vld [vmem:[#allocation6 + $0x218] sm:$0xff]   ;;  %v9750_v38 = vld [vmem:[%s8553_s9 + $0xb0] sm:$0x7f] }
 0x193   : >> { %7355 = vmatpush3.bf16.msra.mxu0 %v8023_v33  ;;  %7052 = vmatprep.subr.bf16.mxu1 %v8024_v46  ;;  %v2374_v33 = vrot.slane %v2372_v31, 6  ;;  %v9736_v34 = vrot.slane %v5061_v56, 3  ;;  %v5069_v58 = vshrl.u32 %v9722_v6, 16  ;;  %v5066_v42 = vrot.slane %v5064_v59, 4  ;;  %v8031_v17 = vld [vmem:[#allocation6 + $0x498] sm:$0xff]   ;;  %v8033_v59 = vld [vmem:[#allocation6 + $0x4a0] sm:$0xff]  }
 0x194   : >> { %7372 = vmatprep.subr.bf16.mxu0 %v8025_v41  ;;  %v2389_v39 = vshrl.u32 %v9545_v52, 16  ;;  %v5059_v3 = vsel %vm464_vm0, %v5050_v9, %v5058_v16  ;;  %v2400_v32 = vshll.u32 %v9733_v35, 16  ;;  %v5089_v25 = vshll.u32 %v9742_v49, 16 }
 0x195   : >> { %7037 = vmatmul.mubr.bf16.vlgmr.msra.gmra.mrb[0].mxu1 %v9667_v10  ;;  %v2382_v10 = vrot.slane %v2380_v26, 6  ;;  %v2378_v27 = vor.u32 %v2377_v0, %v2374_v33  ;;  %v5086_v26 = vshrl.u32 %v9742_v49, 16  ;;  %v2406_v56 = vshrl.u32 %v9554_v48, 16  ;;  %v8032_v0 = vld [vmem:[#allocation6 + $0x220] sm:$0xff]  }
 0x196   : >> { %7357 = vmatmul.mubr.bf16.vlgmr.msra.gmra.mrb[0].mxu0 %v5008_v62  ;;  %7053 = vmatpush3.bf16.msra.mxu1 %v8024_v46  ;;  %v5042_v62 = vsel %vm464_vm0, %v5033_v12, %v5041_v43  ;;  %v8029_v46 = vld [vmem:[#allocation6 + $0x490] sm:$0xff]   ;;  %v2392_v12 = vshll.u32 %v9545_v52, 16  ;;  %v2397_v43 = vshrl.u32 %v9733_v35, 16  ;;  %v2391_v31 = vrot.slane %v2389_v39, 6 }
 0x197   : >> { %7373 = vmatpush3.bf16.msra.mxu0 %v8025_v41  ;;  %7054 = vmatprep.subr.bf16.mxu1 %v8026_v30  ;;  %v5072_v41 = vshll.u32 %v9722_v6, 16  ;;  %v2386_v37 = vor.u32 %v2385_v60, %v2382_v10  ;;  %v5078_v52 = vshrl.u32 %v9551_v63, 16  ;;  %v5088_v60 = vrot.slane %v5086_v26, 3  ;;  %v8036_v26 = vld [vmem:[#allocation6 + $0x230] sm:$0xff]  }
 0x198   : >> { %7374 = vmatprep.subr.bf16.mxu0 %v8027_v7  ;;  %7040 = vmatprep.mubr.bf16.mxu1 %v2336_v15  ;;  %v5071_v15 = vrot.slane %v5069_v58, 3  ;;  %v2394_v33 = vrot.slane %v2392_v12, 7  ;;  %v2399_v14 = vrot.slane %v2397_v43, 6  ;;  %v5098_v12 = vshll.u32 %v9564_v5, 16  ;;  %v8034_v43 = vld [vmem:[#allocation6 + $0x228] sm:$0xff]  }
 0x199   : >> { %7360 = vmatprep.mubr.bf16.mxu0 %v5025_v24  ;;  %v5074_v8 = vrot.slane %v5072_v41, 4  ;;  %v2370_v24 = vsel %vm2285_vm12, %v2361_v40, %v2369_v45  ;;  %v5081_v40 = vshll.u32 %v9551_v63, 16  ;;  %v5067_v45 = vor.u32 %v5066_v42, %v9736_v34  ;;  %v9764_v41 = vld [vmem:[%s8553_s9 + $0xb8] sm:$0xf] }
 0x19a   : >> { %7055 = vmatpush3.bf16.msra.mxu1 %v8026_v30  ;;  %v2387_v30 = vsel %vm2285_vm12, %v2378_v27, %v2386_v37  ;;  %v5080_v16 = vrot.slane %v5078_v52, 3  ;;  %v5091_v63 = vrot.slane %v5089_v25, 4  ;;  %v2417_v34 = vshll.u32 %v9750_v38, 16 }
 0x19b   : >> { %7375 = vmatpush3.bf16.msra.mxu0 %v8027_v7  ;;  %7056 = vmatprep.subr.bf16.mxu1 %v8028_v21  ;;  %v2402_v7 = vrot.slane %v2400_v32, 7  ;;  %v5075_v9 = vor.u32 %v5074_v8, %v5071_v15  ;;  %v5083_v10 = vrot.slane %v5081_v40, 4  ;;  %v2408_v37 = vrot.slane %v2406_v56, 6  ;;  %v8035_v32 = vld [vmem:[#allocation6 + $0x4a8] sm:$0xff]   ;;  %v9774_v40 = vld [vmem:[%s8553_s9] sm:$0x80] }
 0x19c   : >> { %7376 = vmatprep.subr.bf16.mxu0 %v8029_v46  ;;  %v5092_v27 = vor.u32 %v5091_v63, %v5088_v60  ;;  %v5095_v42 = vshrl.u32 %v9564_v5, 16  ;;  %v2419_v8 = vrot.slane %v2417_v34, 7  ;;  %v2632_v56 = vrot.slane %v9774_v40, 7 }
 0x19d   : >> { %7041 = vmatmul.mubr.bf16.gmra.mrb[4].mxu1 %v9710_v55  ;;  %v2395_v55 = vor.u32 %v2394_v33, %v2391_v31  ;;  %v2403_v58 = vor.u32 %v2402_v7, %v2399_v14  ;;  %v5106_v31 = vshll.u32 %v9764_v41, 16  ;;  %v5100_v33 = vrot.slane %v5098_v12, 4 }
 0x19e   : >> { %7361 = vmatmul.mubr.bf16.gmra.mrb[4].mxu0 %v5042_v62  ;;  %7057 = vmatpush3.bf16.msra.mxu1 %v8028_v21  ;;  %v2409_v21 = vshll.u32 %v9554_v48, 16  ;;  %v2414_v62 = vshrl.u32 %v9750_v38, 16  ;;  %v5076_v48 = vsel %vm464_vm0, %v5067_v45, %v5075_v9  ;;  %v9777_v9 = vld [vmem:[%s8553_s9 + $0x8] sm:$0xf0]  ;;  %v5321_v63 = vrot.slane %v9590_v13, 4 }
 0x19f   : >> { %7377 = vmatpush3.bf16.msra.mxu0 %v8029_v46  ;;  %7058 = vmatprep.subr.bf16.mxu1 %v8030_v57  ;;  %v5084_v46 = vor.u32 %v5083_v10, %v5080_v16  ;;  %v5108_v5 = vrot.slane %v5106_v31, 4  ;;  %v8038_v16 = vld [vmem:[#allocation6 + $0x238] sm:$0xff]   ;;  %v5320_v60 = vrot.slane %v9777_v9, 4  ;;  %v2639_v12 = vrot.slane %v9639_v20, 7  ;;  %v8042_v20 = vld [vmem:[#allocation6 + $0x248] sm:$0xff]  }
 0x1a0   : >> { %7378 = vmatprep.subr.bf16.mxu0 %v8031_v17  ;;  %7044 = vmatprep.mubr.bf16.mxu1 %v2370_v24  ;;  %v2411_v39 = vrot.slane %v2409_v21, 7  ;;  %v2416_v15 = vrot.slane %v2414_v62, 6  ;;  %v5097_v24 = vrot.slane %v5095_v42, 3  ;;  %v8039_v10 = vld [vmem:[#allocation6 + $0x4b8] sm:$0xff]   ;;  %v9789_v21 = vld [vmem:[%s8553_s9 + $0x20] sm:$0xf0] }
 0x1a1   : >> { %7364 = vmatprep.mubr.bf16.mxu0 %v5059_v3  ;;  %v5103_v3 = vshrl.u32 %v9764_v41, 16  ;;  %v5322_v34 = vsel %vm939_vm3, %v5320_v60, %v5321_v63  ;;  %v5323_v42 = vrot.slane %v9789_v21, 4  ;;  %v8043_v31 = vld [vmem:[#allocation6 + $0x4c8] sm:$0xff]   ;;  %v8048_v63 = vld [vmem:[#allocation6 + $0x260] sm:$0xff]  }
 0x1a2   : >> { %7059 = vmatpush3.bf16.msra.mxu1 %v8030_v57  ;;  %v2404_v57 = vsel %vm2285_vm12, %v2395_v55, %v2403_v58  ;;  %v2412_v52 = vor.u32 %v2411_v39, %v2408_v37  ;;  %v2420_v7 = vor.u32 %v2419_v8, %v2416_v15  ;;  %v5101_v25 = vor.u32 %v5100_v33, %v5097_v24  ;;  %v9786_v58 = vld [vmem:[%s8553_s9 + $0x18] sm:$0x80]  ;;  %v8040_v37 = vld [vmem:[#allocation6 + $0x240] sm:$0xff]  }
 0x1a3   : >> { %7379 = vmatpush3.bf16.msra.mxu0 %v8031_v17  ;;  %7060 = vmatprep.subr.bf16.mxu1 %v8032_v0  ;;  %v5105_v14 = vrot.slane %v5103_v3, 3  ;;  %v5093_v17 = vsel %vm464_vm0, %v5084_v46, %v5092_v27  ;;  %v2635_v13 = vrot.slane %v9786_v58, 7  ;;  %v2636_v46 = vrot.slane %v9597_v54, 7  ;;  %v9799_v27 = vld [vmem:[%s8553_s9 + $0x38] sm:$0xf0]  ;;  %v8041_v15 = vld [vmem:[#allocation6 + $0x4c0] sm:$0xff]  }
 0x1a4   : >> { %7380 = vmatprep.subr.bf16.mxu0 %v8033_v59  ;;  %v2421_v55 = vsel %vm2285_vm12, %v2412_v52, %v2420_v7  ;;  %v5324_v39 = vrot.slane %v9607_v11, 4  ;;  %v5326_v54 = vrot.slane %v9799_v27, 4  ;;  %v9812_v3 = vld [vmem:[%s8553_s9 + $0x50] sm:$0xf0]  ;;  %v9822_v52 = vld [vmem:[%s8553_s9 + $0x60] sm:$0x80] }
 0x1a5   : >> { %7045 = vmatmul.mubr.bf16.gmra.mrb[8].mxu1 %v2387_v30  ;;  %v5109_v45 = vor.u32 %v5108_v5, %v5105_v14  ;;  %v8037_v30 = vld [vmem:[#allocation6 + $0x4b0] sm:$0xff]   ;;  %v2637_v24 = vsel %vm2631_vm13, %v2635_v13, %v2636_v46  ;;  %v5329_v14 = vrot.slane %v9812_v3, 4  ;;  %v5330_v5 = vrot.slane %v9670_v19, 4  ;;  %v9825_v7 = vld [vmem:[%s8553_s9 + $0x68] sm:$0xf0] }
 0x1a6   : >> { %7365 = vmatmul.mubr.bf16.gmra.mrb[8].mxu0 %v5076_v48  ;;  %7061 = vmatpush3.bf16.msra.mxu1 %v8032_v0  ;;  %v2633_v0 = vrot.slane %v9583_v61, 7  ;;  %v9792_v61 = vld [vmem:[%s8553_s9 + $0x30] sm:$0x80]  ;;  %v9806_v48 = vld [vmem:[%s8553_s9 + $0x48] sm:$0x80]  ;;  %v5325_v11 = vsel %vm939_vm3, %v5323_v42, %v5324_v39  ;;  %v2645_v19 = vrot.slane %v9688_v53, 7 }
 0x1a7   : >> { %7381 = vmatpush3.bf16.msra.mxu0 %v8033_v59  ;;  %7062 = vmatprep.subr.bf16.mxu1 %v8034_v43  ;;  %v5110_v59 = vsel %vm464_vm0, %v5101_v25, %v5109_v45  ;;  %v2638_v8 = vrot.slane %v9792_v61, 7  ;;  %v5332_v45 = vrot.slane %v9825_v7, 4  ;;  %v9837_v53 = vld [vmem:[%s8553_s9 + $0x80] sm:$0xf0]  ;;  %v5336_v46 = vrot.slane %v9722_v6, 4 }
 0x1a8   : >> { %7382 = vmatprep.subr.bf16.mxu0 %v8035_v32  ;;  %7048 = vmatprep.mubr.bf16.mxu1 %v2404_v57  ;;  %v2634_v62 = vsel %vm2631_vm13, %v2632_v56, %v2633_v0  ;;  %v8044_v57 = vld [vmem:[#allocation6 + $0x250] sm:$0xff]   ;;  %v5331_v56 = vsel %vm939_vm3, %v5329_v14, %v5330_v5  ;;  %v8046_v0 = vld [vmem:[#allocation6 + $0x258] sm:$0xff]   ;;  %v5335_v13 = vrot.slane %v9837_v53, 4  ;;  %v2651_v42 = vrot.slane %v9733_v35, 7  ;;  %v9856_v39 = vld [vmem:[%s8553_s9 + $0xa8] sm:$0x80] }
 0x1a9   : >> { %7368 = vmatprep.mubr.bf16.mxu0 %v5093_v17  ;;  %v2640_v33 = vsel %vm2631_vm13, %v2638_v8, %v2639_v12  ;;  %v5541_v8 = vshll.u32 %v9777_v9, 16  ;;  %v8050_v12 = vld [vmem:[#allocation6 + $0x268] sm:$0xff]   ;;  %v5339_v6 = vrot.slane %v9742_v49, 4  ;;  %v2653_v49 = vrot.slane %v9856_v39, 7 }
 0x1aa   : >> { %7063 = vmatpush3.bf16.msra.mxu1 %v8034_v43  ;;  %v5327_v43 = vrot.slane %v9643_v50, 4  ;;  %v2642_v50 = vrot.slane %v9654_v29, 7  ;;  %v8045_v29 = vld [vmem:[#allocation6 + $0x4d0] sm:$0xff]   ;;  %v5555_v5 = vshrl.u32 %v9789_v21, 16 }
 0x1ab   : >> { %7383 = vmatpush3.bf16.msra.mxu0 %v8035_v32  ;;  %7064 = vmatprep.subr.bf16.mxu1 %v8036_v26  ;;  %v2641_v32 = vrot.slane %v9806_v48, 7  ;;  %v5543_v14 = vrot.slane %v5541_v8, 5 }
 0x1ac   : >> { %7384 = vmatprep.subr.bf16.mxu0 %v8037_v30  ;;  %v5328_v17 = vsel %vm939_vm3, %v5326_v54, %v5327_v43 }
 0x1ad   : >> { %7049 = vmatmul.mubr.bf16.gmra.mrb[12].mxu1 %v2421_v55  ;;  %v2643_v25 = vsel %vm2631_vm13, %v2641_v32, %v2642_v50  ;;  %v8047_v55 = vld [vmem:[#allocation6 + $0x4d8] sm:$0xff]   ;;  %v5337_v32 = vsel %vm939_vm3, %v5335_v13, %v5336_v46  ;;  %v9874_v50 = vld [vmem:[%s8553_s9 + $0xb0] sm:$0xf0]  ;;  %v2875_v46 = vshrl.u32 %v9792_v61, 16 }
 0x1ae   : >> { %7369 = vmatmul.mubr.bf16.gmra.mrb[12].mxu0 %v5110_v59  ;;  %7065 = vmatpush3.bf16.msra.mxu1 %v8036_v26  ;;  %v2644_v26 = vrot.slane %v9822_v52, 7 }
 0x1af   : >> { %7385 = vmatpush3.bf16.msra.mxu0 %v8037_v30  ;;  %7066 = vmatprep.subr.bf16.mxu1 %v8038_v16  ;;  %v5333_v30 = vrot.slane %v9695_v36, 4  ;;  %v2648_v36 = vrot.slane %v9706_v51, 7  ;;  %v8049_v51 = vld [vmem:[#allocation6 + $0x4e0] sm:$0xff]  }
 0x1b0   : >> { %7386 = vmatprep.subr.bf16.mxu0 %v8039_v10  ;;  %7068 = vmatprep.mubr.bf16.mxu1 %v2634_v62  ;;  %v9844_v62 = vld [vmem:[%s8553_s9 + $0x90] sm:$0x80] }
 0x1b1   : >> { %7388 = vmatprep.mubr.bf16.mxu0 %v5322_v34  ;;  %v5334_v59 = vsel %vm939_vm3, %v5332_v45, %v5333_v30  ;;  %v9847_v34 = vld [vmem:[%s8553_s9 + $0x10] sm:$0x1f]  ;;  %v2650_v54 = vrot.slane %v9844_v62, 7  ;;  %v5342_v45 = vrot.slane %v9764_v41, 4 }
 0x1b2   : >> { %7067 = vmatpush3.bf16.msra.mxu1 %v8038_v16  ;;  %v9833_v16 = vld [vmem:[%s8553_s9 + $0x78] sm:$0x80]  ;;  %v5546_v43 = vshrl.u32 %v9847_v34, 16 }
 0x1b3   : >> { %7387 = vmatpush3.bf16.msra.mxu0 %v8039_v10  ;;  %7084 = vmatprep.subr.bf16.mxu1 %v8040_v37  ;;  %v2646_v10 = vsel %vm2631_vm13, %v2644_v26, %v2645_v19  ;;  %v2647_v60 = vrot.slane %v9833_v16, 7 }
 0x1b4   : >> { %7404 = vmatprep.subr.bf16.mxu0 %v8041_v15  ;;  %v5548_v26 = vrot.slane %v5546_v43, 4  ;;  %v8055_v43 = vld [vmem:[#allocation6 + $0x4f8] sm:$0xff]  }
 0x1b5   : >> { %7069 = vmatmul.mubr.bf16.vlgmr.msra.gmra.mrb[0].mxu1 %v2637_v24  ;;  %v5549_v24 = vshll.u32 %v9847_v34, 16  ;;  %v2649_v35 = vsel %vm2631_vm13, %v2647_v60, %v2648_v36  ;;  %v2863_v36 = vshrl.u32 %v9786_v58, 16 }
 0x1b6   : >> { %7389 = vmatmul.mubr.bf16.vlgmr.msra.gmra.mrb[0].mxu0 %v5325_v11  ;;  %7085 = vmatpush3.bf16.msra.mxu1 %v8040_v37  ;;  %v9852_v37 = vld [vmem:[%s8553_s9 + $0x98] sm:$0xf0]  ;;  %v8051_v11 = vld [vmem:[#allocation6 + $0x4e8] sm:$0xff]  }
 0x1b7   : >> { %7405 = vmatpush3.bf16.msra.mxu0 %v8041_v15  ;;  %7086 = vmatprep.subr.bf16.mxu1 %v8042_v20  ;;  %v5538_v15 = vshrl.u32 %v9777_v9, 16  ;;  %v9868_v9 = vld [vmem:[%s8553_s9 + $0x28] sm:$0x1f]  ;;  %v5551_v19 = vrot.slane %v5549_v24, 5  ;;  %v2865_v24 = vrot.slane %v2863_v36, 7 }
 0x1b8   : >> { %7406 = vmatprep.subr.bf16.mxu0 %v8043_v31  ;;  %7072 = vmatprep.mubr.bf16.mxu1 %v2640_v33  ;;  %v2851_v33 = vshrl.u32 %v9774_v40, 16  ;;  %v5566_v30 = vshll.u32 %v9868_v9, 16 }
 0x1b9   : >> { %7392 = vmatprep.mubr.bf16.mxu0 %v5328_v17  ;;  %v5558_v17 = vshll.u32 %v9789_v21, 16 }
 0x1ba   : >> { %7087 = vmatpush3.bf16.msra.mxu1 %v8042_v20  ;;  %v5338_v20 = vrot.slane %v9852_v37, 4 }
 0x1bb   : >> { %7407 = vmatpush3.bf16.msra.mxu0 %v8043_v31  ;;  %7088 = vmatprep.subr.bf16.mxu1 %v8044_v57  ;;  %v2654_v31 = vrot.slane %v9750_v38, 7  ;;  %v2652_v38 = vsel %vm2631_vm13, %v2650_v54, %v2651_v42  ;;  %v5560_v41 = vrot.slane %v5558_v17, 5  ;;  %v5568_v42 = vrot.slane %v5566_v30, 5 }
 0x1bc   : >> { %7408 = vmatprep.subr.bf16.mxu0 %v8045_v29  ;;  %v5340_v40 = vsel %vm939_vm3, %v5338_v20, %v5339_v6  ;;  %v8054_v6 = vld [vmem:[#allocation6 + $0x278] sm:$0xff]   ;;  %v2877_v20 = vrot.slane %v2875_v46, 7  ;;  %v5592_v17 = vshll.u32 %v9812_v3, 16 }
 0x1bd   : >> { %7073 = vmatmul.mubr.bf16.gmra.mrb[4].mxu1 %v2643_v25  ;;  %v5563_v25 = vshrl.u32 %v9868_v9, 16  ;;  %v2655_v21 = vsel %vm2631_vm13, %v2653_v49, %v2654_v31 }
 0x1be   : >> { %7393 = vmatmul.mubr.bf16.gmra.mrb[4].mxu0 %v5331_v56  ;;  %7089 = vmatpush3.bf16.msra.mxu1 %v8044_v57  ;;  %v5540_v57 = vrot.slane %v5538_v15, 4  ;;  %v5341_v56 = vrot.slane %v9874_v50, 4  ;;  %v5575_v15 = vshll.u32 %v9799_v27, 16 }
 0x1bf   : >> { %7409 = vmatpush3.bf16.msra.mxu0 %v8045_v29  ;;  %7090 = vmatprep.subr.bf16.mxu1 %v8046_v0  ;;  %v8052_v29 = vld [vmem:[#allocation6 + $0x270] sm:$0xff]   ;;  %v5565_v13 = vrot.slane %v5563_v25, 4  ;;  %v2885_v25 = vsel %vm2849_vm14, %v2877_v20, %v8633_v4  ;;  %v2899_v4 = vshrl.u32 %v9822_v52, 16 }
 0x1c0   : >> { %7410 = vmatprep.subr.bf16.mxu0 %v8047_v55  ;;  %7076 = vmatprep.mubr.bf16.mxu1 %v2646_v10  ;;  %v8053_v10 = vld [vmem:[#allocation6 + $0x4f0] sm:$0xff]   ;;  %v5544_v60 = vor.u32 %v5543_v14, %v5540_v57  ;;  %v5343_v58 = vsel %vm939_vm3, %v5341_v56, %v5342_v45  ;;  %v5577_v49 = vrot.slane %v5575_v15, 5 }
 0x1c1   : >> { %7396 = vmatprep.mubr.bf16.mxu0 %v5334_v59  ;;  %v5552_v59 = vor.u32 %v5551_v19, %v5548_v26  ;;  %v9903_v14 = vld [vmem:[%s8553_s9 + $0x70] sm:$0x1f]  ;;  %v5609_v26 = vshll.u32 %v9825_v7, 16  ;;  %v2873_v19 = vsel %vm2849_vm14, %v2865_v24, %v8614_v47  ;;  %v5594_v47 = vrot.slane %v5592_v17, 5  ;;  %v9941_v17 = vld [vmem:[%s8553_s9 + $0xb8] sm:$0x1f] }
 0x1c2   : >> { %7091 = vmatpush3.bf16.msra.mxu1 %v8046_v0  ;;  %v2853_v0 = vrot.slane %v2851_v33, 7  ;;  %v2911_v24 = vshrl.u32 %v9833_v16, 16  ;;  %v8059_v16 = vld [vmem:[#allocation6 + $0x518] sm:$0xff]  }
 0x1c3   : >> { %7411 = vmatpush3.bf16.msra.mxu0 %v8047_v55  ;;  %7092 = vmatprep.subr.bf16.mxu1 %v8048_v63  ;;  %v9886_v55 = vld [vmem:[%s8553_s9 + $0x40] sm:$0x1f] }
 0x1c4   : >> { %7412 = vmatprep.subr.bf16.mxu0 %v8049_v51  ;;  %v5580_v8 = vshrl.u32 %v9886_v55, 16  ;;  %v5583_v54 = vshll.u32 %v9886_v55, 16  ;;  %v2861_v61 = vsel %vm2849_vm14, %v2853_v0, %v8585_v23  ;;  %v8056_v23 = vld [vmem:[#allocation6 + $0x500] sm:$0xff]   ;;  %v9919_v0 = vld [vmem:[%s8553_s9 + $0x88] sm:$0x1f] }
 0x1c5   : >> { %7077 = vmatmul.mubr.bf16.gmra.mrb[8].mxu1 %v2649_v35  ;;  %v9898_v35 = vld [vmem:[%s8553_s9 + $0x58] sm:$0x1f] }
 0x1c6   : >> { %7397 = vmatmul.mubr.bf16.gmra.mrb[8].mxu0 %v5337_v32  ;;  %7093 = vmatpush3.bf16.msra.mxu1 %v8048_v63  ;;  %v5557_v63 = vrot.slane %v5555_v5, 4  ;;  %v5569_v32 = vor.u32 %v5568_v42, %v5565_v13  ;;  %v5582_v33 = vrot.slane %v5580_v8, 4  ;;  %v5585_v57 = vrot.slane %v5583_v54, 5 }
 0x1c7   : >> { %7413 = vmatpush3.bf16.msra.mxu0 %v8049_v51  ;;  %7094 = vmatprep.subr.bf16.mxu1 %v8050_v12  ;;  %v5572_v51 = vshrl.u32 %v9799_v27, 16  ;;  %v5553_v27 = vsel %vm1157_vm5, %v5544_v60, %v5552_v59  ;;  %v5589_v5 = vshrl.u32 %v9812_v3, 16  ;;  %v5614_v3 = vshrl.u32 %v9903_v14, 16 }
 0x1c8   : >> { %7414 = vmatprep.subr.bf16.mxu0 %v8051_v11  ;;  %7080 = vmatprep.mubr.bf16.mxu1 %v2652_v38  ;;  %v5597_v38 = vshrl.u32 %v9898_v35, 16  ;;  %v5623_v59 = vshrl.u32 %v9837_v53, 16  ;;  %v5631_v42 = vshrl.u32 %v9919_v0, 16  ;;  %v5634_v8 = vshll.u32 %v9919_v0, 16 }
 0x1c9   : >> { %7400 = vmatprep.mubr.bf16.mxu0 %v5340_v40  ;;  %v5574_v31 = vrot.slane %v5572_v51, 4  ;;  %v5617_v40 = vshll.u32 %v9903_v14, 16  ;;  %v5616_v13 = vrot.slane %v5614_v3, 4  ;;  %v5626_v51 = vshll.u32 %v9837_v53, 16 }
 0x1ca   : >> { %7095 = vmatpush3.bf16.msra.mxu1 %v8050_v12  ;;  %v5561_v12 = vor.u32 %v5560_v41, %v5557_v63  ;;  %v5599_v60 = vrot.slane %v5597_v38, 4  ;;  %v5611_v41 = vrot.slane %v5609_v26, 5  ;;  %v2901_v53 = vrot.slane %v2899_v4, 7 }
 0x1cb   : >> { %7415 = vmatpush3.bf16.msra.mxu0 %v8051_v11  ;;  %7096 = vmatprep.subr.bf16.mxu1 %v8052_v29  ;;  %v2887_v11 = vshrl.u32 %v9806_v48, 16  ;;  %v5600_v48 = vshll.u32 %v9898_v35, 16  ;;  %v5578_v30 = vor.u32 %v5577_v49, %v5574_v31  ;;  %v5619_v46 = vrot.slane %v5617_v40, 5  ;;  %v8060_v40 = vld [vmem:[#allocation6 + $0x520] sm:$0xff]  }
 0x1cc   : >> { %7416 = vmatprep.subr.bf16.mxu0 %v8053_v10  ;;  %v5570_v45 = vsel %vm1157_vm5, %v5561_v12, %v5569_v32  ;;  %v5625_v12 = vrot.slane %v5623_v59, 4  ;;  %v5628_v20 = vrot.slane %v5626_v51, 5  ;;  %v5633_v31 = vrot.slane %v5631_v42, 4  ;;  %v8062_v42 = vld [vmem:[#allocation6 + $0x530] sm:$0xff]  }
 0x1cd   : >> { %7081 = vmatmul.mubr.bf16.gmra.mrb[12].mxu1 %v2655_v21  ;;  %v5586_v21 = vor.u32 %v5585_v57, %v5582_v33  ;;  %v2889_v56 = vrot.slane %v2887_v11, 7  ;;  %v5602_v36 = vrot.slane %v5600_v48, 5  ;;  %v5640_v11 = vshrl.u32 %v9852_v37, 16 }
 0x1ce   : >> { %7401 = vmatmul.mubr.bf16.gmra.mrb[12].mxu0 %v5343_v58  ;;  %7097 = vmatpush3.bf16.msra.mxu1 %v8052_v29  ;;  %v5606_v29 = vshrl.u32 %v9825_v7, 16  ;;  %v8057_v7 = vld [vmem:[#allocation6 + $0x508] sm:$0xff]   ;;  %v5643_v32 = vshll.u32 %v9852_v37, 16  ;;  %v5629_v37 = vor.u32 %v5628_v20, %v5625_v12  ;;  %v2923_v48 = vshrl.u32 %v9844_v62, 16  ;;  %v5864_v12 = vld [vmem:[%s8553_s9 + $0x98] sm:$0xe0] }
 0x1cf   : >> { %7417 = vmatpush3.bf16.msra.mxu0 %v8053_v10  ;;  %7098 = vmatprep.subr.bf16.mxu1 %v8054_v6  ;;  %v5591_v10 = vrot.slane %v5589_v5, 4  ;;  %v5587_v15 = vsel %vm1157_vm5, %v5578_v30, %v5586_v21  ;;  %v2897_v52 = vsel %vm2849_vm14, %v2889_v56, %v8641_v22  ;;  %v5603_v58 = vor.u32 %v5602_v36, %v5599_v60 }
 0x1d0   : >> { %7418 = vmatprep.subr.bf16.mxu0 %v8055_v43  ;;  %7100 = vmatprep.mubr.bf16.mxu1 %v2861_v61  ;;  %v5608_v63 = vrot.slane %v5606_v29, 4  ;;  %v5636_v22 = vrot.slane %v5634_v8, 5  ;;  %v2913_v5 = vrot.slane %v2911_v24, 7  ;;  %v5642_v29 = vrot.slane %v5640_v11, 4  ;;  %v5859_v24 = vld [vmem:[%s8553_s9 + $0x20] sm:$0xe0] }
 0x1d1   : >> { %7420 = vmatprep.mubr.bf16.mxu0 %v5553_v27  ;;  %v5595_v54 = vor.u32 %v5594_v47, %v5591_v10  ;;  %v5620_v27 = vor.u32 %v5619_v46, %v5616_v13  ;;  %v5665_v30 = vshrl.u32 %v9941_v17, 16  ;;  %v5668_v21 = vshll.u32 %v9941_v17, 16  ;;  %v5858_v46 = vld [vmem:[%s8553_s9 + $0x8] sm:$0xe0] }
 0x1d2   : >> { %7099 = vmatpush3.bf16.msra.mxu1 %v8054_v6  ;;  %v8058_v6 = vld [vmem:[#allocation6 + $0x510] sm:$0xff]   ;;  %v5612_v61 = vor.u32 %v5611_v41, %v5608_v63  ;;  %v5637_v26 = vor.u32 %v5636_v22, %v5633_v31  ;;  %v2921_v62 = vsel %vm2849_vm14, %v2913_v5, %v8699_v44  ;;  %v2925_v56 = vrot.slane %v2923_v48, 7 }
 0x1d3   : >> { %7419 = vmatpush3.bf16.msra.mxu0 %v8055_v43  ;;  %7468 = vmatprep.subr.bf16.mxu1 %v8056_v23  ;;  %v9930_v43 = vld [vmem:[%s8553_s9 + $0xa0] sm:$0x1f]  ;;  %v5604_v57 = vsel %vm1157_vm5, %v5595_v54, %v5603_v58  ;;  %v2935_v60 = vshrl.u32 %v9856_v39, 16  ;;  %v5667_v63 = vrot.slane %v5665_v30, 4  ;;  %v5670_v41 = vrot.slane %v5668_v21, 5 }
 0x1d4   : >> { %7436 = vmatprep.subr.bf16.mxu0 %v8056_v23  ;;  %v5648_v49 = vshrl.u32 %v9930_v43, 16  ;;  %v5651_v33 = vshll.u32 %v9930_v43, 16  ;;  %v5621_v38 = vsel %vm1157_vm5, %v5612_v61, %v5620_v27  ;;  %v2933_v44 = vsel %vm2849_vm14, %v2925_v56, %v8719_v18  ;;  %v5863_v61 = vld [vmem:[%s8553_s9 + $0x80] sm:$0xe0]  ;;  %v5861_v5 = vld [vmem:[%s8553_s9 + $0x50] sm:$0xe0] }
 0x1d5   : >> { %7101 = vmatmul.mubr.bf16.vlgmr.msra.gmra.mrb[0].mxu1 %v2873_v19  ;;  %v5645_v19 = vrot.slane %v5643_v32, 5  ;;  %v2937_v13 = vrot.slane %v2935_v60, 7  ;;  %v5671_v51 = vor.u32 %v5670_v41, %v5667_v63  ;;  %v5882_v8 = vrot.slane %v5858_v46, 5 }
 0x1d6   : >> { %7421 = vmatmul.mubr.bf16.vlgmr.msra.gmra.mrb[0].mxu0 %v5570_v45  ;;  %7476 = vmatpush3.bf16.msra.mxu1 %v8056_v23  ;;  %v5653_v3 = vrot.slane %v5651_v33, 5  ;;  %v5660_v45 = vshll.u32 %v9874_v50, 16  ;;  %v5883_v18 = vrot.slane %v9847_v34, 5  ;;  %v5895_v58 = vrot.slane %v9903_v14, 5  ;;  %v5860_v34 = vld [vmem:[%s8553_s9 + $0x38] sm:$0xe0] }
 0x1d7   : >> { %7437 = vmatpush3.bf16.msra.mxu0 %v8056_v23  ;;  %7469 = vmatprep.subr.bf16.mxu1 %v8057_v7  ;;  %v2909_v23 = vsel %vm2849_vm14, %v2901_v53, %v8678_v2  ;;  %v5657_v2 = vshrl.u32 %v9874_v50, 16  ;;  %v5646_v10 = vor.u32 %v5645_v19, %v5642_v29  ;;  %v8061_v50 = vld [vmem:[#allocation6 + $0x528] sm:$0xff]   ;;  %v8063_v53 = vld [vmem:[#allocation6 + $0x538] sm:$0xff]   ;;  %v5897_v20 = vrot.slane %v5863_v61, 5 }
 0x1d8   : >> { %7438 = vmatprep.subr.bf16.mxu0 %v8057_v7  ;;  %7104 = vmatprep.mubr.bf16.mxu1 %v2885_v25  ;;  %v5650_v25 = vrot.slane %v5648_v49, 4  ;;  %v5662_v4 = vrot.slane %v5660_v45, 5  ;;  %v5884_v27 = vsel %vm1503_vm7, %v5882_v8, %v5883_v18  ;;  %v5898_v14 = vrot.slane %v9919_v0, 5 }
 0x1d9   : >> { %7424 = vmatprep.mubr.bf16.mxu0 %v5587_v15  ;;  %v5659_v36 = vrot.slane %v5657_v2, 4  ;;  %v5862_v15 = vld [vmem:[%s8553_s9 + $0x68] sm:$0xe0]  ;;  %v5885_v31 = vrot.slane %v5859_v24, 5  ;;  %v5886_v11 = vrot.slane %v9868_v9, 5  ;;  %v5900_v22 = vrot.slane %v5864_v12, 5 }
 0x1da   : >> { %7477 = vmatpush3.bf16.msra.mxu1 %v8057_v7  ;;  %v5654_v47 = vor.u32 %v5653_v3, %v5650_v25  ;;  %v5894_v54 = vrot.slane %v5862_v15, 5  ;;  %v5901_v32 = vrot.slane %v9930_v43, 5  ;;  %v5888_v49 = vrot.slane %v5860_v34, 5 }
 0x1db   : >> { %7439 = vmatpush3.bf16.msra.mxu0 %v8057_v7  ;;  %7470 = vmatprep.subr.bf16.mxu1 %v8058_v6  ;;  %v5638_v7 = vsel %vm1157_vm5, %v5629_v37, %v5637_v26  ;;  %v5663_v39 = vor.u32 %v5662_v4, %v5659_v36  ;;  %v5889_v33 = vrot.slane %v9886_v55, 5  ;;  %v5887_v0 = vsel %vm1503_vm7, %v5885_v31, %v5886_v11 }
 0x1dc   : >> { %7440 = vmatprep.subr.bf16.mxu0 %v8058_v6  ;;  %v5655_v59 = vsel %vm1157_vm5, %v5646_v10, %v5654_v47  ;;  %v5891_v55 = vrot.slane %v5861_v5, 5  ;;  %v5892_v37 = vrot.slane %v9898_v35, 5 }
 0x1dd   : >> { %7105 = vmatmul.mubr.bf16.gmra.mrb[4].mxu1 %v2897_v52  ;;  %v2945_v52 = vsel %vm2849_vm14, %v2937_v13, %v8737_v28  ;;  %v5896_v28 = vsel %vm1503_vm7, %v5894_v54, %v5895_v58  ;;  %v5890_v9 = vsel %vm1503_vm7, %v5888_v49, %v5889_v33 }
 0x1de   : >> { %7425 = vmatmul.mubr.bf16.gmra.mrb[4].mxu0 %v5604_v57  ;;  %7478 = vmatpush3.bf16.msra.mxu1 %v8058_v6  ;;  %v5899_v57 = vsel %vm1503_vm7, %v5897_v20, %v5898_v14  ;;  %v5893_v29 = vsel %vm1503_vm7, %v5891_v55, %v5892_v37 }
 0x1df   : >> { %7441 = vmatpush3.bf16.msra.mxu0 %v8058_v6  ;;  %7471 = vmatprep.subr.bf16.mxu1 %v8059_v16  ;;  %v5672_v6 = vsel %vm1157_vm5, %v5663_v39, %v5671_v51 }
 0x1e0   : >> { %7442 = vmatprep.subr.bf16.mxu0 %v8059_v16  ;;  %7108 = vmatprep.mubr.bf16.mxu1 %v2909_v23  ;;  %v5865_v23 = vld [vmem:[%s8553_s9 + $0xb0] sm:$0xe0] }
 0x1e1   : >> { %7428 = vmatprep.mubr.bf16.mxu0 %v5621_v38  ;;  %v5903_v43 = vrot.slane %v5865_v23, 5  ;;  %v5904_v38 = vrot.slane %v9941_v17, 5 }
 0x1e2   : >> { %7479 = vmatpush3.bf16.msra.mxu1 %v8059_v16 }
 0x1e3   : >> { %7443 = vmatpush3.bf16.msra.mxu0 %v8059_v16  ;;  %7472 = vmatprep.subr.bf16.mxu1 %v8060_v40  ;;  %v5902_v16 = vsel %vm1503_vm7, %v5900_v22, %v5901_v32  ;;  %v5905_v48 = vsel %vm1503_vm7, %v5903_v43, %v5904_v38 }
 0x1e4   : >> { %7444 = vmatprep.subr.bf16.mxu0 %v8060_v40 }
 0x1e5   : >> { %7109 = vmatmul.mubr.bf16.gmra.mrb[8].mxu1 %v2921_v62 }
 0x1e6   : >> { %7429 = vmatmul.mubr.bf16.gmra.mrb[8].mxu0 %v5638_v7  ;;  %7480 = vmatpush3.bf16.msra.mxu1 %v8060_v40 }
 0x1e7   : >> { %7445 = vmatpush3.bf16.msra.mxu0 %v8060_v40  ;;  %7473 = vmatprep.subr.bf16.mxu1 %v8061_v50 }
 0x1e8   : >> { %7446 = vmatprep.subr.bf16.mxu0 %v8061_v50  ;;  %7112 = vmatprep.mubr.bf16.mxu1 %v2933_v44 }
 0x1e9   : >> { %7432 = vmatprep.mubr.bf16.mxu0 %v5655_v59 }
 0x1ea   : >> { %7481 = vmatpush3.bf16.msra.mxu1 %v8061_v50 }
 0x1eb   : >> { %7447 = vmatpush3.bf16.msra.mxu0 %v8061_v50  ;;  %7474 = vmatprep.subr.bf16.mxu1 %v8062_v42 }
 0x1ec   : >> { %7448 = vmatprep.subr.bf16.mxu0 %v8062_v42 }
 0x1ed   : >> { %7113 = vmatmul.mubr.bf16.gmra.mrb[12].mxu1 %v2945_v52 }
 0x1ee   : >> { %7433 = vmatmul.mubr.bf16.gmra.mrb[12].mxu0 %v5672_v6  ;;  %7482 = vmatpush3.bf16.msra.mxu1 %v8062_v42 }
 0x1ef   : >> { %7449 = vmatpush3.bf16.msra.mxu0 %v8062_v42  ;;  %7475 = vmatprep.subr.bf16.mxu1 %v8063_v53 }
 0x1f0   : >> { %7450 = vmatprep.subr.bf16.mxu0 %v8063_v53  ;;  %7452 = vmatprep.mubr.bf16.mxu0 %v5884_v27 }
 0x1f1   : >> { %7460 = vmatprep.mubr.bf16.mxu1 %v5896_v28 }
 0x1f2   : >> { %7483 = vmatpush3.bf16.msra.mxu1 %v8063_v53 }
 0x1f3   : >> { %7451 = vmatpush3.bf16.msra.mxu0 %v8063_v53 }
 0x1f5   : >> { %7461 = vmatmul.mubr.bf16.vlgmr.msra.gmra.mrb[16].mxu1 %v5899_v57 }
 0x1f6   : >> { %7453 = vmatmul.mubr.bf16.vlgmr.msra.gmra.mrb[0].mxu0 %v5887_v0  ;;  %7464 = vmatprep.mubr.bf16.mxu1 %v5902_v16 }
 0x1f7   : >> { %7456 = vmatprep.mubr.bf16.mxu0 %v5890_v9 }
 0x1fd   : >> { %7465 = vmatmul.mubr.bf16.gmra.mrb[20].mxu1 %v5905_v48 }
 0x1fe   : >> { %7457 = vmatmul.mubr.bf16.gmra.mrb[4].mxu0 %v5893_v29 }
 0x2a8   : >> { %v7102_v26 = vpop.f32.mrb[0].mxu1 }
 0x2a9   : >> { %v3052_v19 = vpop.f32.mrb[1].mxu1 }
 0x2aa   : >> { %v7103_v25 = vpop.f32.mrb[2].mxu1 }
 0x2ab   : >> { %v3055_v3 = vpop.f32.mrb[3].mxu1 }
 0x2b0   : >> { %v9983_v40 = vpop.f32.mrb[4].mxu1 }
 0x2b1   : >> { %v9985_v2 = vpop.f32.mrb[5].mxu1 }
 0x2b2   : >> { %v9987_v45 = vpop.f32.mrb[6].mxu1 }
 0x2b3   : >> { %v9989_v17 = vpop.f32.mrb[7].mxu1 }
 0x2b8   : >> { %v7110_v30 = vpop.f32.mrb[8].mxu1 }
 0x2b9   : >> { %v7430_v35 = vpop.f32.mrb[8].mxu0  ;;  %v3084_v21 = vpop.f32.mrb[9].mxu1 }
 0x2ba   : >> { %v7492_v62 = vadd.f32 %v7430_v35, %v7110_v30  ;;  %v5811_v56 = vpop.f32.mrb[9].mxu0  ;;  %v7111_v7 = vpop.f32.mrb[10].mxu1 }
 0x2bb   : >> { %v7494_v10 = vadd.f32 %v5811_v56, %v3084_v21  ;;  %v7431_v47 = vpop.f32.mrb[10].mxu0  ;;  %v3087_v60 = vpop.f32.mrb[11].mxu1 }
 0x2bc   : >> { %v7496_v50 = vadd.f32 %v7431_v47, %v7111_v7  ;;  %v5814_v36 = vpop.f32.mrb[11].mxu0 }
 0x2bd   : >> { %v7498_v4 = vadd.f32 %v5814_v36, %v3087_v60 }
 0x2c0   : >> { %v7114_v63 = vpop.f32.mrb[12].mxu1 }
 0x2c1   : >> { %v7434_v41 = vpop.f32.mrb[12].mxu0  ;;  %v3100_v44 = vpop.f32.mrb[13].mxu1 }
 0x2c2   : >> { %v7500_v59 = vadd.f32 %v7434_v41, %v7114_v63  ;;  %v5827_v13 = vpop.f32.mrb[13].mxu0  ;;  %v7115_v46 = vpop.f32.mrb[14].mxu1 }
 0x2c3   : >> { %v7502_v39 = vadd.f32 %v5827_v13, %v3100_v44  ;;  %v7435_v51 = vpop.f32.mrb[14].mxu0  ;;  %v3103_v42 = vpop.f32.mrb[15].mxu1 }
 0x2c4   : >> { %v7504_v15 = vadd.f32 %v7435_v51, %v7115_v46  ;;  %v5830_v8 = vpop.f32.mrb[15].mxu0 }
 0x2c5   : >> { %v7506_v18 = vadd.f32 %v5830_v8, %v3103_v42 }
 0x2c8   : >> { %v7462_v52 = vpop.f32.mrb[16].mxu1 }
 0x2c9   : >> { %v7454_v54 = vpop.f32.mrb[0].mxu0  ;;  %v7493_v58 = vadd.f32 %v7492_v62, %v7462_v52  ;;  %v6044_v6 = vpop.f32.mrb[17].mxu1 }
 0x2ca   : >> { %v7484_v53 = vadd.f32 %v7454_v54, %v7102_v26  ;;  %v6012_v61 = vpop.f32.mrb[1].mxu0  ;;  %v7495_v24 = vadd.f32 %v7494_v10, %v6044_v6  ;;  %v7463_v12 = vpop.f32.mrb[18].mxu1 }
 0x2cb   : >> { %v6107_v27 = vadd.f32 %v7493_v58, %v8509_v1  ;;  %v7485_v34 = vadd.f32 %v6012_v61, %v3052_v19  ;;  %v7455_v28 = vpop.f32.mrb[2].mxu0  ;;  %v7497_v20 = vadd.f32 %v7496_v50, %v7463_v12  ;;  %v6047_v14 = vpop.f32.mrb[19].mxu1 }
 0x2cc   : >> { %v6099_v31 = vadd.f32 %v7484_v53, %v8509_v1  ;;  %v6105_v11 = vadd.f32 %v7495_v24, %v8509_v1  ;;  %v7486_v22 = vadd.f32 %v7455_v28, %v7103_v25  ;;  %v6015_v32 = vpop.f32.mrb[3].mxu0  ;;  %v7499_v49 = vadd.f32 %v7498_v4, %v6047_v14 }
 0x2cd   : >> { %6125 = vst [vmem:[%s9993_s10 + $0x50] sm:$0xff] %v6107_v27  ;;  %v6097_v33 = vadd.f32 %v7485_v34, %v8509_v1  ;;  %v6108_v57 = vadd.f32 %v7497_v20, %v8509_v1  ;;  %v7487_v0 = vadd.f32 %v6015_v32, %v3055_v3 }
 0x2ce   : >> { %6117 = vst [vmem:[%s9993_s10 + $0x10] sm:$0xff] %v6099_v31  ;;  %6123 = vst [vmem:[%s9993_s10 + $0x40] sm:$0xff] %v6105_v11  ;;  %v6100_v16 = vadd.f32 %v7486_v22, %v8509_v1  ;;  %v6106_v23 = vadd.f32 %v7499_v49, %v8509_v1 }
 0x2cf   : >> { %6115 = vst [vmem:[%s9993_s10] sm:$0xff] %v6097_v33  ;;  %6126 = vst [vmem:[%s9993_s10 + $0x58] sm:$0xff] %v6108_v57  ;;  %v6098_v9 = vadd.f32 %v7487_v0, %v8509_v1 }
 0x2d0   : >> { %6118 = vst [vmem:[%s9993_s10 + $0x18] sm:$0xff] %v6100_v16  ;;  %6124 = vst [vmem:[%s9993_s10 + $0x48] sm:$0xff] %v6106_v23  ;;  %v7466_v5 = vpop.f32.mrb[20].mxu1 }
 0x2d1   : >> { %6116 = vst [vmem:[%s9993_s10 + $0x8] sm:$0xff] %v6098_v9  ;;  %v7458_v43 = vpop.f32.mrb[4].mxu0  ;;  %v7501_v38 = vadd.f32 %v7500_v59, %v7466_v5  ;;  %v6060_v55 = vpop.f32.mrb[21].mxu1 }
 0x2d2   : >> { %v7488_v37 = vadd.f32 %v7458_v43, %v9983_v40  ;;  %v6028_v48 = vpop.f32.mrb[5].mxu0  ;;  %v7503_v29 = vadd.f32 %v7502_v39, %v6060_v55  ;;  %v7467_v26 = vpop.f32.mrb[22].mxu1 }
 0x2d3   : >> { %v6111_v19 = vadd.f32 %v7501_v38, %v8509_v1  ;;  %v7489_v25 = vadd.f32 %v6028_v48, %v9985_v2  ;;  %v7459_v3 = vpop.f32.mrb[6].mxu0  ;;  %v7505_v30 = vadd.f32 %v7504_v15, %v7467_v26  ;;  %v6063_v35 = vpop.f32.mrb[23].mxu1  ;;  %369 = sbr.rel (!%p367_p6) target bundleno = 148 (0x94), region = 106 }
 0x2d4   : >> { %v6103_v21 = vadd.f32 %v7488_v37, %v8509_v1  ;;  %v6109_v62 = vadd.f32 %v7503_v29, %v8509_v1  ;;  %v7490_v40 = vadd.f32 %v7459_v3, %v9987_v45  ;;  %v6031_v56 = vpop.f32.mrb[7].mxu0  ;;  %v7507_v7 = vadd.f32 %v7506_v18, %v6063_v35 }
 0x2d5   : >> { %6129 = vst [vmem:[%s9993_s10 + $0x70] sm:$0xff] %v6111_v19  ;;  %v6101_v10 = vadd.f32 %v7489_v25, %v8509_v1  ;;  %v6112_v2 = vadd.f32 %v7505_v30, %v8509_v1  ;;  %v7491_v47 = vadd.f32 %v6031_v56, %v9989_v17 }
 0x2d6   : >> { %6121 = vst [vmem:[%s9993_s10 + $0x30] sm:$0xff] %v6103_v21  ;;  %6127 = vst [vmem:[%s9993_s10 + $0x60] sm:$0xff] %v6109_v62  ;;  %v6104_v60 = vadd.f32 %v7490_v40, %v8509_v1  ;;  %v6110_v50 = vadd.f32 %v7507_v7, %v8509_v1 }
 0x2d7   : >> { %6119 = vst [vmem:[%s9993_s10 + $0x20] sm:$0xff] %v6101_v10  ;;  %6130 = vst [vmem:[%s9993_s10 + $0x78] sm:$0xff] %v6112_v2  ;;  %v6102_v45 = vadd.f32 %v7491_v47, %v8509_v1 }
 0x2d8   : >> { %6122 = vst [vmem:[%s9993_s10 + $0x38] sm:$0xff] %v6104_v60  ;;  %6128 = vst [vmem:[%s9993_s10 + $0x68] sm:$0xff] %v6110_v50 }
 0x2d9   : >> { %6120 = vst [vmem:[%s9993_s10 + $0x28] sm:$0xff] %v6102_v45 }
 0x2da   : > { %8167 = shalt.err (!%p8164_p8)
}
 0x2db   : > { %s8168_s27 = scalar_lea.hbm %s10038_s21, 4096  ;;  %s8172_s30 = scalar_lea.hbm %s10093_s3, 8192 }
 0x2dc   : > { %p8169_p11 = scmp.ne.s32.totalorder %s10038_s21, %s8168_s27  ;;  %p8173_p7 = scmp.lt.u32.totalorder %s10038_s21, %s10093_s3 }
 0x2dd   : > { %p8174_p4 = scmp.lt.u32.totalorder %s8172_s30, %s8168_s27  ;;  %p8176_p1 = scmp.lt.u32.totalorder %s8168_s27, %s10038_s21 }
 0x2de   : > { %p8170_p12 = pnand %p8169_p11, %p10124_p3 }
 0x2df   : > { %p8175_p6 = por %p8174_p4, %p8173_p7 }
 0x2e0   : > { %p8171_p13 = pneg %p8170_p12 }
 0x2e1   : > { %p8177_p2 = por %p8176_p1, %p8175_p6 }
 0x2e3   : > { %p8178_p0 = pnand %p8177_p2, %p8171_p13 }
 0x2e5   : > { %8181 = shalt.err (!%p8178_p0)
}
 0x2e6   : > { %s8264_s6 = smov 128   ;;  %s8265_s10 = smov 256  }
 0x2e7   : > { %s8266_s23 = smov 8  }
 0x2e8   : > { %7811 = dma.vmem_to_hbm [thread:$0]  (%p10124_p3), %s10041_s25, 4096, %s10038_s21, %s6132_s0, %s8264_s6, %s8265_s10, %s8266_s23  }
 0x2e9 PF: > { %s6162_s22 = sand.u32 1, %s8228_s12   ;;  %p10125_p5 = scmp.ne.s32.totalorder %s10110_s8, 0 }
 0x2ea   : > { %p10126_p10 = scmp.ge.s32.totalorder %s8248_s17, 2  ;;  %s6163_s19 = scalar_lea.sflag [#allocation5], %s6162_s22 }
 0x2ec   : > { %p7825_p9 = pnand %p10126_p10, %p10125_p5 }
 0x2ee   : > { %8223 = dma.done.wait (!%p7825_p9), %s6163_s19, 4096  }
 0x2ef   : > { %8225 = vsyncadd (!%p7825_p9), %s6163_s19, 4294963200  ;;  %s20_s17 = sadd.s32 1, %s8248_s17   ;;  %s10127_s12 = smov %s8232_s13 }
 0x2f0   : > { %p17_p8 = scmp.ge.s32.totalorder %s20_s17, 4   ;;  %s10128_s13 = smov %s8236_s14 }
 0x2f1   : > { %s10129_s14 = smov %s8335_s24  ;;  %s10130_s15 = smov %s8244_s16 }
 0x2f2   : > { %s10131_s16 = smov %s10133_s18  ;;  %19 = sbr.rel (!%p17_p8) target bundleno = 9 (0x9), region = 117 }
 0x2f9   :  { %6168 = vsyncpa [#allocation4], 1 }
 0x2fa   :  { %6170 = vsyncpa [#allocation4 + $0x1], 1 }
 0x2fb   :  { %6171 = vsyncpa [#allocation7], 1 }
 0x2fc   :  { %6172 = vsyncpa [#allocation5], 1 }
 0x2fd   :  { %6174 = vsyncpa [#allocation5 + $0x1], 1 }

</bundles_post_ra>
